<compile_context>
chip_gen: v6e
topology: v6e:2x2x1
jax: 0.10.0
libtpu: 0.0.40
codegen_flags: <defaults>
</compile_context>

<pallas_src>
import jax
import jax.numpy as jnp
from jax.experimental import pallas as pl
from jax.experimental.pallas import tpu as pltpu


def _local_stats_kernel(x_ref, w1_ref, b1_ref, w2_ref, b2_ref, w3_ref, b3_ref,
                        o_ref):
    # x_ref : (C, TM)   f32      w1_ref: (Dh, C)  bf16    b1_ref: (Dh, 1) bf16
    # w2_ref: (Dh, Dh)  bf16     b2_ref: (Dh, 1)  bf16
    # w3_ref: (1, Dh)   bf16     b3_ref: (1, 1)   f32 (SMEM scalar)
    # o_ref : (1, TM)   f32

    # Cast the tiny (C, TM) tile to bf16 in-kernel (<= 8 vregs per step).
    x = x_ref[...].astype(jnp.bfloat16)

    # Layer 1: K = C_in contraction on the MXU, f32 accumulation.
    acc1 = jnp.dot(w1_ref[...], x, preferred_element_type=jnp.float32)
    h1 = jnp.maximum(acc1.astype(jnp.bfloat16) + b1_ref[...], 0.0)  # bf16 epilogue

    # Layer 2: main 512x512 matmul, bf16 inputs, f32 accumulation.
    acc2 = jnp.dot(w2_ref[...], h1, preferred_element_type=jnp.float32)
    h2 = jnp.maximum(acc2.astype(jnp.bfloat16) + b2_ref[...], 0.0)  # bf16 epilogue

    # Layer 3: 1-channel conv as an MXU matvec (a handful of extra pushes)
    # instead of a (Dh, TM) f32 VPU product + cross-sublane reduce.
    out = jnp.dot(w3_ref[...], h2, preferred_element_type=jnp.float32)  # (1, TM)
    o_ref[...] = (out + b3_ref[0, 0]).astype(o_ref.dtype)


def local_statistics_network(x_nchw, params, *, tm=1024):
    """Forward pass of LocalStatisticsNetwork.

    x_nchw : (N, C_in, H, W) float32
    params : PyTorch-layout weights:
             w1 (512, C_in), b1 (512,), w2 (512, 512), b2 (512,),
             w3 (1, 512),    b3 (1,)
    returns: (N, 1, H, W) float32
    """
    N, C, H, W = x_nchw.shape
    Dh = params["w1"].shape[0]
    HW = H * W

    # Pixel tile: multiple of 128 lanes, capped at 2048 (fits v7x's 64 MiB
    # VMEM with double-buffered blocks + f32/bf16 intermediates).
    tm = min(max(128, (tm // 128) * 128), 2048)
    tile = min(tm, pl.cdiv(HW, 128) * 128)
    if N == 1:
        # Keep >= 2 grid steps so v7x's second TensorCore has work.
        tile = min(tile, max(128, pl.cdiv(HW, 2 * 128) * 128))
    HW_pad = pl.cdiv(HW, tile) * tile

    # NCHW -> (N, C, HW): pure reshape, no transpose.  No wrapper dtype pass:
    # x is DMA'd as f32 and cast per-tile inside the kernel.
    x_flat = x_nchw.reshape(N, C, HW)
    if HW_pad != HW:
        x_flat = jnp.pad(x_flat, ((0, 0), (0, 0), (0, HW_pad - HW)))

    w1 = params["w1"].astype(jnp.bfloat16)                      # (Dh, C)
    b1 = params["b1"].reshape(Dh, 1).astype(jnp.bfloat16)
    w2 = params["w2"].astype(jnp.bfloat16)                      # (Dh, Dh)
    b2 = params["b2"].reshape(Dh, 1).astype(jnp.bfloat16)
    w3 = params["w3"].reshape(1, Dh).astype(jnp.bfloat16)       # row vector
    b3 = params["b3"].reshape(1, 1).astype(jnp.float32)

    grid = (N, HW_pad // tile)

    # VMEM budget: ~2*Dh*tile*(4+2) B of h1/h2 intermediates + ~2 MiB of
    # resident weight/bias/x/out blocks.  32 MiB covers tile <= ~1536 with
    # headroom; allow 48 MiB for the 2048-lane tile (still < v7x's 64 MiB).
    vmem_limit = 48 * 1024 * 1024 if tile >= 2048 else 32 * 1024 * 1024

    out = pl.pallas_call(
        _local_stats_kernel,
        out_shape=jax.ShapeDtypeStruct((N, 1, HW_pad), jnp.float32),
        grid=grid,
        in_specs=[
            pl.BlockSpec((None, C, tile), lambda n, i: (n, 0, i)),  # x tile (f32)
            pl.BlockSpec((Dh, C), lambda n, i: (0, 0)),             # w1 (resident)
            pl.BlockSpec((Dh, 1), lambda n, i: (0, 0)),             # b1
            pl.BlockSpec((Dh, Dh), lambda n, i: (0, 0)),            # w2 (resident)
            pl.BlockSpec((Dh, 1), lambda n, i: (0, 0)),             # b2
            pl.BlockSpec((1, Dh), lambda n, i: (0, 0)),             # w3 row
            pl.BlockSpec(memory_space=pltpu.MemorySpace.SMEM),      # b3 scalar
        ],
        out_specs=pl.BlockSpec((None, 1, tile), lambda n, i: (n, 0, i)),
        compiler_params=pltpu.CompilerParams(
            dimension_semantics=("parallel", "parallel"),
            vmem_limit_bytes=vmem_limit),
    )(x_flat, w1, b1, w2, b2, w3, b3)

    return out[:, :, :HW].reshape(N, 1, H, W)


def init_params(key, img_feature_channels, hidden=512):
    """Deterministic init mimicking PyTorch Conv2d default (fan-in uniform).

    1x1 conv weight [C_out, C_in, 1, 1] is stored as (C_out, C_in).
    """
    ks = jax.random.split(key, 6)

    def uinit(k, shape, fan_in):
        bound = 1.0 / jnp.sqrt(fan_in)
        return jax.random.uniform(k, shape, jnp.float32, -bound, bound)

    C = img_feature_channels
    return {
        "w1": uinit(ks[0], (hidden, C), C),
        "b1": uinit(ks[1], (hidden,), C),
        "w2": uinit(ks[2], (hidden, hidden), hidden),
        "b2": uinit(ks[3], (hidden,), hidden),
        "w3": uinit(ks[4], (1, hidden), hidden),
        "b3": uinit(ks[5], (1,), hidden),
    }


def _reference(x_nchw, params):
    # Pure-JAX reference mirroring the kernel's rounding exactly:
    # bf16-rounded x/w1/w2/w3, f32 matmul accumulation, bf16 bias+ReLU
    # epilogues.  Only accumulation order differs from the kernel.
    N, C, H, W = x_nchw.shape
    bf = lambda a: a.astype(jnp.bfloat16)
    f32 = jnp.float32

    x = jnp.transpose(x_nchw, (0, 2, 3, 1)).reshape(-1, C)
    x = bf(x).astype(f32)
    w1 = bf(params["w1"]).astype(f32)
    w2 = bf(params["w2"]).astype(f32)
    w3 = bf(params["w3"]).astype(f32)

    h = x @ w1.T                                             # f32 accumulate
    h = jnp.maximum(bf(h) + bf(params["b1"]), 0.0)           # bf16 epilogue
    h = h.astype(f32) @ w2.T                                 # f32 accumulate
    h = jnp.maximum(bf(h) + bf(params["b2"]), 0.0)           # bf16 epilogue
    o = h.astype(f32) @ w3.T + params["b3"]                  # f32
    return jnp.transpose(o.reshape(N, H, W, 1), (0, 3, 1, 2))


if __name__ == "__main__":
    key = jax.random.PRNGKey(0)
    kx, kp = jax.random.split(key)

    N, C, H, W = 2, 4, 16, 16   # batch=2, img_feature_channels=4, 16x16 map
    x = jax.random.normal(kx, (N, C, H, W), jnp.float32)
    params = init_params(kp, img_feature_channels=C)

    out = jax.block_until_ready(local_statistics_network(x, params))
    assert out.shape == (N, 1, H, W), out.shape

    ref = _reference(x, params)
    err = float(jnp.max(jnp.abs(out - ref)))
    assert jnp.allclose(out, ref, atol=5e-3, rtol=5e-3), f"max abs err {err}"

    print("KERNEL_OK")
</pallas_src>

<mosaic_0001>
module attributes {stable_mosaic.version = 11 : i64} {
  func.func @_local_stats_kernel(%arg0: i32, %arg1: i32, %arg2: memref<1x4x256xf32, #tpu.memory_space<vmem>>, %arg3: memref<512x4xbf16, #tpu.memory_space<vmem>>, %arg4: memref<512x1xbf16, #tpu.memory_space<vmem>>, %arg5: memref<512x512xbf16, #tpu.memory_space<vmem>>, %arg6: memref<512x1xbf16, #tpu.memory_space<vmem>>, %arg7: memref<1x512xbf16, #tpu.memory_space<vmem>>, %arg8: memref<1x1xf32, #tpu.memory_space<smem>>, %arg9: memref<1x1x256xf32, #tpu.memory_space<vmem>>) attributes {dimension_semantics = [#tpu.dimension_semantics<parallel>, #tpu.dimension_semantics<parallel>], iteration_bounds = array<i64: 2, 1>, scalar_prefetch = 0 : i64, scratch_operands = 0 : i64, tpu.core_type = #tpu.core_type<tc>, window_params = [{transform_indices = @transform_0, window_bounds = array<i64: 1, 4, 256>}, {pipeline_mode = #tpu.pipeline_mode<synchronous>, transform_indices = @transform_1, window_bounds = array<i64: 512, 4>}, {pipeline_mode = #tpu.pipeline_mode<synchronous>, transform_indices = @transform_2, window_bounds = array<i64: 512, 1>}, {pipeline_mode = #tpu.pipeline_mode<synchronous>, transform_indices = @transform_3, window_bounds = array<i64: 512, 512>}, {pipeline_mode = #tpu.pipeline_mode<synchronous>, transform_indices = @transform_4, window_bounds = array<i64: 512, 1>}, {pipeline_mode = #tpu.pipeline_mode<synchronous>, transform_indices = @transform_5, window_bounds = array<i64: 1, 512>}, {transform_indices = @transform_6, window_bounds = array<i64: 1, 1>}, {transform_indices = @transform_7, window_bounds = array<i64: 1, 1, 256>}]} {
    %c0 = arith.constant 0 : index
    %c0_0 = arith.constant 0 : index
    %c0_1 = arith.constant 0 : index
    %0 = vector.load %arg2[%c0, %c0_0, %c0_1] : memref<1x4x256xf32, #tpu.memory_space<vmem>>, vector<1x4x256xf32>
    %1 = vector.shape_cast %0 : vector<1x4x256xf32> to vector<4x256xf32>
    %2 = arith.truncf %1 : vector<4x256xf32> to vector<4x256xbf16>
    %c0_2 = arith.constant 0 : index
    %c0_3 = arith.constant 0 : index
    %3 = vector.load %arg3[%c0_2, %c0_3] : memref<512x4xbf16, #tpu.memory_space<vmem>>, vector<512x4xbf16>
    %cst = arith.constant dense<0.000000e+00> : vector<512x256xf32>
    %4 = tpu.matmul %3, %2, %cst {dimension_numbers = #tpu.dot_dimension_numbers<[1], [0], [0], [1], [0, 0, 1, 1], [], []>} : vector<512x4xbf16>, vector<4x256xbf16>, vector<512x256xf32> -> vector<512x256xf32>
    %5 = arith.truncf %4 : vector<512x256xf32> to vector<512x256xbf16>
    %c0_4 = arith.constant 0 : index
    %c0_5 = arith.constant 0 : index
    %6 = vector.load %arg4[%c0_4, %c0_5] : memref<512x1xbf16, #tpu.memory_space<vmem>>, vector<512x1xbf16>
    %7 = vector.broadcast %6 : vector<512x1xbf16> to vector<512x256xbf16>
    %8 = arith.addf %5, %7 : vector<512x256xbf16>
    %cst_6 = arith.constant 0.000000e+00 : bf16
    %9 = vector.broadcast %cst_6 : bf16 to vector<512x256xbf16>
    %10 = arith.maximumf %8, %9 : vector<512x256xbf16>
    %c0_7 = arith.constant 0 : index
    %c0_8 = arith.constant 0 : index
    %11 = vector.load %arg5[%c0_7, %c0_8] : memref<512x512xbf16, #tpu.memory_space<vmem>>, vector<512x512xbf16>
    %cst_9 = arith.constant dense<0.000000e+00> : vector<512x256xf32>
    %12 = tpu.matmul %11, %10, %cst_9 {dimension_numbers = #tpu.dot_dimension_numbers<[1], [0], [0], [1], [0, 0, 1, 1], [], []>} : vector<512x512xbf16>, vector<512x256xbf16>, vector<512x256xf32> -> vector<512x256xf32>
    %13 = arith.truncf %12 : vector<512x256xf32> to vector<512x256xbf16>
    %c0_10 = arith.constant 0 : index
    %c0_11 = arith.constant 0 : index
    %14 = vector.load %arg6[%c0_10, %c0_11] : memref<512x1xbf16, #tpu.memory_space<vmem>>, vector<512x1xbf16>
    %15 = vector.broadcast %14 : vector<512x1xbf16> to vector<512x256xbf16>
    %16 = arith.addf %13, %15 : vector<512x256xbf16>
    %cst_12 = arith.constant 0.000000e+00 : bf16
    %17 = vector.broadcast %cst_12 : bf16 to vector<512x256xbf16>
    %18 = arith.maximumf %16, %17 : vector<512x256xbf16>
    %c0_13 = arith.constant 0 : index
    %c0_14 = arith.constant 0 : index
    %19 = vector.load %arg7[%c0_13, %c0_14] : memref<1x512xbf16, #tpu.memory_space<vmem>>, vector<1x512xbf16>
    %cst_15 = arith.constant dense<0.000000e+00> : vector<1x256xf32>
    %20 = tpu.matmul %19, %18, %cst_15 {dimension_numbers = #tpu.dot_dimension_numbers<[1], [0], [0], [1], [0, 0, 1, 1], [], []>} : vector<1x512xbf16>, vector<512x256xbf16>, vector<1x256xf32> -> vector<1x256xf32>
    %c0_16 = arith.constant 0 : index
    %c0_17 = arith.constant 0 : index
    %21 = memref.load %arg8[%c0_16, %c0_17] : memref<1x1xf32, #tpu.memory_space<smem>>
    %22 = vector.broadcast %21 : f32 to vector<1x256xf32>
    %23 = arith.addf %20, %22 : vector<1x256xf32>
    %c0_18 = arith.constant 0 : index
    %c0_19 = arith.constant 0 : index
    %c0_20 = arith.constant 0 : index
    %24 = vector.load %arg9[%c0_18, %c0_19, %c0_20] : memref<1x1x256xf32, #tpu.memory_space<vmem>>, vector<1x1x256xf32>
    %25 = vector.shape_cast %24 : vector<1x1x256xf32> to vector<1x256xf32>
    %26 = vector.shape_cast %23 : vector<1x256xf32> to vector<1x1x256xf32>
    tpu.vector_store %arg9[%c0_18, %c0_19, %c0_20], %26 {strides = array<i32>} : memref<1x1x256xf32, #tpu.memory_space<vmem>>, vector<1x1x256xf32>,
    return
  }
  func.func @transform_0(%arg0: i32, %arg1: i32) -> (i32, i32, i32) {
    %c0_i32 = arith.constant 0 : i32
    %c0_i32_0 = arith.constant 0 : i32
    return %arg0, %c0_i32, %arg1 : i32, i32, i32
  }
  func.func @transform_1(%arg0: i32, %arg1: i32) -> (i32, i32) {
    %c0_i32 = arith.constant 0 : i32
    %c0_i32_0 = arith.constant 0 : i32
    %c0_i32_1 = arith.constant 0 : i32
    return %c0_i32, %c0_i32_0 : i32, i32
  }
  func.func @transform_2(%arg0: i32, %arg1: i32) -> (i32, i32) {
    %c0_i32 = arith.constant 0 : i32
    %c0_i32_0 = arith.constant 0 : i32
    %c0_i32_1 = arith.constant 0 : i32
    return %c0_i32, %c0_i32_0 : i32, i32
  }
  func.func @transform_3(%arg0: i32, %arg1: i32) -> (i32, i32) {
    %c0_i32 = arith.constant 0 : i32
    %c0_i32_0 = arith.constant 0 : i32
    %c0_i32_1 = arith.constant 0 : i32
    return %c0_i32, %c0_i32_0 : i32, i32
  }
  func.func @transform_4(%arg0: i32, %arg1: i32) -> (i32, i32) {
    %c0_i32 = arith.constant 0 : i32
    %c0_i32_0 = arith.constant 0 : i32
    %c0_i32_1 = arith.constant 0 : i32
    return %c0_i32, %c0_i32_0 : i32, i32
  }
  func.func @transform_5(%arg0: i32, %arg1: i32) -> (i32, i32) {
    %c0_i32 = arith.constant 0 : i32
    %c0_i32_0 = arith.constant 0 : i32
    %c0_i32_1 = arith.constant 0 : i32
    return %c0_i32, %c0_i32_0 : i32, i32
  }
  func.func @transform_6(%arg0: i32, %arg1: i32) -> (i32, i32) {
    %c0_i32 = arith.constant 0 : i32
    %c0_i32_0 = arith.constant 0 : i32
    %c0_i32_1 = arith.constant 0 : i32
    return %c0_i32, %c0_i32_0 : i32, i32
  }
  func.func @transform_7(%arg0: i32, %arg1: i32) -> (i32, i32, i32) {
    %c0_i32 = arith.constant 0 : i32
    %c0_i32_0 = arith.constant 0 : i32
    return %arg0, %c0_i32, %arg1 : i32, i32, i32
  }
}

</mosaic_0001>

<bundles_post_ra>
// kernel: tpu_custom_call.1
= control target key start
LH: loop header
LB: loop body
LE: loop exit
PB: predicated region body
PF: predicated region fallthrough
CT: control target
= control target key end

     0   :  { %s7972_s0 = inlined_call_operand.vmem [shape: f32[2,4,256], index: 0, kind: input, shape index: {}]   ;;  %s7973_s1 = inlined_call_operand.vmem [shape: bf16[512,4], index: 1, kind: input, shape index: {}]   ;;  %s7974_s2 = inlined_call_operand.vmem [shape: bf16[512,1], index: 2, kind: input, shape index: {}]   ;;  %s7975_s3 = inlined_call_operand.hbm [shape: bf16[512,512], index: 3, kind: input, shape index: {}]   ;;  %s7976_s4 = inlined_call_operand.vmem [shape: bf16[512,1], index: 4, kind: input, shape index: {}]   ;;  %s7977_s5 = inlined_call_operand.vmem [shape: bf16[1,512], index: 5, kind: input, shape index: {}]   ;;  %s7978_s6 = inlined_call_operand.<no memory space> [shape: f32[1,1], index: 6, kind: input, shape index: {}]   ;;  %s7979_s7 = inlined_call_operand.hbm [shape: f32[2,1,256], index: 7, kind: output, shape index: {}]  }
   0x1   :  { %12 = sst [smem:[#allocation2]] %s7978_s6 }
   0x2   :  { %13 = vsyncpa [#allocation4], 0 }
   0x3   :  { %14 = vsyncpa [#allocation5], 0 }
   0x4   :  { %16 = vsyncpa [#allocation5 + $0x1], 0  ;;  %s5893_s26 = smov 0   ;;  %s5895_s27 = smov 0  }
   0x5   :  { %s5897_s28 = smov 0   ;;  %s5899_s29 = smov 0  }
   0x6   :  { %s5901_s30 = smov 0   ;;  %s5903_s8 = smov 0  }
   0x7 LB: > { %s5160_s6 = sadd.s32 4294967295, %s5841_s8   ;;  %s5161_s9 = sadd.s32 4294967294, %s5841_s8   ;;  %s5841_s8 = sphi %s5903_s8, %s22_s8   ;;  %s5837_s30 = sphi %s5901_s30, %s8314_s30   ;;  %s5833_s29 = sphi %s5899_s29, %s8313_s29   ;;  %s5829_s28 = sphi %s5897_s28, %s8312_s28   ;;  %s5825_s27 = sphi %s5895_s27, %s8311_s27   ;;  %s5821_s26 = sphi %s5893_s26, %s8310_s26  }
   0x8   : > { %s34_s10 = sadd.s32 1, %s5837_s30  ;;  %s197_s11 = sadd.s32 1, %s5829_s28 }
   0x9   : > { %p36_p0 = scmp.ge.s32.totalorder %s34_s10, 2  ;;  %p207_p1 = scmp.ne.s32.totalorder %s5829_s28, %s5825_s27 }
   0xa   : > { %p208_p2 = scmp.eq.s32.totalorder %s5160_s6, 1  ;;  %p213_p3 = scmp.ne.s32.totalorder %s5825_s27, %s5821_s26 }
   0xb   : > { %s8316_s10 = smov (%p36_p0, %s34_s10), 0  ;;  %p214_p5 = scmp.eq.s32.totalorder %s5161_s9, 1 }
   0xc   : > { %p5933_p4 = por %p208_p2, %p207_p1  ;;  %s192_s13 = ssub.s32 %s5837_s30, %s8316_s10 }
   0xd   : > { %p5162_p6 = scmp.ge.s32.totalorder %s5841_s8, 1  ;;  %p195_p7 = scmp.eq.s32.totalorder %s192_s13, 0 }
   0xe   : > { %p5940_p8 = por %p214_p5, %p213_p3  ;;  %p221_p9 = scmp.lt.s32.totalorder %s5841_s8, 3 }
   0xf   : > { %s5946_s15 = scalar_select %p195_p7, %s5829_s28, %s197_s11  }
  0x10   : > { %p5948_p10 = pnand %p5162_p6, %p221_p9  ;;  %p5952_p11 = scmp.eq.s32.totalorder %s5160_s6, 0 }
  0x11   : > { %s5843_s18 = smov [#allocation3]  }
  0x12   : > { %p5443_p12 = pneg %p5948_p10  ;;  %s239_s19 = sshll.u32 %s5843_s18, 4  ;;  %s240_s19 = int_to_ptr.vmem [resolvable:$true] %s239_s19 }
  0x13   : > { %s5746_s20 = scalar_lea.vmem %s240_s19, 16384  ;;  %p5754_p5 = scmp.lt.s32.totalorder %s240_s19, %s240_s19 }
  0x14   : > { %p5444_p13 = pnand %p5952_p11, %p5443_p12  ;;  %p5747_p1 = scmp.ne.s32.totalorder %s240_s19, %s5746_s20 }
  0x15   : > { %p5755_p6 = scmp.lt.s32.totalorder %s5746_s20, %s5746_s20 }
  0x16   : > { %p5737_p0 = pneg %p5444_p13 }
  0x17   : > { %p5756_p7 = por %p5755_p6, %p5754_p5 }
  0x18   : > { %p5749_p2 = pnand %p5747_p1, %p5737_p0 }
  0x1a   : > { %p5750_p3 = pneg %p5749_p2 }
  0x1c   : > { %p5757_p9 = pnand %p5756_p7, %p5750_p3 }
  0x1e   : > { %5760 = shalt.err (!%p5757_p9)
}
  0x1f   : > { %s5844_s21 = smov 256   ;;  %s5845_s22 = smov 16  }
  0x20   : > { %5446 = dma.hbm_to_vmem [thread:$0]  (!%p5444_p13), %s7975_s3, 16384, %s240_s19, [#allocation4], %s5844_s21, %s5844_s21, %s5845_s22  }
  0x21   : > { %277 = sbr.rel (%p5948_p10) target bundleno = 1174 (0x496), region = 48 }
  0x26   : > { %5812 = dma.done.wait (%p5952_p11), [#allocation4], 16384  }
  0x27   : > { %5814 = vsyncadd (%p5952_p11), [#allocation4], 4294950912  ;;  %p314_p12 = scmp.lt.s32.totalorder %s5833_s29, 1  ;;  %v7981_v0 = vmov 0   ;;  %v1122_v1 = vld [vmem:[%s7974_s2 + $0xb8] sm:$0xf] }
  0x28   : > { %5509 = vset.pattern.permute.xlu1 %v7981_v0  ;;  %5508 = vset.pattern.permute.xlu0 %v7981_v0  ;;  %v1090_v2 = vld [vmem:[%s7974_s2 + $0x38] sm:$0xf]  ;;  %v1123_v3 = vld [vmem:[%s7974_s2 + $0xbc] sm:$0xf]  ;;  %vm652_vm0 = vcmask 1041408   ;;  %v5511_v12 = vld [vmem:[%s7973_s1] sm:$0xff]  }
  0x29   : > { %s315_s25 = scalar_select %p314_p12, %s5833_s29, 1  ;;  %691 = vmatprep.mubr.bf16.mxu0 %v7981_v0  ;;  %901 = vmatprep.mubr.bf16.mxu1 %v7981_v0  ;;  %v1091_v5 = vld [vmem:[%s7974_s2 + $0x3c] sm:$0xf]  ;;  %v1089_v10 = vld [vmem:[%s7974_s2 + $0x34] sm:$0xf]  ;;  %v5512_v13 = vld [vmem:[%s7973_s1 + $0xa8] sm:$0xff]  }
  0x2a   : > { %1694 = vperm.xlu1 %5509, %v1122_v1   ;;  %1310 = vperm.xlu0 %5508, %v1090_v2   ;;  %v1088_v11 = vld [vmem:[%s7974_s2 + $0x30] sm:$0xf]  ;;  %vm555_vm1 = vcmask 31744   ;;  %v1121_v14 = vld [vmem:[%s7974_s2 + $0xb4] sm:$0xf]  ;;  %v5513_v18 = vld [vmem:[%s7973_s1 + $0x8] sm:$0xff]  }
  0x2b   : > { %s5433_s6 = sshll.u32 %s315_s25, 3  ;;  %v1120_v15 = vld [vmem:[%s7974_s2 + $0xb0] sm:$0xf]  ;;  %v1087_v16 = vld [vmem:[%s7974_s2 + $0x2c] sm:$0xf]  ;;  %v5516_v25 = vld [vmem:[%s7973_s1 + $0xb8] sm:$0xff]  }
  0x2c   : > { %s321_s13 = scalar_lea.vmem %s7972_s0, %s5433_s6  ;;  %v1086_v17 = vld [vmem:[%s7974_s2 + $0x28] sm:$0xf]  ;;  %v5514_v19 = vld [vmem:[%s7973_s1 + $0xb0] sm:$0xff]   ;;  %v1119_v20 = vld [vmem:[%s7974_s2 + $0xac] sm:$0xf]  ;;  %s4919_s16 = sld [smem:[#allocation2]] }
  0x2d   : > { %v325_v4 = vld [vmem:[%s321_s13] sm:$0xff]  ;;  %v1118_v21 = vld [vmem:[%s7974_s2 + $0xa8] sm:$0xf]  ;;  %v5515_v24 = vld [vmem:[%s7973_s1 + $0x10] sm:$0xff]   ;;  %s310_s17 = sand.u32 1, %s5825_s27   ;;  %s5434_s19 = sshll.u32 %s5833_s29, 5 }
  0x2e   : > { %v327_v6 = vcombine.high %v325_v4, %v325_v4  ;;  %v329_v7 = vpack.c.bf16 %v325_v4, %v325_v4  ;;  %1706 = vperm.xlu1 %5509, %v1123_v3   ;;  %1322 = vperm.xlu0 %5508, %v1091_v5   ;;  %v1085_v22 = vld [vmem:[%s7974_s2 + $0x24] sm:$0xf]  ;;  %v1084_v23 = vld [vmem:[%s7974_s2 + $0x20] sm:$0xf]  ;;  %v1083_v28 = vld [vmem:[%s7974_s2 + $0x1c] sm:$0xf]  ;;  %s5070_s24 = scalar_lea.hbm %s7979_s7, %s5434_s19 }
  0x2f   : > { %v1117_v26 = vld [vmem:[%s7974_s2 + $0xa4] sm:$0xf]  ;;  %v1116_v27 = vld [vmem:[%s7974_s2 + $0xa0] sm:$0xf]  ;;  %v1082_v29 = vld [vmem:[%s7974_s2 + $0x18] sm:$0xf] }
  0x30   : > { %v330_v8 = vpack.c.bf16 %v327_v6, %v327_v6  ;;  %v654_v9 = vsel %vm652_vm0, %v329_v7, 0  ;;  %v5517_v30 = vld [vmem:[%s7973_s1 + $0x18] sm:$0xff]   ;;  %v5518_v31 = vld [vmem:[%s7973_s1 + $0xc0] sm:$0xff]   ;;  %v1081_v34 = vld [vmem:[%s7974_s2 + $0x14] sm:$0xf]  ;;  %s5167_s18 = sshll.u32 %s310_s17, 1 }
  0x31   : > { %v1115_v32 = vld [vmem:[%s7974_s2 + $0x9c] sm:$0xf]  ;;  %v1114_v33 = vld [vmem:[%s7974_s2 + $0x98] sm:$0xf]  ;;  %v1080_v35 = vld [vmem:[%s7974_s2 + $0x10] sm:$0xf] }
  0x32   : > { %5202 = vmatprep.subr.msk.bf16.mxu0 %vm652_vm0, %v330_v8  ;;  %5435 = vmatprep.subr.msk.bf16.mxu1 %vm652_vm0, %v330_v8  ;;  %v5519_v36 = vld [vmem:[%s7973_s1 + $0x20] sm:$0xff]   ;;  %v5520_v37 = vld [vmem:[%s7973_s1 + $0xc8] sm:$0xff]   ;;  %v1113_v38 = vld [vmem:[%s7974_s2 + $0x94] sm:$0xf]  ;;  %s312_s20 = scalar_lea.vmem [#allocation6], %s5167_s18  ;;  %s5056_s25 = scalar_lea.sflag [#allocation5], %s310_s17 }
  0x33   : > { %674 = vmatpush1.bf16.msra.mxu0 %v654_v9  ;;  %5436 = vmatpush1.bf16.msra.mxu1 %v654_v9  ;;  %v1112_v39 = vld [vmem:[%s7974_s2 + $0x90] sm:$0xf]  ;;  %v1079_v40 = vld [vmem:[%s7974_s2 + $0xc] sm:$0xf]  ;;  %v1078_v41 = vld [vmem:[%s7974_s2 + $0x8] sm:$0xf] }
  0x34   : > { %1298 = vperm.xlu1 %5509, %v1089_v10   ;;  %1286 = vperm.xlu0 %5508, %v1088_v11   ;;  %v5521_v42 = vld [vmem:[%s7973_s1 + $0x28] sm:$0xff]   ;;  %v5522_v43 = vld [vmem:[%s7973_s1 + $0xd0] sm:$0xff]   ;;  %v1077_v46 = vld [vmem:[%s7974_s2 + $0x4] sm:$0xf]  ;;  %s5072_s21 = sshll.u32 %s312_s20, 4  ;;  %s5849_s29 = smov [#allocation6]   ;;  %s5073_s21 = int_to_ptr.vmem [resolvable:$true] %s5072_s21 }
  0x35   : > { %v1111_v44 = vld [vmem:[%s7974_s2 + $0x8c] sm:$0xf]  ;;  %v1110_v45 = vld [vmem:[%s7974_s2 + $0x88] sm:$0xf]  ;;  %v1076_v47 = vld [vmem:[%s7974_s2] sm:$0xf] }
  0x36   : > { %5203 = vmatmul.mubr.msk.bf16.vlgmr.msra.gmra.mxu0 %vm555_vm1, %v5511_v12  ;;  %5224 = vmatmul.mubr.msk.bf16.vlgmr.msra.gmra.mxu1 %vm555_vm1, %v5512_v13  ;;  %v5523_v48 = vld [vmem:[%s7973_s1 + $0x30] sm:$0xff]   ;;  %v5524_v49 = vld [vmem:[%s7973_s1 + $0xd8] sm:$0xff]   ;;  %v1109_v50 = vld [vmem:[%s7974_s2 + $0x84] sm:$0xf]  ;;  %s5761_s6 = scalar_lea.vmem %s5073_s21, 32  ;;  %s5765_s9 = sshll.u32 %s5849_s29, 4  ;;  %s5766_s9 = int_to_ptr.vmem [resolvable:$false] %s5765_s9 }
  0x37   : > { %701 = vmatprep.mubr.bf16.mxu0 %v7981_v0  ;;  %911 = vmatprep.mubr.bf16.mxu1 %v7981_v0  ;;  %v1108_v51 = vld [vmem:[%s7974_s2 + $0x80] sm:$0xf]  ;;  %v1107_v52 = vld [vmem:[%s7974_s2 + $0x7c] sm:$0xf]  ;;  %v1106_v53 = vld [vmem:[%s7974_s2 + $0x78] sm:$0xf]  ;;  %p5762_p10 = scmp.ne.s32.totalorder %s5073_s21, %s5761_s6  ;;  %p5768_p0 = scmp.lt.s32.totalorder %s5073_s21, %s5766_s9 }
  0x38   : > { %1682 = vperm.xlu1 %5509, %v1121_v14   ;;  %1670 = vperm.xlu0 %5508, %v1120_v15   ;;  %v5525_v54 = vld [vmem:[%s7973_s1 + $0x38] sm:$0xff]   ;;  %v5526_v55 = vld [vmem:[%s7973_s1 + $0xe0] sm:$0xff]   ;;  %v1105_v58 = vld [vmem:[%s7974_s2 + $0x74] sm:$0xf]  ;;  %s5767_s11 = scalar_lea.vmem %s5766_s9, 64 }
  0x39   : > { %v1139_v56 = vld [vmem:[%s7974_s2 + $0xfc] sm:$0xf]  ;;  %v1138_v57 = vld [vmem:[%s7974_s2 + $0xf8] sm:$0xf]  ;;  %v1104_v59 = vld [vmem:[%s7974_s2 + $0x70] sm:$0xf]  ;;  %p5763_p11 = pnand %p5762_p10, %p5933_p4  ;;  %p5769_p1 = scmp.lt.s32.totalorder %s5767_s11, %s5761_s6 }
  0x3a   : > { %v5527_v60 = vld [vmem:[%s7973_s1 + $0x40] sm:$0xff]   ;;  %v5528_v61 = vld [vmem:[%s7973_s1 + $0xe8] sm:$0xff]   ;;  %v1137_v62 = vld [vmem:[%s7974_s2 + $0xf4] sm:$0xf] }
  0x3b   : > { %v1136_v63 = vld [vmem:[%s7974_s2 + $0xf0] sm:$0xf]  ;;  %v1103_v1 = vld [vmem:[%s7974_s2 + $0x6c] sm:$0xf]  ;;  %v1102_v2 = vld [vmem:[%s7974_s2 + $0x68] sm:$0xf]  ;;  %p5764_p13 = pneg %p5763_p11  ;;  %p5770_p2 = por %p5769_p1, %p5768_p0 }
  0x3c   : > { %1274 = vperm.xlu1 %5509, %v1087_v16   ;;  %1262 = vperm.xlu0 %5508, %v1086_v17   ;;  %v5529_v3 = vld [vmem:[%s7973_s1 + $0x48] sm:$0xff]   ;;  %v5530_v4 = vld [vmem:[%s7973_s1 + $0xf0] sm:$0xff]   ;;  %v1101_v7 = vld [vmem:[%s7974_s2 + $0x64] sm:$0xf] }
  0x3d   : > { %v1135_v5 = vld [vmem:[%s7974_s2 + $0xec] sm:$0xf]  ;;  %v1134_v6 = vld [vmem:[%s7974_s2 + $0xe8] sm:$0xf]  ;;  %v1100_v8 = vld [vmem:[%s7974_s2 + $0x60] sm:$0xf]  ;;  %p5771_p3 = pnand %p5770_p2, %p5764_p13 }
  0x3e   : > { %5204 = vmatmul.mubr.msk.bf16.gmra.mxu0 %vm555_vm1, %v5513_v18  ;;  %5225 = vmatmul.mubr.msk.bf16.gmra.mxu1 %vm555_vm1, %v5514_v19  ;;  %v5531_v9 = vld [vmem:[%s7973_s1 + $0x50] sm:$0xff]   ;;  %v5532_v10 = vld [vmem:[%s7973_s1 + $0xf8] sm:$0xff]   ;;  %v1133_v11 = vld [vmem:[%s7974_s2 + $0xe4] sm:$0xf] }
  0x3f   : > { %711 = vmatprep.mubr.bf16.mxu0 %v7981_v0  ;;  %921 = vmatprep.mubr.bf16.mxu1 %v7981_v0  ;;  %v1132_v12 = vld [vmem:[%s7974_s2 + $0xe0] sm:$0xf]  ;;  %v1099_v13 = vld [vmem:[%s7974_s2 + $0x5c] sm:$0xf]  ;;  %v1098_v14 = vld [vmem:[%s7974_s2 + $0x58] sm:$0xf] }
  0x40   : > { %1658 = vperm.xlu1 %5509, %v1119_v20   ;;  %1646 = vperm.xlu0 %5508, %v1118_v21   ;;  %v5533_v15 = vld [vmem:[%s7973_s1 + $0x58] sm:$0xff]   ;;  %v1097_v18 = vld [vmem:[%s7974_s2 + $0x54] sm:$0xf]  ;;  %v1096_v19 = vld [vmem:[%s7974_s2 + $0x50] sm:$0xf] }
  0x41   : > { %v1131_v16 = vld [vmem:[%s7974_s2 + $0xdc] sm:$0xf]  ;;  %v1130_v17 = vld [vmem:[%s7974_s2 + $0xd8] sm:$0xf]  ;;  %v5534_v20 = vld [vmem:[%s7973_s1 + $0x60] sm:$0xff]  }
  0x42   : > { %v1129_v21 = vld [vmem:[%s7974_s2 + $0xd4] sm:$0xf] }
  0x44   : > { %1250 = vperm.xlu1 %5509, %v1085_v22   ;;  %1238 = vperm.xlu0 %5508, %v1084_v23   ;;  %v1128_v22 = vld [vmem:[%s7974_s2 + $0xd0] sm:$0xf]  ;;  %v1095_v23 = vld [vmem:[%s7974_s2 + $0x4c] sm:$0xf] }
  0x46   : > { %5205 = vmatmul.mubr.msk.bf16.gmra.mxu0 %vm555_vm1, %v5515_v24  ;;  %5226 = vmatmul.mubr.msk.bf16.gmra.mxu1 %vm555_vm1, %v5516_v25  ;;  %v1094_v24 = vld [vmem:[%s7974_s2 + $0x48] sm:$0xf] }
  0x47   : > { %721 = vmatprep.mubr.bf16.mxu0 %v7981_v0  ;;  %931 = vmatprep.mubr.bf16.mxu1 %v7981_v0  ;;  %v5535_v25 = vld [vmem:[%s7973_s1 + $0x68] sm:$0xff]  }
  0x48   : > { %1634 = vperm.xlu1 %5509, %v1117_v26   ;;  %1622 = vperm.xlu0 %5508, %v1116_v27   ;;  %v1127_v26 = vld [vmem:[%s7974_s2 + $0xcc] sm:$0xf]  ;;  %v1126_v27 = vld [vmem:[%s7974_s2 + $0xc8] sm:$0xf] }
  0x4c   : > { %1226 = vperm.xlu1 %5509, %v1083_v28   ;;  %1214 = vperm.xlu0 %5508, %v1082_v29   ;;  %v1093_v28 = vld [vmem:[%s7974_s2 + $0x44] sm:$0xf]  ;;  %v1092_v29 = vld [vmem:[%s7974_s2 + $0x40] sm:$0xf] }
  0x4e   : > { %5206 = vmatmul.mubr.msk.bf16.gmra.mxu0 %vm555_vm1, %v5517_v30  ;;  %5227 = vmatmul.mubr.msk.bf16.gmra.mxu1 %vm555_vm1, %v5518_v31  ;;  %v5536_v30 = vld [vmem:[%s7973_s1 + $0x70] sm:$0xff]   ;;  %v1125_v31 = vld [vmem:[%s7974_s2 + $0xc4] sm:$0xf] }
  0x4f   : > { %731 = vmatprep.mubr.bf16.mxu0 %v7981_v0  ;;  %941 = vmatprep.mubr.bf16.mxu1 %v7981_v0 }
  0x50   : > { %1610 = vperm.xlu1 %5509, %v1115_v32   ;;  %1598 = vperm.xlu0 %5508, %v1114_v33   ;;  %v1124_v32 = vld [vmem:[%s7974_s2 + $0xc0] sm:$0xf] }
  0x54   : > { %1202 = vperm.xlu1 %5509, %v1081_v34   ;;  %1190 = vperm.xlu0 %5508, %v1080_v35   ;;  %v3781_v35 = vld [vmem:[%s7976_s4 + $0x3c] sm:$0xf] }
  0x56   : > { %5207 = vmatmul.mubr.msk.bf16.gmra.mxu0 %vm555_vm1, %v5519_v36  ;;  %5228 = vmatmul.mubr.msk.bf16.gmra.mxu1 %vm555_vm1, %v5520_v37  ;;  %v3780_v36 = vld [vmem:[%s7976_s4 + $0x38] sm:$0xf] }
  0x57   : > { %741 = vmatprep.mubr.bf16.mxu0 %v7981_v0  ;;  %951 = vmatprep.mubr.bf16.mxu1 %v7981_v0  ;;  %v5537_v37 = vld [vmem:[%s7973_s1 + $0x78] sm:$0xff]  }
  0x58   : > { %1586 = vperm.xlu1 %5509, %v1113_v38   ;;  %1574 = vperm.xlu0 %5508, %v1112_v39  }
  0x5c   : > { %1178 = vperm.xlu1 %5509, %v1079_v40   ;;  %1166 = vperm.xlu0 %5508, %v1078_v41   ;;  %v3779_v40 = vld [vmem:[%s7976_s4 + $0x34] sm:$0xf]  ;;  %v3778_v41 = vld [vmem:[%s7976_s4 + $0x30] sm:$0xf] }
  0x5e   : > { %5208 = vmatmul.mubr.msk.bf16.gmra.mxu0 %vm555_vm1, %v5521_v42  ;;  %5229 = vmatmul.mubr.msk.bf16.gmra.mxu1 %vm555_vm1, %v5522_v43 }
  0x5f   : > { %751 = vmatprep.mubr.bf16.mxu0 %v7981_v0  ;;  %961 = vmatprep.mubr.bf16.mxu1 %v7981_v0 }
  0x60   : > { %1562 = vperm.xlu1 %5509, %v1111_v44   ;;  %1550 = vperm.xlu0 %5508, %v1110_v45   ;;  %v3777_v44 = vld [vmem:[%s7976_s4 + $0x2c] sm:$0xf]  ;;  %v3776_v45 = vld [vmem:[%s7976_s4 + $0x28] sm:$0xf] }
  0x64   : > { %1154 = vperm.xlu1 %5509, %v1077_v46   ;;  %1142 = vperm.xlu0 %5508, %v1076_v47   ;;  %v5538_v46 = vld [vmem:[%s7973_s1 + $0x80] sm:$0xff]  }
  0x66   : > { %5209 = vmatmul.mubr.msk.bf16.gmra.mxu0 %vm555_vm1, %v5523_v48  ;;  %5230 = vmatmul.mubr.msk.bf16.gmra.mxu1 %vm555_vm1, %v5524_v49  ;;  %v3775_v49 = vld [vmem:[%s7976_s4 + $0x24] sm:$0xf] }
  0x67   : > { %761 = vmatprep.mubr.bf16.mxu0 %v7981_v0  ;;  %971 = vmatprep.mubr.bf16.mxu1 %v7981_v0 }
  0x68   : > { %1538 = vperm.xlu1 %5509, %v1109_v50   ;;  %1526 = vperm.xlu0 %5508, %v1108_v51   ;;  %v3774_v50 = vld [vmem:[%s7976_s4 + $0x20] sm:$0xf] }
  0x6c   : > { %1514 = vperm.xlu1 %5509, %v1107_v52   ;;  %1502 = vperm.xlu0 %5508, %v1106_v53   ;;  %v3773_v53 = vld [vmem:[%s7976_s4 + $0x1c] sm:$0xf] }
  0x6e   : > { %5210 = vmatmul.mubr.msk.bf16.gmra.mxu0 %vm555_vm1, %v5525_v54  ;;  %5231 = vmatmul.mubr.msk.bf16.gmra.mxu1 %vm555_vm1, %v5526_v55  ;;  %v3772_v54 = vld [vmem:[%s7976_s4 + $0x18] sm:$0xf]  ;;  %v5539_v55 = vld [vmem:[%s7973_s1 + $0x88] sm:$0xff]  }
  0x6f   : > { %771 = vmatprep.mubr.bf16.mxu0 %v7981_v0  ;;  %981 = vmatprep.mubr.bf16.mxu1 %v7981_v0 }
  0x70   : > { %1898 = vperm.xlu1 %5509, %v1139_v56   ;;  %1886 = vperm.xlu0 %5508, %v1138_v57  }
  0x74   : > { %1490 = vperm.xlu1 %5509, %v1105_v58   ;;  %1478 = vperm.xlu0 %5508, %v1104_v59   ;;  %v3771_v58 = vld [vmem:[%s7976_s4 + $0x14] sm:$0xf]  ;;  %v3770_v59 = vld [vmem:[%s7976_s4 + $0x10] sm:$0xf] }
  0x76   : > { %5211 = vmatmul.mubr.msk.bf16.gmra.mxu0 %vm555_vm1, %v5527_v60  ;;  %5232 = vmatmul.mubr.msk.bf16.gmra.mxu1 %vm555_vm1, %v5528_v61 }
  0x77   : > { %781 = vmatprep.mubr.bf16.mxu0 %v7981_v0  ;;  %991 = vmatprep.mubr.bf16.mxu1 %v7981_v0 }
  0x78   : > { %1874 = vperm.xlu1 %5509, %v1137_v62   ;;  %1862 = vperm.xlu0 %5508, %v1136_v63   ;;  %v3769_v62 = vld [vmem:[%s7976_s4 + $0xc] sm:$0xf]  ;;  %v3768_v63 = vld [vmem:[%s7976_s4 + $0x8] sm:$0xf] }
  0x7c   : > { %1466 = vperm.xlu1 %5509, %v1103_v1   ;;  %1454 = vperm.xlu0 %5508, %v1102_v2   ;;  %v5540_v1 = vld [vmem:[%s7973_s1 + $0x90] sm:$0xff]  }
  0x7e   : > { %5212 = vmatmul.mubr.msk.bf16.gmra.mxu0 %vm555_vm1, %v5529_v3  ;;  %5233 = vmatmul.mubr.msk.bf16.gmra.mxu1 %vm555_vm1, %v5530_v4  ;;  %v3767_v4 = vld [vmem:[%s7976_s4 + $0x4] sm:$0xf] }
  0x7f   : > { %791 = vmatprep.mubr.bf16.mxu0 %v7981_v0  ;;  %1001 = vmatprep.mubr.bf16.mxu1 %v7981_v0 }
  0x80   : > { %1850 = vperm.xlu1 %5509, %v1135_v5   ;;  %1838 = vperm.xlu0 %5508, %v1134_v6   ;;  %v3766_v5 = vld [vmem:[%s7976_s4] sm:$0xf] }
  0x84   : > { %1442 = vperm.xlu1 %5509, %v1101_v7   ;;  %1430 = vperm.xlu0 %5508, %v1100_v8   ;;  %v3797_v8 = vld [vmem:[%s7976_s4 + $0x7c] sm:$0xf] }
  0x86   : > { %5213 = vmatmul.mubr.msk.bf16.gmra.mxu0 %vm555_vm1, %v5531_v9  ;;  %5234 = vmatmul.mubr.msk.bf16.gmra.mxu1 %vm555_vm1, %v5532_v10  ;;  %v3796_v9 = vld [vmem:[%s7976_s4 + $0x78] sm:$0xf] }
  0x87   : > { %801 = vmatprep.mubr.bf16.mxu0 %v7981_v0  ;;  %v5541_v10 = vld [vmem:[%s7973_s1 + $0x98] sm:$0xff]  }
  0x88   : > { %1826 = vperm.xlu1 %5509, %v1133_v11   ;;  %1814 = vperm.xlu0 %5508, %v1132_v12  }
  0x8c   : > { %1418 = vperm.xlu1 %5509, %v1099_v13   ;;  %1406 = vperm.xlu0 %5508, %v1098_v14   ;;  %v3795_v13 = vld [vmem:[%s7976_s4 + $0x74] sm:$0xf]  ;;  %v3794_v14 = vld [vmem:[%s7976_s4 + $0x70] sm:$0xf] }
  0x8e   : > { %5214 = vmatmul.mubr.msk.bf16.gmra.mxu0 %vm555_vm1, %v5533_v15 }
  0x8f   : > { %811 = vmatprep.mubr.bf16.mxu0 %v7981_v0 }
  0x90   : > { %1802 = vperm.xlu1 %5509, %v1131_v16   ;;  %1790 = vperm.xlu0 %5508, %v1130_v17   ;;  %v3793_v17 = vld [vmem:[%s7976_s4 + $0x6c] sm:$0xf] }
  0x94   : > { %1394 = vperm.xlu1 %5509, %v1097_v18   ;;  %1382 = vperm.xlu0 %5508, %v1096_v19   ;;  %v3792_v18 = vld [vmem:[%s7976_s4 + $0x68] sm:$0xf]  ;;  %v5542_v19 = vld [vmem:[%s7973_s1 + $0xa0] sm:$0xff]  }
  0x96   : > { %5215 = vmatmul.mubr.msk.bf16.gmra.mxu0 %vm555_vm1, %v5534_v20 }
  0x97   : > { %821 = vmatprep.mubr.bf16.mxu0 %v7981_v0 }
  0x98   : > { %1778 = vperm.xlu1 %5509, %v1129_v21   ;;  %1766 = vperm.xlu0 %5508, %v1128_v22   ;;  %v3791_v22 = vld [vmem:[%s7976_s4 + $0x64] sm:$0xf] }
  0x9c   : > { %1370 = vperm.xlu1 %5509, %v1095_v23   ;;  %1358 = vperm.xlu0 %5508, %v1094_v24   ;;  %v3790_v23 = vld [vmem:[%s7976_s4 + $0x60] sm:$0xf] }
  0x9e   : > { %5216 = vmatmul.mubr.msk.bf16.gmra.mxu0 %vm555_vm1, %v5535_v25 }
  0x9f   : > { %831 = vmatprep.mubr.bf16.mxu0 %v7981_v0 }
  0xa0   : > { %1754 = vperm.xlu1 %5509, %v1127_v26   ;;  %1742 = vperm.xlu0 %5508, %v1126_v27   ;;  %v3789_v26 = vld [vmem:[%s7976_s4 + $0x5c] sm:$0xf]  ;;  %v3788_v27 = vld [vmem:[%s7976_s4 + $0x58] sm:$0xf] }
  0xa4   : > { %1346 = vperm.xlu1 %5509, %v1093_v28   ;;  %1334 = vperm.xlu0 %5508, %v1092_v29   ;;  %v5847_v28 = vmov 839922192  }
  0xa5   : > { %v6299_v33 = vpop.permute.xlu1 %1694  ;;  %v6301_v34 = vpop.permute.xlu0 %1310  ;;  %v1146_v29 = vunpack.c.l.s4 %v5847_v28 }
  0xa6   : > { %5217 = vmatmul.mubr.msk.bf16.gmra.mxu0 %vm555_vm1, %v5536_v30  ;;  %v7980_v30 = vlaneseq }
  0xa7   : > { %841 = vmatprep.mubr.bf16.mxu0 %v7981_v0 }
  0xa8   : > { %1730 = vperm.xlu1 %5509, %v1125_v31   ;;  %1718 = vperm.xlu0 %5508, %v1124_v32  }
  0xa9   : > { %v6312_v38 = vpop.permute.xlu1 %1706  ;;  %v6314_v39 = vpop.permute.xlu0 %1322 }
  0xac   : > { %4012 = vperm.xlu1 %5509, %v3781_v35   ;;  %4000 = vperm.xlu0 %5508, %v3780_v36   ;;  %v3787_v35 = vld [vmem:[%s7976_s4 + $0x54] sm:$0xf]  ;;  %v3786_v36 = vld [vmem:[%s7976_s4 + $0x50] sm:$0xf] }
  0xae   : > { %5218 = vmatmul.mubr.msk.bf16.gmra.mxu0 %vm555_vm1, %v5537_v37  ;;  %v1147_v37 = vunpack.c.0.s8 %v1146_v29 }
  0xaf   : > { %851 = vmatprep.mubr.bf16.mxu0 %v7981_v0  ;;  %v6324_v42 = vpop.permute.xlu1 %1298  ;;  %v6326_v43 = vpop.permute.xlu0 %1286 }
  0xb0   : > { %3988 = vperm.xlu1 %5509, %v3779_v40   ;;  %3976 = vperm.xlu0 %5508, %v3778_v41   ;;  %v6469_v40 = vshrl.u32 %v7980_v30, 7  ;;  %v3801_v30 = vld [vmem:[%s7976_s4 + $0x8c] sm:$0xf] }
  0xb2   : > { %8045 = vst [vmem:[#allocation17_spill] sm:$0xff] %v6469_v40 }
  0xb3   : > { %v6337_v47 = vpop.permute.xlu1 %1682  ;;  %v6339_v48 = vpop.permute.xlu0 %1670 }
  0xb4   : > { %3964 = vperm.xlu1 %5509, %v3777_v44   ;;  %3952 = vperm.xlu0 %5508, %v3776_v45   ;;  %v3785_v45 = vld [vmem:[%s7976_s4 + $0x4c] sm:$0xf] }
  0xb6   : > { %5219 = vmatmul.mubr.msk.bf16.gmra.mxu0 %vm555_vm1, %v5538_v46  ;;  %v3784_v46 = vld [vmem:[%s7976_s4 + $0x48] sm:$0xf] }
  0xb7   : > { %861 = vmatprep.mubr.bf16.mxu0 %v7981_v0  ;;  %v6349_v51 = vpop.permute.xlu1 %1274  ;;  %v6351_v52 = vpop.permute.xlu0 %1262 }
  0xb8   : > { %3940 = vperm.xlu1 %5509, %v3775_v49   ;;  %3928 = vperm.xlu0 %5508, %v3774_v50   ;;  %v6482_v49 = vsub.s32 %v1147_v37, %v6469_v40  ;;  %v3807_v37 = vld [vmem:[%s7976_s4 + $0xa4] sm:$0xf] }
  0xbb   : > { %v6362_v56 = vpop.permute.xlu1 %1658  ;;  %v6364_v57 = vpop.permute.xlu0 %1646 }
  0xbc   : > { %3916 = vperm.xlu1 %5509, %v3773_v53   ;;  %3904 = vperm.xlu0 %5508, %v3772_v54  }
  0xbe   : > { %5220 = vmatmul.mubr.msk.bf16.gmra.mxu0 %vm555_vm1, %v5539_v55 }
  0xbf   : > { %871 = vmatprep.mubr.bf16.mxu0 %v7981_v0  ;;  %v6374_v60 = vpop.permute.xlu1 %1250  ;;  %v6376_v61 = vpop.permute.xlu0 %1238 }
  0xc0   : > { %3892 = vperm.xlu1 %5509, %v3771_v58   ;;  %3880 = vperm.xlu0 %5508, %v3770_v59   ;;  %v3783_v58 = vld [vmem:[%s7976_s4 + $0x44] sm:$0xf]  ;;  %v3782_v59 = vld [vmem:[%s7976_s4 + $0x40] sm:$0xf] }
  0xc3   : > { %v6387_v2 = vpop.permute.xlu1 %1634  ;;  %v6389_v3 = vpop.permute.xlu0 %1622 }
  0xc4   : > { %8037 = vst [vmem:[#allocation9_spill] sm:$0xff] %v6387_v2  ;;  %8038 = vst [vmem:[#allocation10_spill] sm:$0xff] %v6389_v3  ;;  %3868 = vperm.xlu1 %5509, %v3769_v62   ;;  %3856 = vperm.xlu0 %5508, %v3768_v63  }
  0xc6   : > { %5221 = vmatmul.mubr.msk.bf16.gmra.mxu0 %vm555_vm1, %v5540_v1 }
  0xc7   : > { %881 = vmatprep.mubr.bf16.mxu0 %v7981_v0  ;;  %v6399_v6 = vpop.permute.xlu1 %1226  ;;  %v6401_v7 = vpop.permute.xlu0 %1214 }
  0xc8   : > { %3844 = vperm.xlu1 %5509, %v3767_v4   ;;  %3832 = vperm.xlu0 %5508, %v3766_v5   ;;  %v3813_v4 = vld [vmem:[%s7976_s4 + $0xbc] sm:$0xf]  ;;  %v3812_v5 = vld [vmem:[%s7976_s4 + $0xb8] sm:$0xf] }
  0xcb   : > { %v6412_v11 = vpop.permute.xlu1 %1610  ;;  %v6414_v12 = vpop.permute.xlu0 %1598 }
  0xcc   : > { %8039 = vst [vmem:[#allocation11_spill] sm:$0xff] %v6412_v11  ;;  %8040 = vst [vmem:[#allocation12_spill] sm:$0xff] %v6414_v12  ;;  %4204 = vperm.xlu1 %5509, %v3797_v8   ;;  %4192 = vperm.xlu0 %5508, %v3796_v9  }
  0xce   : > { %5222 = vmatmul.mubr.msk.bf16.gmra.mxu0 %vm555_vm1, %v5541_v10 }
  0xcf   : > { %891 = vmatprep.mubr.bf16.mxu0 %v7981_v0  ;;  %v6424_v15 = vpop.permute.xlu1 %1202  ;;  %v6426_v16 = vpop.permute.xlu0 %1190 }
  0xd0   : > { %4180 = vperm.xlu1 %5509, %v3795_v13   ;;  %4168 = vperm.xlu0 %5508, %v3794_v14   ;;  %v3811_v14 = vld [vmem:[%s7976_s4 + $0xb4] sm:$0xf] }
  0xd3   : > { %v6437_v20 = vpop.permute.xlu1 %1586  ;;  %v6439_v21 = vpop.permute.xlu0 %1574 }
  0xd4   : > { %8041 = vst [vmem:[#allocation13_spill] sm:$0xff] %v6437_v20  ;;  %8042 = vst [vmem:[#allocation14_spill] sm:$0xff] %v6439_v21  ;;  %4156 = vperm.xlu1 %5509, %v3793_v17   ;;  %4144 = vperm.xlu0 %5508, %v3792_v18   ;;  %v3810_v17 = vld [vmem:[%s7976_s4 + $0xb0] sm:$0xf] }
  0xd6   : > { %5223 = vmatmul.mubr.msk.bf16.gmra.mxu0 %vm555_vm1, %v5542_v19 }
  0xd7   : > { %v6448_v24 = vpop.permute.xlu1 %1178  ;;  %v6450_v25 = vpop.permute.xlu0 %1166 }
  0xd8   : > { %4132 = vperm.xlu1 %5509, %v3791_v22   ;;  %4120 = vperm.xlu0 %5508, %v3790_v23   ;;  %v3809_v23 = vld [vmem:[%s7976_s4 + $0xac] sm:$0xf] }
  0xdb   : > { %v6458_v31 = vpop.permute.xlu1 %1562  ;;  %v6460_v32 = vpop.permute.xlu0 %1550 }
  0xdc   : > { %8043 = vst [vmem:[#allocation15_spill] sm:$0xff] %v6458_v31  ;;  %8044 = vst [vmem:[#allocation16_spill] sm:$0xff] %v6460_v32  ;;  %4108 = vperm.xlu1 %5509, %v3789_v26   ;;  %4096 = vperm.xlu0 %5508, %v3788_v27   ;;  %v3808_v26 = vld [vmem:[%s7976_s4 + $0xa8] sm:$0xf] }
  0xdf   : > { %v6471_v41 = vpop.permute.xlu1 %1154  ;;  %v6473_v44 = vpop.permute.xlu0 %1142 }
  0xe0   : > { %4084 = vperm.xlu1 %5509, %v3787_v35   ;;  %4072 = vperm.xlu0 %5508, %v3786_v36  }
  0xe3   : > { %v1539_v50 = vpop.permute.xlu1 %1538  ;;  %v1527_v53 = vpop.permute.xlu0 %1526 }
  0xe4   : > { %v1547_v54 = vrot.slane %v1539_v50, %v6482_v49  ;;  %v1535_v55 = vrot.slane %v1527_v53, %v6482_v49  ;;  %4060 = vperm.xlu1 %5509, %v3785_v45   ;;  %4048 = vperm.xlu0 %5508, %v3784_v46   ;;  %v3806_v45 = vld [vmem:[%s7976_s4 + $0xa0] sm:$0xf] }
  0xe6   : > { %v6492_v62 = vcombine.low %v1535_v55, %v1547_v54 }
  0xe7   : > { %v6494_v63 = vpop.permute.xlu1 %1514  ;;  %v6496_v1 = vpop.permute.xlu0 %1502 }
  0xe8   : > { %8046 = vst [vmem:[#allocation18_spill] sm:$0xff] %v6492_v62  ;;  %8047 = vst [vmem:[#allocation19_spill] sm:$0xff] %v6496_v1  ;;  %4036 = vperm.xlu1 %5509, %v3783_v58   ;;  %4024 = vperm.xlu0 %5508, %v3782_v59  }
  0xeb   : > { %v1899_v8 = vpop.permute.xlu1 %1898  ;;  %v1887_v9 = vpop.permute.xlu0 %1886 }
  0xec   : > { %v1907_v10 = vrot.slane %v1899_v8, %v6482_v49  ;;  %v1895_v13 = vrot.slane %v1887_v9, %v6482_v49  ;;  %4396 = vperm.xlu1 %5509, %v3813_v4   ;;  %4384 = vperm.xlu0 %5508, %v3812_v5   ;;  %v3805_v4 = vld [vmem:[%s7976_s4 + $0x9c] sm:$0xf]  ;;  %v3804_v5 = vld [vmem:[%s7976_s4 + $0x98] sm:$0xf] }
  0xee   : > { %v6512_v18 = vcombine.low %v1895_v13, %v1907_v10 }
  0xef   : > { %v6514_v19 = vpop.permute.xlu1 %1490  ;;  %v6516_v22 = vpop.permute.xlu0 %1478 }
  0xf0   : > { %8048 = vst [vmem:[#allocation20_spill] sm:$0xff] %v6512_v18  ;;  %8049 = vst [vmem:[#allocation21_spill] sm:$0xff] %v6514_v19  ;;  %4372 = vperm.xlu1 %5509, %v3811_v14   ;;  %4360 = vperm.xlu0 %5508, %v3810_v17   ;;  %v1715_v18 = vrot.slane %v6312_v38, %v6482_v49 }
  0xf1   : > { %8050 = vst [vmem:[#allocation22_spill] sm:$0xff] %v6516_v22 }
  0xf3   : > { %v1875_v27 = vpop.permute.xlu1 %1874  ;;  %v1863_v28 = vpop.permute.xlu0 %1862 }
  0xf4   : > { %v1883_v29 = vrot.slane %v1875_v27, %v6482_v49  ;;  %v1871_v35 = vrot.slane %v1863_v28, %v6482_v49  ;;  %4348 = vperm.xlu1 %5509, %v3809_v23   ;;  %4336 = vperm.xlu0 %5508, %v3808_v26   ;;  %v3803_v28 = vld [vmem:[%s7976_s4 + $0x94] sm:$0xf] }
  0xf6   : > { %v6526_v36 = vpop.f32.mrf.mxu0  ;;  %v6534_v46 = vpop.f32.mrf.mxu1  ;;  %v6536_v50 = vcombine.low %v1871_v35, %v1883_v29  ;;  %v3802_v29 = vld [vmem:[%s7976_s4 + $0x90] sm:$0xf] }
  0xf7   : > { %v6540_v54 = vpop.permute.xlu1 %1466  ;;  %v6542_v55 = vpop.permute.xlu0 %1454 }
  0xf8   : > { %8051 = vst [vmem:[#allocation23_spill] sm:$0xff] %v6536_v50  ;;  %v6538_v53 = vpop.f32.mrf.mxu0  ;;  %8052 = vst [vmem:[#allocation24_spill] sm:$0xff] %v6540_v54  ;;  %4324 = vperm.xlu1 %5509, %v3807_v37   ;;  %4312 = vperm.xlu0 %5508, %v3806_v45   ;;  %v6544_v58 = vpop.f32.mrf.mxu1  ;;  %v1703_v50 = vrot.slane %v6299_v33, %v6482_v49  ;;  %v1679_v33 = vrot.slane %v6339_v48, %v6482_v49  ;;  %v3828_v48 = vld [vmem:[%s7976_s4 + $0xf8] sm:$0xf] }
  0xf9   : > { %8053 = vst [vmem:[#allocation25_spill] sm:$0xff] %v6542_v55 }
  0xfa   : > { %v6546_v59 = vpop.f32.mrf.mxu0  ;;  %v6556_v9 = vpop.f32.mrf.mxu1  ;;  %v5258_v12 = vcombine.low %v1703_v50, %v1715_v18 }
  0xfb   : > { %v1851_v13 = vpop.permute.xlu1 %1850  ;;  %v1839_v17 = vpop.permute.xlu0 %1838 }
  0xfc   : > { %v6558_v10 = vpop.f32.mrf.mxu0  ;;  %v1859_v14 = vrot.slane %v1851_v13, %v6482_v49  ;;  %4300 = vperm.xlu1 %5509, %v3805_v4   ;;  %4288 = vperm.xlu0 %5508, %v3804_v5   ;;  %v6561_v23 = vpop.f32.mrf.mxu1  ;;  %v1847_v26 = vrot.slane %v1839_v17, %v6482_v49 }
  0xfe   : > { %v6564_v27 = vpop.f32.mrf.mxu0  ;;  %v6572_v35 = vpop.f32.mrf.mxu1  ;;  %v6574_v37 = vcombine.low %v1847_v26, %v1859_v14  ;;  %v3800_v14 = vld [vmem:[%s7976_s4 + $0x88] sm:$0xf]  ;;  %v3799_v26 = vld [vmem:[%s7976_s4 + $0x84] sm:$0xf] }
  0xff   : > { %v6578_v4 = vpop.permute.xlu1 %1442  ;;  %v6580_v5 = vpop.permute.xlu0 %1430 }
 0x100   : > { %8054 = vst [vmem:[#allocation26_spill] sm:$0xff] %v6574_v37  ;;  %v6576_v45 = vpop.f32.mrf.mxu0  ;;  %8055 = vst [vmem:[#allocation27_spill] sm:$0xff] %v6578_v4  ;;  %4276 = vperm.xlu1 %5509, %v3803_v28   ;;  %4264 = vperm.xlu0 %5508, %v3802_v29   ;;  %v915_v13 = vpop.f32.mrf.mxu1 }
 0x101   : > { %8056 = vst [vmem:[#allocation28_spill] sm:$0xff] %v6580_v5 }
 0x102   : > { %v6582_v17 = vpop.f32.mrf.mxu0  ;;  %v917_v8 = vpop.f32.mrf.mxu1 }
 0x103   : > { %v1827_v40 = vpop.permute.xlu1 %1826  ;;  %v1815_v29 = vpop.permute.xlu0 %1814 }
 0x104   : > { %v6592_v0 = vpop.f32.mrf.mxu0  ;;  %v1835_v28 = vrot.slane %v1827_v40, %v6482_v49  ;;  %4252 = vperm.xlu1 %5509, %v3801_v30   ;;  %4240 = vperm.xlu0 %5508, %v3800_v14   ;;  %v919_v37 = vpop.f32.mrf.mxu1  ;;  %v1823_v62 = vrot.slane %v1815_v29, %v6482_v49  ;;  %v3798_v30 = vld [vmem:[%s7976_s4 + $0x80] sm:$0xf]  ;;  %v1691_v40 = vrot.slane %v6337_v47, %v6482_v49  ;;  %v3829_v47 = vld [vmem:[%s7976_s4 + $0xfc] sm:$0xf] }
 0x106   : > { %v6600_v32 = vpop.f32.mrf.mxu0  ;;  %v923_v14 = vpop.f32.mrf.mxu1  ;;  %v6612_v38 = vcombine.low %v1823_v62, %v1835_v28  ;;  %v5257_v62 = vcombine.low %v1679_v33, %v1691_v40  ;;  %v1667_v28 = vrot.slane %v6362_v56, %v6482_v49  ;;  %v1056_v40 = vpack.c.bf16 %v917_v8, %v6572_v35 }
 0x107   : > { %v6616_v31 = vpop.permute.xlu1 %1418  ;;  %v6618_v21 = vpop.permute.xlu0 %1406 }
 0x108   : > { %8057 = vst [vmem:[#allocation29_spill] sm:$0xff] %v6612_v38  ;;  %v6614_v29 = vpop.f32.mrf.mxu0  ;;  %8058 = vst [vmem:[#allocation30_spill] sm:$0xff] %v6616_v31  ;;  %4228 = vperm.xlu1 %5509, %v3799_v26   ;;  %4216 = vperm.xlu0 %5508, %v3798_v30   ;;  %v925_v20 = vpop.f32.mrf.mxu1  ;;  %v1655_v26 = vrot.slane %v6364_v57, %v6482_v49  ;;  %v1057_v30 = vpack.c.bf16 %v919_v37, %v915_v13  ;;  %v3827_v37 = vld [vmem:[%s7976_s4 + $0xf4] sm:$0xf]  ;;  %v3826_v13 = vld [vmem:[%s7976_s4 + $0xf0] sm:$0xf] }
 0x109   : > { %8059 = vst [vmem:[#allocation31_spill] sm:$0xff] %v6618_v21 }
 0x10a   : > { %v6620_v11 = vpop.f32.mrf.mxu0  ;;  %v927_v38 = vpop.f32.mrf.mxu1 }
 0x10b   : > { %v1803_v50 = vpop.permute.xlu1 %1802  ;;  %v1058_v3 = vpack.c.bf16 %v927_v38, %v923_v14  ;;  %v1791_v21 = vpop.permute.xlu0 %1790  ;;  %v5256_v14 = vcombine.low %v1655_v26, %v1667_v28  ;;  %v1055_v38 = vpack.c.bf16 %v6561_v23, %v6544_v58  ;;  %v1054_v28 = vpack.c.bf16 %v6556_v9, %v6534_v46 }
 0x10c   : > { %v6632_v18 = vpop.f32.mrf.mxu0  ;;  %v1811_v2 = vrot.slane %v1803_v50, %v6482_v49  ;;  %4588 = vperm.xlu1 %5509, %v3829_v47   ;;  %4576 = vperm.xlu0 %5508, %v3828_v48   ;;  %v929_v31 = vpop.f32.mrf.mxu1  ;;  %v1799_v33 = vrot.slane %v1791_v21, %v6482_v49  ;;  %v2145_v47 = vadd.bf16 %v5257_v62, %v1057_v30  ;;  %v8065_v23 = vmov 0  }
 0x10d   : > { %v2146_v5 = vadd.bf16 %v5258_v12, %v1058_v3  ;;  %v1059_v57 = vpack.c.bf16 %v929_v31, %v925_v20  ;;  %v2144_v58 = vadd.bf16 %v5257_v62, %v1056_v40 }
 0x10e   : > { %v6637_v56 = vpop.f32.mrf.mxu0  ;;  %v6647_v8 = vpop.f32.mrf.mxu1  ;;  %v6649_v21 = vcombine.low %v1799_v33, %v1811_v2  ;;  %v3825_v2 = vld [vmem:[%s7976_s4 + $0xec] sm:$0xf]  ;;  %v2143_v33 = vadd.bf16 %v5256_v14, %v1055_v38  ;;  %v2209_v46 = vmax.bf16 %v8065_v23, %v2145_v47 }
 0x10f   : > { %8060 = vst [vmem:[#allocation32_spill] sm:$0xff] %v6647_v8  ;;  %v2147_v3 = vadd.bf16 %v5258_v12, %v1059_v57  ;;  %v6653_v20 = vpop.permute.xlu1 %1394  ;;  %v6655_v31 = vpop.permute.xlu0 %1382  ;;  %v2210_v26 = vmax.bf16 %v8065_v23, %v2146_v5  ;;  %v3824_v12 = vld [vmem:[%s7976_s4 + $0xe8] sm:$0xf]  ;;  %v2208_v38 = vmax.bf16 %v8065_v23, %v2144_v58 }
 0x110   : > { %8061 = vst [vmem:[#allocation33_spill] sm:$0xff] %v6649_v21  ;;  %v6651_v35 = vpop.f32.mrf.mxu0  ;;  %8062 = vst [vmem:[#allocation34_spill] sm:$0xff] %v6653_v20  ;;  %4564 = vperm.xlu1 %5509, %v3827_v37   ;;  %4552 = vperm.xlu0 %5508, %v3826_v13   ;;  %v6657_v48 = vpop.f32.mrf.mxu1  ;;  %v3823_v21 = vld [vmem:[%s7976_s4 + $0xe4] sm:$0xf]  ;;  %v3816_v8 = vld [vmem:[%s7976_s4 + $0xc8] sm:$0xf] }
 0x111   : > { %8063 = vst [vmem:[#allocation35_spill] sm:$0xff] %v6655_v31  ;;  %8064 = vst [vmem:[#allocation36_spill] sm:$0xff] %v6657_v48  ;;  %v2211_v50 = vmax.bf16 %v8065_v23, %v2147_v3  ;;  %v2142_v3 = vadd.bf16 %v5256_v14, %v1054_v28  ;;  %v2207_v14 = vmax.bf16 %v8065_v23, %v2143_v33 }
 0x112   : > { %v6662_v30 = vpop.f32.mrf.mxu0  ;;  %v6671_v57 = vpop.f32.mrf.mxu1 }
 0x113   : > { %8066 = vst [vmem:[#allocation37_spill] sm:$0xff] %v6671_v57  ;;  %v1779_v5 = vpop.permute.xlu1 %1778  ;;  %3349 = vmatprep.subr.bf16.mxu0 %v2211_v50  ;;  %v1767_v37 = vpop.permute.xlu0 %1766  ;;  %v3822_v50 = vld [vmem:[%s7976_s4 + $0xe0] sm:$0xf] }
 0x114   : > { %v6674_v9 = vpop.f32.mrf.mxu0  ;;  %v1787_v40 = vrot.slane %v1779_v5, %v6482_v49  ;;  %4540 = vperm.xlu1 %5509, %v3825_v2   ;;  %4528 = vperm.xlu0 %5508, %v3824_v12   ;;  %v6679_v13 = vpop.f32.mrf.mxu1  ;;  %v1775_v48 = vrot.slane %v1767_v37, %v6482_v49  ;;  %v2206_v5 = vmax.bf16 %v8065_v23, %v2142_v3 }
 0x115   : > { %8067 = vst [vmem:[#allocation38_spill] sm:$0xff] %v6679_v13  ;;  %3350 = vmatpush1.bf16.msra.mxu0 %v2210_v26  ;;  %v3821_v26 = vld [vmem:[%s7976_s4 + $0xdc] sm:$0xf] }
 0x116   : > { %v6683_v47 = vpop.f32.mrf.mxu0  ;;  %v6691_v2 = vpop.f32.mrf.mxu1  ;;  %3351 = vmatprep.subr.bf16.mxu0 %v2209_v46  ;;  %v5261_v28 = vcombine.low %v1775_v48, %v1787_v40  ;;  %v3820_v46 = vld [vmem:[%s7976_s4 + $0xd8] sm:$0xf] }
 0x117   : > { %8068 = vst [vmem:[#allocation39_spill] sm:$0xff] %v6691_v2 }
 0x118   : > { %v6694_v58 = vpop.f32.mrf.mxu0  ;;  %4516 = vperm.xlu1 %5509, %v3823_v21   ;;  %4504 = vperm.xlu0 %5508, %v3822_v50   ;;  %v6696_v12 = vpop.f32.mrf.mxu1  ;;  %v3819_v50 = vld [vmem:[%s7976_s4 + $0xd4] sm:$0xf] }
 0x119   : > { %8069 = vst [vmem:[#allocation40_spill] sm:$0xff] %v6696_v12  ;;  %3352 = vmatpush1.bf16.msra.mxu0 %v2208_v38  ;;  %v3818_v38 = vld [vmem:[%s7976_s4 + $0xd0] sm:$0xf]  ;;  %v3814_v12 = vld [vmem:[%s7976_s4 + $0xc0] sm:$0xf] }
 0x11a   : > { %v6699_v37 = vpop.f32.mrf.mxu0  ;;  %v6707_v48 = vpop.f32.mrf.mxu1  ;;  %3353 = vmatprep.subr.bf16.mxu0 %v2207_v14 }
 0x11b   : > { %8070 = vst [vmem:[#allocation41_spill] sm:$0xff] %v6707_v48 }
 0x11c   : > { %v6709_v21 = vpop.f32.mrf.mxu0  ;;  %4492 = vperm.xlu1 %5509, %v3821_v26   ;;  %4480 = vperm.xlu0 %5508, %v3820_v46   ;;  %v6713_v40 = vpop.f32.mrf.mxu1  ;;  %v3817_v46 = vld [vmem:[%s7976_s4 + $0xcc] sm:$0xf] }
 0x11d   : > { %8071 = vst [vmem:[#allocation42_spill] sm:$0xff] %v6713_v40  ;;  %3354 = vmatpush1.bf16.msra.mxu0 %v2206_v5  ;;  %v3815_v40 = vld [vmem:[%s7976_s4 + $0xc4] sm:$0xf] }
 0x11e   : > { %v6715_v3 = vpop.f32.mrf.mxu0  ;;  %v953_v14 = vpop.f32.mrf.mxu1 }
 0x120   : > { %v745_v62 = vpop.f32.mrf.mxu0  ;;  %4468 = vperm.xlu1 %5509, %v3819_v50   ;;  %4456 = vperm.xlu0 %5508, %v3818_v38   ;;  %v955_v33 = vpop.f32.mrf.mxu1 }
 0x122   : > { %v6723_v26 = vpop.f32.mrf.mxu0  ;;  %v957_v57 = vpop.f32.mrf.mxu1 }
 0x123   : > { %v1064_v48 = vpack.c.bf16 %v957_v57, %v953_v14 }
 0x124   : > { %v749_v2 = vpop.f32.mrf.mxu0  ;;  %4444 = vperm.xlu1 %5509, %v3817_v46   ;;  %4432 = vperm.xlu0 %5508, %v3816_v8   ;;  %v959_v5 = vpop.f32.mrf.mxu1 }
 0x125   : > { %v6731_v50 = vadd.bf16 %v5261_v28, %v1064_v48  ;;  %v1065_v38 = vpack.c.bf16 %v959_v5, %v955_v33  ;;  %v1319_v48 = vrot.slane %v6301_v34, %v6482_v49  ;;  %v1331_v33 = vrot.slane %v6314_v39, %v6482_v49 }
 0x126   : > { %v753_v13 = vpop.f32.mrf.mxu0  ;;  %v1307_v5 = vrot.slane %v6324_v42, %v6482_v49  ;;  %v1283_v34 = vrot.slane %v6349_v51, %v6482_v49  ;;  %v1271_v39 = vrot.slane %v6351_v52, %v6482_v49  ;;  %v1023_v42 = vpack.c.bf16 %v749_v2, %v745_v62 }
 0x127   : > { %8072 = vst [vmem:[#allocation43_spill] sm:$0xff] %v6731_v50  ;;  %v6739_v20 = vadd.bf16 %v5261_v28, %v1065_v38  ;;  %v1295_v50 = vrot.slane %v6326_v43, %v6482_v49  ;;  %v5242_v28 = vcombine.low %v1319_v48, %v1331_v33  ;;  %v1247_v51 = vrot.slane %v6376_v61, %v6482_v49 }
 0x128   : > { %v755_v31 = vpop.f32.mrf.mxu0  ;;  %4420 = vperm.xlu1 %5509, %v3815_v40   ;;  %4408 = vperm.xlu0 %5508, %v3814_v12   ;;  %v1022_v52 = vpack.c.bf16 %v6723_v26, %v6715_v3 }
 0x129   : > { %8073 = vst [vmem:[#allocation44_spill] sm:$0xff] %v6739_v20  ;;  %v5241_v4 = vcombine.low %v1295_v50, %v1307_v5  ;;  %v1259_v50 = vrot.slane %v6374_v60, %v6482_v49 }
 0x12a   : > { %v757_v57 = vpop.f32.mrf.mxu0 }
 0x12b   : > { %v1024_v54 = vpack.c.bf16 %v757_v57, %v753_v13  ;;  %v5239_v33 = vcombine.low %v1247_v51, %v1259_v50 }
 0x12c   : > { %v759_v8 = vpop.f32.mrf.mxu0 }
 0x12d   : > { %v1025_v40 = vpack.c.bf16 %v759_v8, %v755_v31  ;;  %v5240_v31 = vcombine.low %v1271_v39, %v1283_v34 }
 0x12e   : > { %v763_v14 = vpop.f32.mrf.mxu0 }
 0x12f   : > { %v2113_v1 = vadd.bf16 %v5241_v4, %v1025_v40  ;;  %v2111_v2 = vadd.bf16 %v5240_v31, %v1023_v42  ;;  %v1015_v42 = vpack.c.bf16 %v6592_v0, %v6576_v45  ;;  %v1013_v0 = vpack.c.bf16 %v6558_v10, %v6538_v53 }
 0x130   : > { %v765_v46 = vpop.f32.mrf.mxu0 }
 0x131   : > { %v2177_v61 = vmax.bf16 %v8065_v23, %v2113_v1  ;;  %v1019_v1 = vpack.c.bf16 %v6674_v9, %v6651_v35 }
 0x132   : > { %v767_v38 = vpop.f32.mrf.mxu0 }
 0x133   : > { %v1026_v12 = vpack.c.bf16 %v767_v38, %v763_v14  ;;  %v2175_v14 = vmax.bf16 %v8065_v23, %v2111_v2 }
 0x134   : > { %v769_v20 = vpop.f32.mrf.mxu0 }
 0x135   : > { %v1027_v55 = vpack.c.bf16 %v769_v20, %v765_v46  ;;  %v2114_v22 = vadd.bf16 %v5242_v28, %v1026_v12  ;;  %v2112_v20 = vadd.bf16 %v5241_v4, %v1024_v54  ;;  %v1235_v54 = vrot.slane %v6399_v6, %v6482_v49 }
 0x136   : > { %v6753_v19 = vpop.f32.mrf.mxu0  ;;  %v1020_v4 = vpack.c.bf16 %v6699_v37, %v6683_v47  ;;  %v1199_v47 = vrot.slane %v6426_v16, %v6482_v49  ;;  %v1018_v37 = vpack.c.bf16 %v6662_v30, %v6637_v56  ;;  %v1187_v56 = vrot.slane %v6448_v24, %v6482_v49 }
 0x137   : > { %v2115_v43 = vadd.bf16 %v5242_v28, %v1027_v55  ;;  %v2178_v13 = vmax.bf16 %v8065_v23, %v2114_v22  ;;  %v1021_v55 = vpack.c.bf16 %v6709_v21, %v6694_v58  ;;  %v1223_v22 = vrot.slane %v6401_v7, %v6482_v49 }
 0x138   : > { %v6755_v48 = vpop.f32.mrf.mxu0  ;;  %v2110_v58 = vadd.bf16 %v5240_v31, %v1022_v52  ;;  %v2176_v21 = vmax.bf16 %v8065_v23, %v2112_v20  ;;  %v1211_v7 = vrot.slane %v6424_v15, %v6482_v49  ;;  %v2108_v5 = vadd.bf16 %v5239_v33, %v1020_v4 }
 0x139   : > { %v2179_v8 = vmax.bf16 %v8065_v23, %v2115_v43  ;;  %v2109_v26 = vadd.bf16 %v5239_v33, %v1021_v55  ;;  %v5238_v6 = vcombine.low %v1223_v22, %v1235_v54  ;;  %v1017_v28 = vpack.c.bf16 %v6632_v18, %v6614_v29 }
 0x13a   : > { %v6765_v62 = vpop.f32.mrf.mxu0  ;;  %v2174_v35 = vmax.bf16 %v8065_v23, %v2110_v58  ;;  %v5237_v16 = vcombine.low %v1199_v47, %v1211_v7  ;;  %v1175_v30 = vrot.slane %v6450_v25, %v6482_v49  ;;  %v1016_v29 = vpack.c.bf16 %v6620_v11, %v6600_v32 }
 0x13b   : > { %v1028_v60 = vpack.c.bf16 %v6765_v62, %v6753_v19  ;;  %2996 = vmatprep.subr.bf16.mxu1 %v2179_v8  ;;  %v2107_v38 = vadd.bf16 %v5238_v6, %v1019_v1  ;;  %v2173_v15 = vmax.bf16 %v8065_v23, %v2109_v26  ;;  %v2106_v18 = vadd.bf16 %v5238_v6, %v1018_v37  ;;  %v8088_v19 = vld [vmem:[#allocation10_spill] sm:$0xff] }
 0x13c   : > { %v6772_v57 = vpop.f32.mrf.mxu0  ;;  %2997 = vmatpush1.bf16.msra.mxu1 %v2178_v13  ;;  %v2172_v34 = vmax.bf16 %v8065_v23, %v2108_v5  ;;  %v2105_v43 = vadd.bf16 %v5237_v16, %v1017_v28  ;;  %v5236_v24 = vcombine.low %v1175_v30, %v1187_v56  ;;  %v1163_v25 = vrot.slane %v6471_v41, %v6482_v49  ;;  %v5545_v41 = vld [vmem:[#allocation3 + $0x4] ss:$16 sps:$4 sm:$0xff]  }
 0x13d   : > { %2998 = vmatprep.subr.bf16.mxu1 %v2177_v61  ;;  %v2171_v31 = vmax.bf16 %v8065_v23, %v2107_v38  ;;  %v1151_v11 = vrot.slane %v6473_v44, %v6482_v49  ;;  %v2104_v32 = vadd.bf16 %v5237_v16, %v1016_v29  ;;  %v2170_v51 = vmax.bf16 %v8065_v23, %v2106_v18 }
 0x13e   : > { %v6781_v3 = vpop.f32.mrf.mxu0  ;;  %v2103_v45 = vadd.bf16 %v5236_v24, %v1015_v42  ;;  %v2169_v52 = vmax.bf16 %v8065_v23, %v2105_v43  ;;  %v8074_v44 = vpack.c.bf16 %v6582_v17, %v6564_v27  ;;  %3028 = vmatprep.mubr.bf16.mxu1 %v5545_v41  ;;  %v8075_v54 = vpack.c.bf16 %v6546_v59, %v6526_v36  ;;  %v6855_v59 = vpop.f32.mrf.mxu1  ;;  %v8076_v42 = vld [vmem:[#allocation19_spill] sm:$0xff] }
 0x13f   : > { %v5235_v13 = vcombine.low %v1151_v11, %v1163_v25  ;;  %v2168_v2 = vmax.bf16 %v8065_v23, %v2104_v32  ;;  %v1511_v43 = vrot.slane %v8076_v42, %v6482_v49  ;;  %v8077_v25 = vld [vmem:[#allocation21_spill] sm:$0xff]  ;;  %v8078_v32 = vld [vmem:[#allocation22_spill] sm:$0xff]  ;;  %v8081_v42 = vld [vmem:[#allocation27_spill] sm:$0xff]  ;;  %v1631_v62 = vrot.slane %v8088_v19, %v6482_v49 }
 0x140   : > { %v6786_v46 = vpop.f32.mrf.mxu0  ;;  %2999 = vmatpush1.bf16.msra.mxu1 %v2176_v21  ;;  %v2102_v55 = vadd.bf16 %v5236_v24, %v8074_v44  ;;  %v2167_v53 = vmax.bf16 %v8065_v23, %v2103_v45  ;;  %v5548_v21 = vld [vmem:[#allocation3 + $0xc] ss:$16 sps:$4 sm:$0xff]   ;;  %v6859_v47 = vpop.f32.mrf.mxu1  ;;  %v1499_v11 = vrot.slane %v8077_v25, %v6482_v49 }
 0x141   : > { %3000 = vmatprep.subr.bf16.mxu1 %v2175_v14  ;;  %v2101_v33 = vadd.bf16 %v5235_v13, %v1013_v0  ;;  %v2100_v22 = vadd.bf16 %v5235_v13, %v8075_v54  ;;  %3381 = vmatprep.mubr.bf16.mxu0 %v5548_v21  ;;  %v8082_v25 = vld [vmem:[#allocation28_spill] sm:$0xff] }
 0x142   : > { %v6795_v9 = vpop.f32.mrf.mxu0  ;;  %v2166_v4 = vmax.bf16 %v8065_v23, %v2102_v55  ;;  %v8079_v55 = vld [vmem:[#allocation24_spill] sm:$0xff] }
 0x143   : > { %v1030_v40 = vpack.c.bf16 %v6795_v9, %v6781_v3  ;;  %v2165_v17 = vmax.bf16 %v8065_v23, %v2101_v33  ;;  %v2164_v1 = vmax.bf16 %v8065_v23, %v2100_v22  ;;  %v8080_v33 = vld [vmem:[#allocation25_spill] sm:$0xff] }
 0x144   : > { %v6802_v12 = vpop.f32.mrf.mxu0  ;;  %3001 = vmatpush1.bf16.msra.mxu1 %v2174_v35  ;;  %v6861_v35 = vpop.f32.mrf.mxu1 }
 0x145   : > { %3002 = vmatprep.subr.bf16.mxu1 %v2173_v15 }
 0x146   : > { %v6811_v39 = vpop.f32.mrf.mxu0  ;;  %v6863_v15 = vpop.f32.mrf.mxu1 }
 0x148   : > { %v6816_v50 = vpop.f32.mrf.mxu0  ;;  %3003 = vmatpush1.bf16.msra.mxu1 %v2172_v34  ;;  %v6865_v30 = vpop.f32.mrf.mxu1  ;;  %v1523_v34 = vrot.slane %v6494_v63, %v6482_v49 }
 0x149   : > { %3004 = vmatprep.subr.bf16.mxu1 %v2171_v31 }
 0x14a   : > { %v6823_v8 = vpop.f32.mrf.mxu0  ;;  %v6871_v31 = vpop.f32.mrf.mxu1  ;;  %v5250_v13 = vcombine.low %v1511_v43, %v1523_v34  ;;  %v1451_v43 = vrot.slane %v8081_v42, %v6482_v49  ;;  %v8085_v42 = vld [vmem:[#allocation34_spill] sm:$0xff] }
 0x14c   : > { %v6828_v20 = vpop.f32.mrf.mxu0  ;;  %3005 = vmatpush1.bf16.msra.mxu1 %v2170_v51  ;;  %v1487_v51 = vrot.slane %v8078_v32, %v6482_v49  ;;  %v6877_v41 = vpop.f32.mrf.mxu1 }
 0x14d   : > { %3006 = vmatprep.subr.bf16.mxu1 %v2169_v52 }
 0x14e   : > { %v6834_v61 = vpop.f32.mrf.mxu0  ;;  %v5249_v63 = vcombine.low %v1487_v51, %v1499_v11  ;;  %v1439_v11 = vrot.slane %v8082_v25, %v6482_v49  ;;  %v1359_v51 = vpop.permute.xlu0 %1358 }
 0x150   : > { %v6837_v10 = vpop.f32.mrf.mxu0  ;;  %3007 = vmatpush1.bf16.msra.mxu1 %v2168_v2  ;;  %v1475_v2 = vrot.slane %v8079_v55, %v6482_v49  ;;  %v8084_v55 = vld [vmem:[#allocation31_spill] sm:$0xff] }
 0x151   : > { %3008 = vmatprep.subr.bf16.mxu1 %v2167_v53  ;;  %v1463_v53 = vrot.slane %v8080_v33, %v6482_v49 }
 0x152   : > { %v6843_v27 = vpop.f32.mrf.mxu0  ;;  %v6926_v25 = vpop.permute.xlu0 %1742 }
 0x153   : > { %v5248_v34 = vcombine.low %v1463_v53, %v1475_v2  ;;  %v1415_v2 = vrot.slane %v8084_v55, %v6482_v49 }
 0x154   : > { %v6846_v58 = vpop.f32.mrf.mxu0  ;;  %3009 = vmatpush1.bf16.msra.mxu1 %v2166_v4 }
 0x155   : > { %3010 = vmatprep.subr.bf16.mxu1 %v2165_v17 }
 0x156   : > { %v6849_v26 = vpop.f32.mrf.mxu0  ;;  %v1335_v55 = vpop.permute.xlu0 %1334 }
 0x158   : > { %v6851_v14 = vpop.f32.mrf.mxu0  ;;  %3011 = vmatpush1.bf16.msra.mxu1 %v2164_v1 }
 0x15a   : > { %v6853_v36 = vpop.f32.mrf.mxu0 }
 0x15c   : > { %v6857_v6 = vpop.f32.mrf.mxu0 }
 0x15e   : > { %v823_v7 = vpop.f32.mrf.mxu0 }
 0x160   : > { %v825_v37 = vpop.f32.mrf.mxu0 }
 0x162   : > { %v827_v5 = vpop.f32.mrf.mxu0 }
 0x164   : > { %v829_v28 = vpop.f32.mrf.mxu0 }
 0x165   : > { %v1039_v21 = vpack.c.bf16 %v829_v28, %v825_v37  ;;  %v1371_v28 = vpop.permute.xlu1 %1370 }
 0x166   : > { %v833_v38 = vpop.f32.mrf.mxu0 }
 0x168   : > { %v835_v16 = vpop.f32.mrf.mxu0 }
 0x16a   : > { %v837_v56 = vpop.f32.mrf.mxu0 }
 0x16b   : > { %v1040_v22 = vpack.c.bf16 %v837_v56, %v833_v38  ;;  %v1038_v38 = vpack.c.bf16 %v827_v5, %v823_v7  ;;  %v5247_v7 = vcombine.low %v1439_v11, %v1451_v43  ;;  %v8083_v5 = vld [vmem:[#allocation30_spill] sm:$0xff]  ;;  %v6924_v43 = vpop.permute.xlu1 %1754 }
 0x16c   : > { %v839_v29 = vpop.f32.mrf.mxu0 }
 0x16d   : > { %v1041_v45 = vpack.c.bf16 %v839_v29, %v835_v16  ;;  %v6885_v29 = vpop.f32.mrf.mxu1  ;;  %v2128_v56 = vadd.bf16 %v5249_v63, %v1040_v22 }
 0x16e   : > { %v843_v18 = vpop.f32.mrf.mxu0 }
 0x16f   : > { %v2129_v1 = vadd.bf16 %v5249_v63, %v1041_v45  ;;  %v2127_v45 = vadd.bf16 %v5248_v34, %v1039_v21  ;;  %v1427_v63 = vrot.slane %v8083_v5, %v6482_v49  ;;  %v2192_v33 = vmax.bf16 %v8065_v23, %v2128_v56 }
 0x170   : > { %v845_v24 = vpop.f32.mrf.mxu0  ;;  %v1379_v5 = vrot.slane %v1371_v28, %v6482_v49 }
 0x172   : > { %v847_v0 = vpop.f32.mrf.mxu0 }
 0x173   : > { %v1042_v52 = vpack.c.bf16 %v847_v0, %v843_v18  ;;  %v1037_v0 = vpack.c.bf16 %v6857_v6, %v6851_v14  ;;  %v1036_v14 = vpack.c.bf16 %v6853_v36, %v6849_v26  ;;  %v2126_v6 = vadd.bf16 %v5248_v34, %v1038_v38  ;;  %v8086_v36 = vld [vmem:[#allocation35_spill] sm:$0xff] }
 0x174   : > { %v849_v44 = vpop.f32.mrf.mxu0  ;;  %v1403_v26 = vrot.slane %v8085_v42, %v6482_v49  ;;  %v1391_v34 = vrot.slane %v8086_v36, %v6482_v49  ;;  %v1033_v38 = vpack.c.bf16 %v6828_v20, %v6816_v50 }
 0x175   : > { %v1043_v54 = vpack.c.bf16 %v849_v44, %v845_v24  ;;  %v2130_v4 = vadd.bf16 %v5250_v13, %v1042_v52  ;;  %v2193_v52 = vmax.bf16 %v8065_v23, %v2129_v1  ;;  %v2125_v22 = vadd.bf16 %v5247_v7, %v1037_v0 }
 0x176   : > { %v6883_v17 = vpop.f32.mrf.mxu0  ;;  %v2190_v11 = vmax.bf16 %v8065_v23, %v2126_v6 }
 0x177   : > { %v2131_v16 = vadd.bf16 %v5250_v13, %v1043_v54  ;;  %v2194_v32 = vmax.bf16 %v8065_v23, %v2130_v4  ;;  %v6900_v13 = vpop.f32.mrf.mxu1  ;;  %v1035_v54 = vpack.c.bf16 %v6846_v58, %v6837_v10  ;;  %v2191_v4 = vmax.bf16 %v8065_v23, %v2127_v45 }
 0x178   : > { %v6887_v18 = vpop.f32.mrf.mxu0  ;;  %v1034_v10 = vpack.c.bf16 %v6843_v27, %v6834_v61  ;;  %v2124_v58 = vadd.bf16 %v5247_v7, %v1036_v14  ;;  %v1367_v61 = vrot.slane %v1359_v51, %v6482_v49  ;;  %v1032_v27 = vpack.c.bf16 %v6823_v8, %v6811_v39 }
 0x179   : > { %v2195_v24 = vmax.bf16 %v8065_v23, %v2131_v16  ;;  %v6916_v21 = vpop.f32.mrf.mxu1  ;;  %v5246_v16 = vcombine.low %v1415_v2, %v1427_v63  ;;  %v1347_v63 = vpop.permute.xlu1 %1346  ;;  %v1031_v2 = vpack.c.bf16 %v6802_v12, %v6786_v46  ;;  %v1343_v8 = vrot.slane %v1335_v55, %v6482_v49  ;;  %v5549_v55 = vld [vmem:[#allocation3 + $0x24] ss:$16 sps:$4 sm:$0xff]  }
 0x17a   : > { %v6895_v37 = vpop.f32.mrf.mxu0  ;;  %v2188_v50 = vmax.bf16 %v8065_v23, %v2124_v58  ;;  %v1355_v39 = vrot.slane %v1347_v63, %v6482_v49  ;;  %v1029_v46 = vpack.c.bf16 %v6772_v57, %v6755_v48 }
 0x17b   : > { %3012 = vmatprep.subr.bf16.mxu1 %v2195_v24  ;;  %v2123_v56 = vadd.bf16 %v5246_v16, %v1035_v54  ;;  %v6936_v0 = vpop.f32.mrf.mxu1  ;;  %v2122_v7 = vadd.bf16 %v5246_v16, %v1034_v10 }
 0x17c   : > { %v6902_v44 = vpop.f32.mrf.mxu0  ;;  %3013 = vmatpush2.bf16.msra.mxu1 %v2194_v32  ;;  %v2189_v32 = vmax.bf16 %v8065_v23, %v2125_v22  ;;  %v5243_v36 = vcombine.low %v1343_v8, %v1355_v39 }
 0x17d   : > { %3014 = vmatprep.subr.bf16.mxu1 %v2193_v52  ;;  %v5245_v52 = vcombine.low %v1391_v34, %v1403_v26  ;;  %v2187_v6 = vmax.bf16 %v8065_v23, %v2123_v56  ;;  %v6950_v28 = vpop.f32.mrf.mxu1  ;;  %v2186_v22 = vmax.bf16 %v8065_v23, %v2122_v7  ;;  %v8087_v7 = vld [vmem:[#allocation9_spill] sm:$0xff] }
 0x17e   : > { %v6911_v53 = vpop.f32.mrf.mxu0  ;;  %v2116_v56 = vadd.bf16 %v5243_v36, %v1028_v60 }
 0x17f   : > { %v2121_v14 = vadd.bf16 %v5245_v52, %v1033_v38  ;;  %v2120_v54 = vadd.bf16 %v5245_v52, %v1032_v27  ;;  %v6962_v42 = vpop.f32.mrf.mxu1  ;;  %v5543_v27 = vld [vmem:[#allocation3] ss:$16 sps:$4 sm:$0xff]  }
 0x180   : > { %v6918_v1 = vpop.f32.mrf.mxu0  ;;  %3015 = vmatpush2.bf16.msra.mxu1 %v2192_v33  ;;  %v5244_v33 = vcombine.low %v1367_v61, %v1379_v5  ;;  %v2180_v5 = vmax.bf16 %v8065_v23, %v2116_v56 }
 0x181   : > { %3016 = vmatprep.subr.bf16.mxu1 %v2191_v4  ;;  %v2185_v16 = vmax.bf16 %v8065_v23, %v2121_v14  ;;  %v2184_v10 = vmax.bf16 %v8065_v23, %v2120_v54  ;;  %v6969_v48 = vpop.f32.mrf.mxu1 }
 0x182   : > { %v6931_v24 = vpop.f32.mrf.mxu0  ;;  %v2119_v12 = vadd.bf16 %v5244_v33, %v1031_v2  ;;  %v2118_v34 = vadd.bf16 %v5244_v33, %v1030_v40  ;;  %v8089_v2 = vld [vmem:[#allocation11_spill] sm:$0xff] }
 0x183   : > { %v6976_v9 = vpop.f32.mrf.mxu1  ;;  %v1619_v14 = vrot.slane %v8089_v2, %v6482_v49 }
 0x184   : > { %v6938_v45 = vpop.f32.mrf.mxu0  ;;  %3017 = vmatpush2.bf16.msra.mxu1 %v2190_v11  ;;  %v2117_v11 = vadd.bf16 %v5243_v36, %v1029_v46  ;;  %v2183_v38 = vmax.bf16 %v8065_v23, %v2119_v12  ;;  %v8091_v36 = vld [vmem:[#allocation13_spill] sm:$0xff] }
 0x185   : > { %3018 = vmatprep.subr.bf16.mxu1 %v2189_v32  ;;  %v2182_v32 = vmax.bf16 %v8065_v23, %v2118_v34  ;;  %v6983_v60 = vpop.f32.mrf.mxu1  ;;  %v1595_v34 = vrot.slane %v8091_v36, %v6482_v49 }
 0x186   : > { %v6945_v20 = vpop.f32.mrf.mxu0  ;;  %v2181_v3 = vmax.bf16 %v8065_v23, %v2117_v11 }
 0x187   : > { %v6989_v46 = vpop.f32.mrf.mxu1 }
 0x188   : > { %v6952_v51 = vpop.f32.mrf.mxu0  ;;  %3019 = vmatpush2.bf16.msra.mxu1 %v2188_v50  ;;  %v1643_v50 = vrot.slane %v8087_v7, %v6482_v49 }
 0x189   : > { %3020 = vmatprep.subr.bf16.mxu1 %v2187_v6  ;;  %v8090_v6 = vld [vmem:[#allocation12_spill] sm:$0xff] }
 0x18a   : > { %v6957_v4 = vpop.f32.mrf.mxu0  ;;  %v1607_v33 = vrot.slane %v8090_v6, %v6482_v49 }
 0x18c   : > { %v879_v26 = vpop.f32.mrf.mxu0  ;;  %3021 = vmatpush2.bf16.msra.mxu1 %v2186_v22  ;;  %v5255_v22 = vcombine.low %v1631_v62, %v1643_v50  ;;  %v8093_v50 = vld [vmem:[#allocation15_spill] sm:$0xff]  ;;  %v8094_v62 = vld [vmem:[#allocation16_spill] sm:$0xff] }
 0x18d   : > { %3022 = vmatprep.subr.bf16.mxu1 %v2185_v16  ;;  %v5254_v16 = vcombine.low %v1607_v33, %v1619_v14  ;;  %v1571_v19 = vrot.slane %v8093_v50, %v6482_v49  ;;  %v1069_v50 = vpack.c.bf16 %v6885_v29, %v6871_v31 }
 0x18e   : > { %v883_v58 = vpop.f32.mrf.mxu0 }
 0x190   : > { %v885_v57 = vpop.f32.mrf.mxu0  ;;  %3023 = vmatpush2.bf16.msra.mxu1 %v2184_v10  ;;  %v8092_v10 = vld [vmem:[#allocation14_spill] sm:$0xff] }
 0x191   : > { %3024 = vmatprep.subr.bf16.mxu1 %v2183_v38  ;;  %v1583_v11 = vrot.slane %v8092_v10, %v6482_v49 }
 0x192   : > { %v887_v52 = vpop.f32.mrf.mxu0 }
 0x193   : > { %v1050_v56 = vpack.c.bf16 %v887_v52, %v883_v58  ;;  %v5253_v7 = vcombine.low %v1583_v11, %v1595_v34  ;;  %v1048_v58 = vpack.c.bf16 %v6957_v4, %v6945_v20  ;;  %v8095_v34 = vld [vmem:[#allocation18_spill] sm:$0xff] }
 0x194   : > { %v889_v40 = vpop.f32.mrf.mxu0  ;;  %3025 = vmatpush2.bf16.msra.mxu1 %v2182_v32 }
 0x195   : > { %3026 = vmatprep.subr.bf16.mxu1 %v2181_v3  ;;  %v1051_v8 = vpack.c.bf16 %v889_v40, %v885_v57  ;;  %v1049_v3 = vpack.c.bf16 %v879_v26, %v6952_v51  ;;  %v2138_v52 = vadd.bf16 %v5254_v16, %v1050_v56  ;;  %v1047_v26 = vpack.c.bf16 %v6938_v45, %v6918_v1 }
 0x196   : > { %v893_v61 = vpop.f32.mrf.mxu0  ;;  %v2136_v20 = vadd.bf16 %v5253_v7, %v1048_v58  ;;  %v1067_v58 = vpack.c.bf16 %v6863_v15, %v6859_v47  ;;  %v1751_v47 = vrot.slane %v6926_v25, %v6482_v49  ;;  %v8100_v15 = vld [vmem:[#allocation33_spill] sm:$0xff] }
 0x197   : > { %v2139_v57 = vadd.bf16 %v5254_v16, %v1051_v8  ;;  %v2202_v4 = vmax.bf16 %v8065_v23, %v2138_v52  ;;  %v1045_v8 = vpack.c.bf16 %v6902_v44, %v6887_v18  ;;  %v1044_v16 = vpack.c.bf16 %v6895_v37, %v6883_v17  ;;  %v8096_v37 = vld [vmem:[#allocation20_spill] sm:$0xff]  ;;  %v8099_v52 = vld [vmem:[#allocation29_spill] sm:$0xff] }
 0x198   : > { %v895_v63 = vpop.f32.mrf.mxu0  ;;  %3027 = vmatpush2.bf16.msra.mxu1 %v2180_v5  ;;  %v5551_v5 = vld [vmem:[#allocation3 + $0x20] ss:$16 sps:$4 sm:$0xff]   ;;  %v1073_v17 = vpack.c.bf16 %v6983_v60, %v6969_v48  ;;  %v2157_v31 = vadd.bf16 %v8099_v52, %v1069_v50  ;;  %v5552_v50 = vld [vmem:[#allocation3 + $0x2c] ss:$16 sps:$4 sm:$0xff]  }
 0x199   : > { %v2203_v14 = vmax.bf16 %v8065_v23, %v2139_v57  ;;  %v2133_v10 = vadd.bf16 %v8095_v34, %v1045_v8  ;;  %v2132_v44 = vadd.bf16 %v8095_v34, %v1044_v16  ;;  %v5567_v57 = vld [vmem:[#allocation3 + $0x84] ss:$16 sps:$4 sm:$0xff]   ;;  %v8104_v16 = vld [vmem:[#allocation38_spill] sm:$0xff]  ;;  %v8105_v34 = vld [vmem:[#allocation44_spill] sm:$0xff] }
 0x19a   : > { %v897_v39 = vpop.f32.mrf.mxu0 }
 0x19b   : > { %v1052_v54 = vpack.c.bf16 %v897_v39, %v893_v61  ;;  %3029 = vmatmul.mubr.bf16.vlgmr.msra.gmra.mxu1 %v5543_v27  ;;  %v1005_v61 = vpop.f32.mrf.mxu1  ;;  %v5555_v27 = vld [vmem:[#allocation3 + $0x44] ss:$16 sps:$4 sm:$0xff]   ;;  %v1046_v39 = vpack.c.bf16 %v6931_v24, %v6911_v53  ;;  %v2200_v53 = vmax.bf16 %v8065_v23, %v2136_v20  ;;  %v1731_v20 = vpop.permute.xlu1 %1730 }
 0x19c   : > { %v899_v12 = vpop.f32.mrf.mxu0  ;;  %3038 = vmatprep.mubr.bf16.mxu1 %v5549_v55  ;;  %v1559_v55 = vrot.slane %v8094_v62, %v6482_v49  ;;  %v5569_v62 = vld [vmem:[#allocation3 + $0x80] ss:$16 sps:$4 sm:$0xff]   ;;  %v1739_v25 = vrot.slane %v1731_v20, %v6482_v49  ;;  %v5633_v20 = vld [vmem:[#allocation3 + $0x1e4] ss:$16 sps:$4 sm:$0xff]  }
 0x19d   : > { %v1053_v38 = vpack.c.bf16 %v899_v12, %v895_v63  ;;  %v2140_v32 = vadd.bf16 %v5255_v22, %v1052_v54  ;;  %v2137_v63 = vadd.bf16 %v5253_v7, %v1049_v3  ;;  %v1007_v6 = vpop.f32.mrf.mxu1  ;;  %v5557_v54 = vld [vmem:[#allocation3 + $0x40] ss:$16 sps:$4 sm:$0xff]   ;;  %v5561_v12 = vld [vmem:[#allocation3 + $0x64] ss:$16 sps:$4 sm:$0xff]   ;;  %v1070_v7 = vpack.c.bf16 %v6936_v0, %v6900_v13 }
 0x19e   : > { %v5252_v33 = vcombine.low %v1559_v55, %v1571_v19  ;;  %v1074_v18 = vpack.c.bf16 %v1007_v6, %v6989_v46  ;;  %v5563_v3 = vld [vmem:[#allocation3 + $0x60] ss:$16 sps:$4 sm:$0xff]   ;;  %v5573_v55 = vld [vmem:[#allocation3 + $0xa4] ss:$16 sps:$4 sm:$0xff]  }
 0x19f   : > { %v2141_v40 = vadd.bf16 %v5255_v22, %v1053_v38  ;;  %v2204_v51 = vmax.bf16 %v8065_v23, %v2140_v32  ;;  %v2201_v45 = vmax.bf16 %v8065_v23, %v2137_v63  ;;  %v1009_v22 = vpop.f32.mrf.mxu1  ;;  %v2197_v32 = vmax.bf16 %v8065_v23, %v2133_v10  ;;  %v8098_v19 = vld [vmem:[#allocation26_spill] sm:$0xff] }
 0x1a0   : > { %v2135_v1 = vadd.bf16 %v5252_v33, %v1047_v26  ;;  %v2134_v36 = vadd.bf16 %v5252_v33, %v1046_v39  ;;  %v1075_v24 = vpack.c.bf16 %v1009_v22, %v1005_v61  ;;  %v2162_v46 = vadd.bf16 %v8096_v37, %v1074_v18  ;;  %v5575_v6 = vld [vmem:[#allocation3 + $0xa0] ss:$16 sps:$4 sm:$0xff]   ;;  %v5579_v33 = vld [vmem:[#allocation3 + $0xc4] ss:$16 sps:$4 sm:$0xff]  }
 0x1a1   : > { %v2205_v2 = vmax.bf16 %v8065_v23, %v2141_v40  ;;  %v1072_v40 = vpack.c.bf16 %v6976_v9, %v6962_v42  ;;  %v1071_v61 = vpack.c.bf16 %v6950_v28, %v6916_v21  ;;  %v2158_v13 = vadd.bf16 %v8098_v19, %v1070_v7  ;;  %v8101_v39 = vld [vmem:[#allocation40_spill] sm:$0xff]  ;;  %v5585_v18 = vld [vmem:[#allocation3 + $0xe4] ss:$16 sps:$4 sm:$0xff]  }
 0x1a2   : > { %v2199_v11 = vmax.bf16 %v8065_v23, %v2135_v1  ;;  %v2198_v38 = vmax.bf16 %v8065_v23, %v2134_v36  ;;  %v2163_v56 = vadd.bf16 %v8096_v37, %v1075_v24  ;;  %v2226_v9 = vmax.bf16 %v8065_v23, %v2162_v46  ;;  %v8110_v46 = vld [vmem:[#allocation37_spill] sm:$0xff] }
 0x1a3   : > { %3355 = vmatprep.subr.bf16.mxu0 %v2205_v2  ;;  %3039 = vmatmul.mubr.bf16.gmra.mxu1 %v5551_v5  ;;  %v2196_v5 = vmax.bf16 %v8065_v23, %v2132_v44  ;;  %v2159_v21 = vadd.bf16 %v8098_v19, %v1071_v61  ;;  %v1068_v2 = vpack.c.bf16 %v6877_v41, %v6865_v30  ;;  %v8106_v44 = vld [vmem:[#allocation41_spill] sm:$0xff]  ;;  %v5596_v19 = vld [vmem:[#allocation3 + $0x100] ss:$16 sps:$4 sm:$0xff]  }
 0x1a4   : > { %3356 = vmatpush1.bf16.msra.mxu0 %v2204_v51  ;;  %3048 = vmatprep.mubr.bf16.mxu1 %v5555_v27  ;;  %v8097_v27 = vld [vmem:[#allocation23_spill] sm:$0xff]  ;;  %v2227_v60 = vmax.bf16 %v8065_v23, %v2163_v56  ;;  %v1066_v51 = vpack.c.bf16 %v6861_v35, %v6855_v59  ;;  %v2222_v41 = vmax.bf16 %v8065_v23, %v2158_v13  ;;  %v8102_v59 = vld [vmem:[#allocation42_spill] sm:$0xff] }
 0x1a5   : > { %3357 = vmatprep.subr.bf16.mxu0 %v2203_v14  ;;  %v2161_v48 = vadd.bf16 %v8097_v27, %v1073_v17  ;;  %v2160_v42 = vadd.bf16 %v8097_v27, %v1072_v40  ;;  %v2223_v29 = vmax.bf16 %v8065_v23, %v2159_v21  ;;  %v2156_v30 = vadd.bf16 %v8099_v52, %v1068_v2  ;;  %v8109_v56 = vld [vmem:[#allocation43_spill] sm:$0xff] }
 0x1a6   : > { %v1763_v26 = vrot.slane %v6924_v43, %v6482_v49  ;;  %v2155_v63 = vadd.bf16 %v8100_v15, %v1067_v58  ;;  %v2221_v14 = vmax.bf16 %v8065_v23, %v2157_v31  ;;  %v1063_v35 = vpack.c.bf16 %v8102_v59, %v8101_v39  ;;  %v5591_v7 = vld [vmem:[#allocation3 + $0x104] ss:$16 sps:$4 sm:$0xff]   ;;  %v5560_v13 = vld [vmem:[#allocation3 + $0x48] ss:$16 sps:$4 sm:$0xff]   ;;  %v5608_v58 = vld [vmem:[#allocation3 + $0x140] ss:$16 sps:$4 sm:$0xff]  }
 0x1a7   : > { %v2225_v28 = vmax.bf16 %v8065_v23, %v2161_v48  ;;  %v2224_v0 = vmax.bf16 %v8065_v23, %v2160_v42  ;;  %v2154_v8 = vadd.bf16 %v8100_v15, %v1066_v51  ;;  %v2220_v43 = vmax.bf16 %v8065_v23, %v2156_v30  ;;  %v5597_v21 = vld [vmem:[#allocation3 + $0x124] ss:$16 sps:$4 sm:$0xff]   ;;  %v5566_v31 = vld [vmem:[#allocation3 + $0x68] ss:$16 sps:$4 sm:$0xff]   ;;  %v5614_v51 = vld [vmem:[#allocation3 + $0x160] ss:$16 sps:$4 sm:$0xff]  }
 0x1a8   : > { %3358 = vmatpush1.bf16.msra.mxu0 %v2202_v4  ;;  %v1719_v4 = vpop.permute.xlu0 %1718  ;;  %v5260_v1 = vcombine.low %v1751_v47, %v1763_v26  ;;  %v2217_v10 = vmax.bf16 %v8065_v23, %v8105_v34  ;;  %v5603_v2 = vld [vmem:[#allocation3 + $0x144] ss:$16 sps:$4 sm:$0xff]   ;;  %v5576_v26 = vld [vmem:[#allocation3 + $0xac] ss:$16 sps:$4 sm:$0xff]   ;;  %v5620_v47 = vld [vmem:[#allocation3 + $0x180] ss:$16 sps:$4 sm:$0xff]  }
 0x1a9   : > { %3359 = vmatprep.subr.bf16.mxu0 %v2201_v45  ;;  %v1727_v45 = vrot.slane %v1719_v4, %v6482_v49  ;;  %v2218_v22 = vmax.bf16 %v8065_v23, %v2154_v8  ;;  %v5609_v52 = vld [vmem:[#allocation3 + $0x164] ss:$16 sps:$4 sm:$0xff]   ;;  %v5584_v39 = vld [vmem:[#allocation3 + $0xc8] ss:$16 sps:$4 sm:$0xff]   ;;  %v5590_v59 = vld [vmem:[#allocation3 + $0xec] ss:$16 sps:$4 sm:$0xff]  }
 0x1aa   : > { %v5615_v30 = vld [vmem:[#allocation3 + $0x184] ss:$16 sps:$4 sm:$0xff]   ;;  %v5588_v4 = vld [vmem:[#allocation3 + $0xe8] ss:$16 sps:$4 sm:$0xff]   ;;  %v5595_v8 = vld [vmem:[#allocation3 + $0x10c] ss:$16 sps:$4 sm:$0xff]  }
 0x1ab   : > { %3049 = vmatmul.mubr.bf16.gmra.mxu1 %v5557_v54  ;;  %v2219_v54 = vmax.bf16 %v8065_v23, %v2155_v63  ;;  %v5259_v24 = vcombine.low %v1727_v45, %v1739_v25  ;;  %v5621_v15 = vld [vmem:[#allocation3 + $0x1a4] ss:$16 sps:$4 sm:$0xff]   ;;  %v5578_v63 = vld [vmem:[#allocation3 + $0xa8] ss:$16 sps:$4 sm:$0xff]   ;;  %v5601_v45 = vld [vmem:[#allocation3 + $0x12c] ss:$16 sps:$4 sm:$0xff]  }
 0x1ac   : > { %3360 = vmatpush1.bf16.msra.mxu0 %v2200_v53  ;;  %3058 = vmatprep.mubr.bf16.mxu1 %v5561_v12  ;;  %v8103_v12 = vld [vmem:[#allocation36_spill] sm:$0xff]  ;;  %v2151_v53 = vadd.bf16 %v5260_v1, %v1063_v35  ;;  %v5593_v25 = vld [vmem:[#allocation3 + $0x108] ss:$16 sps:$4 sm:$0xff]  }
 0x1ad   : > { %3361 = vmatprep.subr.bf16.mxu0 %v2199_v11  ;;  %v1061_v36 = vpack.c.bf16 %v8104_v16, %v8103_v12  ;;  %v5581_v11 = vld [vmem:[#allocation3 + $0xc0] ss:$16 sps:$4 sm:$0xff]   ;;  %v5599_v12 = vld [vmem:[#allocation3 + $0x128] ss:$16 sps:$4 sm:$0xff]   ;;  %v5607_v16 = vld [vmem:[#allocation3 + $0x14c] ss:$16 sps:$4 sm:$0xff]  }
 0x1ae   : > { %v5632_v35 = vld [vmem:[#allocation3 + $0x1c0] ss:$16 sps:$4 sm:$0xff]   ;;  %v5613_v34 = vld [vmem:[#allocation3 + $0x16c] ss:$16 sps:$4 sm:$0xff]  }
 0x1b0   : > { %3362 = vmatpush1.bf16.msra.mxu0 %v2198_v38  ;;  %v8107_v38 = vld [vmem:[#allocation39_spill] sm:$0xff] }
 0x1b1   : > { %3363 = vmatprep.subr.bf16.mxu0 %v2197_v32  ;;  %v8108_v17 = vpack.c.bf16 %v8106_v44, %v8107_v38  ;;  %v2216_v32 = vmax.bf16 %v8065_v23, %v8109_v56  ;;  %v5619_v44 = vld [vmem:[#allocation3 + $0x18c] ss:$16 sps:$4 sm:$0xff]   ;;  %v5657_v38 = vld [vmem:[#allocation3 + $0x260] ss:$16 sps:$4 sm:$0xff]  }
 0x1b2   : > { %v5625_v56 = vld [vmem:[#allocation3 + $0x1ac] ss:$16 sps:$4 sm:$0xff]  }
 0x1b3   : > { %3059 = vmatmul.mubr.bf16.gmra.mxu1 %v5563_v3  ;;  %v2150_v37 = vadd.bf16 %v5260_v1, %v8108_v17  ;;  %v2149_v3 = vadd.bf16 %v5259_v24, %v1061_v36  ;;  %v5639_v1 = vld [vmem:[#allocation3 + $0x204] ss:$16 sps:$4 sm:$0xff]   ;;  %v5645_v36 = vld [vmem:[#allocation3 + $0x220] ss:$16 sps:$4 sm:$0xff]  }
 0x1b4   : > { %3364 = vmatpush1.bf16.msra.mxu0 %v2196_v5  ;;  %3068 = vmatprep.mubr.bf16.mxu1 %v5567_v57  ;;  %v2215_v57 = vmax.bf16 %v8065_v23, %v2151_v53  ;;  %v8111_v5 = vld [vmem:[#allocation32_spill] sm:$0xff]  ;;  %v5653_v53 = vld [vmem:[#allocation3 + $0x244] ss:$16 sps:$4 sm:$0xff]  }
 0x1b5   : > { %3365 = vmatprep.subr.bf16.mxu0 %v2227_v60  ;;  %v2214_v40 = vmax.bf16 %v8065_v23, %v2150_v37  ;;  %v8112_v61 = vpack.c.bf16 %v8110_v46, %v8111_v5  ;;  %v2213_v48 = vmax.bf16 %v8065_v23, %v2149_v3  ;;  %v5587_v60 = vld [vmem:[#allocation3 + $0xe0] ss:$16 sps:$4 sm:$0xff]   ;;  %v5665_v17 = vld [vmem:[#allocation3 + $0x284] ss:$16 sps:$4 sm:$0xff]   ;;  %v5617_v37 = vld [vmem:[#allocation3 + $0x188] ss:$16 sps:$4 sm:$0xff]  }
 0x1b6   : > { %v5671_v3 = vld [vmem:[#allocation3 + $0x2a4] ss:$16 sps:$4 sm:$0xff]   ;;  %v5669_v46 = vld [vmem:[#allocation3 + $0x2a0] ss:$16 sps:$4 sm:$0xff]  }
 0x1b7   : > { %v2148_v27 = vadd.bf16 %v5259_v24, %v8112_v61  ;;  %v5605_v24 = vld [vmem:[#allocation3 + $0x148] ss:$16 sps:$4 sm:$0xff]   ;;  %v5677_v5 = vld [vmem:[#allocation3 + $0x2c4] ss:$16 sps:$4 sm:$0xff]  }
 0x1b8   : > { %3366 = vmatpush2.bf16.msra.mxu0 %v2226_v9  ;;  %v5546_v9 = vld [vmem:[#allocation3 + $0x8] ss:$16 sps:$4 sm:$0xff]  }
 0x1b9   : > { %3367 = vmatprep.subr.bf16.mxu0 %v2225_v28  ;;  %v2212_v42 = vmax.bf16 %v8065_v23, %v2148_v27  ;;  %v5554_v28 = vld [vmem:[#allocation3 + $0x28] ss:$16 sps:$4 sm:$0xff]   ;;  %v5637_v27 = vld [vmem:[#allocation3 + $0x1ec] ss:$16 sps:$4 sm:$0xff]  }
 0x1ba   : > { %v5629_v61 = vld [vmem:[#allocation3 + $0x1c8] ss:$16 sps:$4 sm:$0xff]  }
 0x1bb   : > { %3069 = vmatmul.mubr.bf16.gmra.mxu1 %v5569_v62  ;;  %v5558_v62 = vld [vmem:[#allocation3 + $0x4c] ss:$16 sps:$4 sm:$0xff]  }
 0x1bc   : > { %3368 = vmatpush2.bf16.msra.mxu0 %v2224_v0  ;;  %3078 = vmatprep.mubr.bf16.mxu1 %v5573_v55  ;;  %v5602_v55 = vld [vmem:[#allocation3 + $0x120] ss:$16 sps:$4 sm:$0xff]   ;;  %v5564_v0 = vld [vmem:[#allocation3 + $0x6c] ss:$16 sps:$4 sm:$0xff]  }
 0x1bd   : > { %3369 = vmatprep.subr.bf16.mxu0 %v2223_v29  ;;  %v5570_v29 = vld [vmem:[#allocation3 + $0x8c] ss:$16 sps:$4 sm:$0xff]  }
 0x1c0   : > { %3370 = vmatpush2.bf16.msra.mxu0 %v2222_v41  ;;  %v5572_v41 = vld [vmem:[#allocation3 + $0x88] ss:$16 sps:$4 sm:$0xff]  }
 0x1c1   : > { %3371 = vmatprep.subr.bf16.mxu0 %v2221_v14  ;;  %v5582_v14 = vld [vmem:[#allocation3 + $0xcc] ss:$16 sps:$4 sm:$0xff]  }
 0x1c3   : > { %3079 = vmatmul.mubr.bf16.gmra.mxu1 %v5575_v6  ;;  %v5626_v6 = vld [vmem:[#allocation3 + $0x1a0] ss:$16 sps:$4 sm:$0xff]  }
 0x1c4   : > { %3372 = vmatpush2.bf16.msra.mxu0 %v2220_v43  ;;  %3088 = vmatprep.mubr.bf16.mxu1 %v5579_v33  ;;  %v5627_v33 = vld [vmem:[#allocation3 + $0x1c4] ss:$16 sps:$4 sm:$0xff]   ;;  %v5638_v43 = vld [vmem:[#allocation3 + $0x1e0] ss:$16 sps:$4 sm:$0xff]  }
 0x1c5   : > { %3373 = vmatprep.subr.bf16.mxu0 %v2219_v54  ;;  %v5644_v54 = vld [vmem:[#allocation3 + $0x200] ss:$16 sps:$4 sm:$0xff]  }
 0x1c8   : > { %3374 = vmatpush2.bf16.msra.mxu0 %v2218_v22  ;;  %v5647_v22 = vld [vmem:[#allocation3 + $0x224] ss:$16 sps:$4 sm:$0xff]  }
 0x1c9   : > { %3375 = vmatprep.subr.bf16.mxu0 %v2217_v10  ;;  %v5651_v10 = vld [vmem:[#allocation3 + $0x240] ss:$16 sps:$4 sm:$0xff]  }
 0x1cb   : > { %3089 = vmatmul.mubr.bf16.gmra.mxu1 %v5581_v11  ;;  %v5659_v11 = vld [vmem:[#allocation3 + $0x264] ss:$16 sps:$4 sm:$0xff]  }
 0x1cc   : > { %3376 = vmatpush2.bf16.msra.mxu0 %v2216_v32  ;;  %3098 = vmatprep.mubr.bf16.mxu1 %v5585_v18  ;;  %v5611_v18 = vld [vmem:[#allocation3 + $0x168] ss:$16 sps:$4 sm:$0xff]   ;;  %v5663_v32 = vld [vmem:[#allocation3 + $0x280] ss:$16 sps:$4 sm:$0xff]  }
 0x1cd   : > { %3377 = vmatprep.subr.bf16.mxu0 %v2215_v57  ;;  %v5623_v57 = vld [vmem:[#allocation3 + $0x1a8] ss:$16 sps:$4 sm:$0xff]  }
 0x1d0   : > { %3378 = vmatpush2.bf16.msra.mxu0 %v2214_v40  ;;  %v5631_v40 = vld [vmem:[#allocation3 + $0x1cc] ss:$16 sps:$4 sm:$0xff]  }
 0x1d1   : > { %3379 = vmatprep.subr.bf16.mxu0 %v2213_v48  ;;  %v5675_v48 = vld [vmem:[#allocation3 + $0x2c0] ss:$16 sps:$4 sm:$0xff]  }
 0x1d3   : > { %3099 = vmatmul.mubr.bf16.gmra.mxu1 %v5587_v60  ;;  %v5683_v60 = vld [vmem:[#allocation3 + $0x2e4] ss:$16 sps:$4 sm:$0xff]  }
 0x1d4   : > { %3380 = vmatpush2.bf16.msra.mxu0 %v2212_v42  ;;  %3108 = vmatprep.mubr.bf16.mxu1 %v5591_v7  ;;  %v5635_v7 = vld [vmem:[#allocation3 + $0x1e8] ss:$16 sps:$4 sm:$0xff]   ;;  %v5643_v42 = vld [vmem:[#allocation3 + $0x20c] ss:$16 sps:$4 sm:$0xff]  }
 0x1d7   : > { %3382 = vmatmul.mubr.bf16.vlgmr.msra.gmra.mxu0 %v5546_v9  ;;  %v5681_v9 = vld [vmem:[#allocation3 + $0x2e0] ss:$16 sps:$4 sm:$0xff]  }
 0x1d8   : > { %3391 = vmatprep.mubr.bf16.mxu0 %v5552_v50  ;;  %v5689_v50 = vld [vmem:[#allocation3 + $0x304] ss:$16 sps:$4 sm:$0xff]  }
 0x1db   : > { %3109 = vmatmul.mubr.bf16.gmra.mxu1 %v5596_v19  ;;  %v5641_v19 = vld [vmem:[#allocation3 + $0x208] ss:$16 sps:$4 sm:$0xff]  }
 0x1dc   : > { %3118 = vmatprep.mubr.bf16.mxu1 %v5597_v21  ;;  %v5650_v21 = vld [vmem:[#allocation3 + $0x22c] ss:$16 sps:$4 sm:$0xff]  }
 0x1df   : > { %3392 = vmatmul.mubr.bf16.gmra.mxu0 %v5554_v28  ;;  %v5687_v28 = vld [vmem:[#allocation3 + $0x300] ss:$16 sps:$4 sm:$0xff]  }
 0x1e0   : > { %3401 = vmatprep.mubr.bf16.mxu0 %v5558_v62  ;;  %v5695_v62 = vld [vmem:[#allocation3 + $0x324] ss:$16 sps:$4 sm:$0xff]  }
 0x1e3   : > { %3119 = vmatmul.mubr.bf16.gmra.mxu1 %v5602_v55  ;;  %v5648_v55 = vld [vmem:[#allocation3 + $0x228] ss:$16 sps:$4 sm:$0xff]  }
 0x1e4   : > { %3128 = vmatprep.mubr.bf16.mxu1 %v5603_v2 }
 0x1e7   : > { %3402 = vmatmul.mubr.bf16.gmra.mxu0 %v5560_v13  ;;  %v5656_v13 = vld [vmem:[#allocation3 + $0x24c] ss:$16 sps:$4 sm:$0xff]  }
 0x1e8   : > { %3411 = vmatprep.mubr.bf16.mxu0 %v5564_v0 }
 0x1eb   : > { %3129 = vmatmul.mubr.bf16.gmra.mxu1 %v5608_v58 }
 0x1ec   : > { %3138 = vmatprep.mubr.bf16.mxu1 %v5609_v52  ;;  %v5693_v52 = vld [vmem:[#allocation3 + $0x320] ss:$16 sps:$4 sm:$0xff]  }
 0x1ef   : > { %3412 = vmatmul.mubr.bf16.gmra.mxu0 %v5566_v31  ;;  %v5701_v31 = vld [vmem:[#allocation3 + $0x344] ss:$16 sps:$4 sm:$0xff]  }
 0x1f0   : > { %3421 = vmatprep.mubr.bf16.mxu0 %v5570_v29 }
 0x1f3   : > { %3139 = vmatmul.mubr.bf16.gmra.mxu1 %v5614_v51  ;;  %v5654_v51 = vld [vmem:[#allocation3 + $0x248] ss:$16 sps:$4 sm:$0xff]  }
 0x1f4   : > { %3148 = vmatprep.mubr.bf16.mxu1 %v5615_v30 }
 0x1f7   : > { %3422 = vmatmul.mubr.bf16.gmra.mxu0 %v5572_v41  ;;  %v5662_v41 = vld [vmem:[#allocation3 + $0x26c] ss:$16 sps:$4 sm:$0xff]  }
 0x1f8   : > { %3431 = vmatprep.mubr.bf16.mxu0 %v5576_v26 }
 0x1fb   : > { %3149 = vmatmul.mubr.bf16.gmra.mxu1 %v5620_v47 }
 0x1fc   : > { %3158 = vmatprep.mubr.bf16.mxu1 %v5621_v15  ;;  %v5699_v15 = vld [vmem:[#allocation3 + $0x340] ss:$16 sps:$4 sm:$0xff]  }
 0x1ff   : > { %3432 = vmatmul.mubr.bf16.gmra.mxu0 %v5578_v63  ;;  %v5707_v63 = vld [vmem:[#allocation3 + $0x364] ss:$16 sps:$4 sm:$0xff]  }
 0x200   : > { %3441 = vmatprep.mubr.bf16.mxu0 %v5582_v14 }
 0x203   : > { %3159 = vmatmul.mubr.bf16.gmra.mxu1 %v5626_v6  ;;  %v5660_v6 = vld [vmem:[#allocation3 + $0x268] ss:$16 sps:$4 sm:$0xff]  }
 0x204   : > { %3168 = vmatprep.mubr.bf16.mxu1 %v5627_v33 }
 0x207   : > { %3442 = vmatmul.mubr.bf16.gmra.mxu0 %v5584_v39  ;;  %v5668_v39 = vld [vmem:[#allocation3 + $0x28c] ss:$16 sps:$4 sm:$0xff]  }
 0x208   : > { %3451 = vmatprep.mubr.bf16.mxu0 %v5590_v59 }
 0x20b   : > { %3169 = vmatmul.mubr.bf16.gmra.mxu1 %v5632_v35 }
 0x20c   : > { %3178 = vmatprep.mubr.bf16.mxu1 %v5633_v20  ;;  %v5705_v20 = vld [vmem:[#allocation3 + $0x360] ss:$16 sps:$4 sm:$0xff]  }
 0x20f   : > { %3452 = vmatmul.mubr.bf16.gmra.mxu0 %v5588_v4  ;;  %v5713_v4 = vld [vmem:[#allocation3 + $0x384] ss:$16 sps:$4 sm:$0xff]  }
 0x210   : > { %3461 = vmatprep.mubr.bf16.mxu0 %v5595_v8 }
 0x213   : > { %3179 = vmatmul.mubr.bf16.gmra.mxu1 %v5638_v43  ;;  %v5666_v43 = vld [vmem:[#allocation3 + $0x288] ss:$16 sps:$4 sm:$0xff]  }
 0x214   : > { %3188 = vmatprep.mubr.bf16.mxu1 %v5639_v1 }
 0x217   : > { %3462 = vmatmul.mubr.bf16.gmra.mxu0 %v5593_v25  ;;  %v5674_v25 = vld [vmem:[#allocation3 + $0x2ac] ss:$16 sps:$4 sm:$0xff]  }
 0x218   : > { %3471 = vmatprep.mubr.bf16.mxu0 %v5601_v45 }
 0x21b   : > { %3189 = vmatmul.mubr.bf16.gmra.mxu1 %v5644_v54 }
 0x21c   : > { %3198 = vmatprep.mubr.bf16.mxu1 %v5647_v22  ;;  %v5711_v22 = vld [vmem:[#allocation3 + $0x380] ss:$16 sps:$4 sm:$0xff]  }
 0x21f   : > { %3472 = vmatmul.mubr.bf16.gmra.mxu0 %v5599_v12  ;;  %v5719_v12 = vld [vmem:[#allocation3 + $0x3a4] ss:$16 sps:$4 sm:$0xff]  }
 0x220   : > { %3481 = vmatprep.mubr.bf16.mxu0 %v5607_v16 }
 0x223   : > { %3199 = vmatmul.mubr.bf16.gmra.mxu1 %v5645_v36  ;;  %v5672_v36 = vld [vmem:[#allocation3 + $0x2a8] ss:$16 sps:$4 sm:$0xff]  }
 0x224   : > { %3208 = vmatprep.mubr.bf16.mxu1 %v5653_v53 }
 0x227   : > { %3482 = vmatmul.mubr.bf16.gmra.mxu0 %v5605_v24  ;;  %v5680_v24 = vld [vmem:[#allocation3 + $0x2cc] ss:$16 sps:$4 sm:$0xff]  }
 0x228   : > { %3491 = vmatprep.mubr.bf16.mxu0 %v5613_v34 }
 0x22b   : > { %3209 = vmatmul.mubr.bf16.gmra.mxu1 %v5651_v10 }
 0x22c   : > { %3218 = vmatprep.mubr.bf16.mxu1 %v5659_v11  ;;  %v5717_v11 = vld [vmem:[#allocation3 + $0x3a0] ss:$16 sps:$4 sm:$0xff]  }
 0x22f   : > { %3492 = vmatmul.mubr.bf16.gmra.mxu0 %v5611_v18  ;;  %v5725_v18 = vld [vmem:[#allocation3 + $0x3c4] ss:$16 sps:$4 sm:$0xff]  }
 0x230   : > { %3501 = vmatprep.mubr.bf16.mxu0 %v5619_v44 }
 0x233   : > { %3219 = vmatmul.mubr.bf16.gmra.mxu1 %v5657_v38  ;;  %v5678_v38 = vld [vmem:[#allocation3 + $0x2c8] ss:$16 sps:$4 sm:$0xff]  }
 0x234   : > { %3228 = vmatprep.mubr.bf16.mxu1 %v5665_v17 }
 0x237   : > { %3502 = vmatmul.mubr.bf16.gmra.mxu0 %v5617_v37  ;;  %v5686_v37 = vld [vmem:[#allocation3 + $0x2ec] ss:$16 sps:$4 sm:$0xff]  }
 0x238   : > { %3511 = vmatprep.mubr.bf16.mxu0 %v5625_v56 }
 0x23b   : > { %3229 = vmatmul.mubr.bf16.gmra.mxu1 %v5663_v32 }
 0x23c   : > { %3238 = vmatprep.mubr.bf16.mxu1 %v5671_v3  ;;  %v5723_v3 = vld [vmem:[#allocation3 + $0x3c0] ss:$16 sps:$4 sm:$0xff]  }
 0x23f   : > { %3512 = vmatmul.mubr.bf16.gmra.mxu0 %v5623_v57  ;;  %v5731_v57 = vld [vmem:[#allocation3 + $0x3e4] ss:$16 sps:$4 sm:$0xff]  }
 0x240   : > { %3521 = vmatprep.mubr.bf16.mxu0 %v5631_v40 }
 0x243   : > { %3239 = vmatmul.mubr.bf16.gmra.mxu1 %v5669_v46  ;;  %v5684_v46 = vld [vmem:[#allocation3 + $0x2e8] ss:$16 sps:$4 sm:$0xff]  }
 0x244   : > { %3248 = vmatprep.mubr.bf16.mxu1 %v5677_v5 }
 0x247   : > { %3522 = vmatmul.mubr.bf16.gmra.mxu0 %v5629_v61  ;;  %v5692_v61 = vld [vmem:[#allocation3 + $0x30c] ss:$16 sps:$4 sm:$0xff]  }
 0x248   : > { %3531 = vmatprep.mubr.bf16.mxu0 %v5637_v27 }
 0x24b   : > { %3249 = vmatmul.mubr.bf16.gmra.mxu1 %v5675_v48 }
 0x24c   : > { %3258 = vmatprep.mubr.bf16.mxu1 %v5683_v60  ;;  %v5729_v60 = vld [vmem:[#allocation3 + $0x3e0] ss:$16 sps:$4 sm:$0xff]  }
 0x24f   : > { %3532 = vmatmul.mubr.bf16.gmra.mxu0 %v5635_v7 }
 0x250   : > { %3541 = vmatprep.mubr.bf16.mxu0 %v5643_v42  ;;  %v5690_v42 = vld [vmem:[#allocation3 + $0x308] ss:$16 sps:$4 sm:$0xff]  }
 0x253   : > { %3259 = vmatmul.mubr.bf16.gmra.mxu1 %v5681_v9 }
 0x254   : > { %3268 = vmatprep.mubr.bf16.mxu1 %v5689_v50  ;;  %v5698_v50 = vld [vmem:[#allocation3 + $0x32c] ss:$16 sps:$4 sm:$0xff]  }
 0x257   : > { %3542 = vmatmul.mubr.bf16.gmra.mxu0 %v5641_v19 }
 0x258   : > { %3551 = vmatprep.mubr.bf16.mxu0 %v5650_v21 }
 0x25b   : > { %v7083_v2 = vpop.f32.mrf.mxu1  ;;  %3269 = vmatmul.mubr.bf16.gmra.mxu1 %v5687_v28 }
 0x25c   : > { %3278 = vmatprep.mubr.bf16.mxu1 %v5695_v62 }
 0x25d   : > { %v7085_v0 = vpop.f32.mrf.mxu1 }
 0x25f   : > { %3552 = vmatmul.mubr.bf16.gmra.mxu0 %v5648_v55  ;;  %v7087_v58 = vpop.f32.mrf.mxu1 }
 0x260   : > { %3561 = vmatprep.mubr.bf16.mxu0 %v5656_v13 }
 0x261   : > { %v7089_v29 = vpop.f32.mrf.mxu1 }
 0x263   : > { %v7091_v30 = vpop.f32.mrf.mxu1  ;;  %3279 = vmatmul.mubr.bf16.gmra.mxu1 %v5693_v52 }
 0x264   : > { %3288 = vmatprep.mubr.bf16.mxu1 %v5701_v31 }
 0x265   : > { %v7093_v26 = vpop.f32.mrf.mxu1 }
 0x267   : > { %3562 = vmatmul.mubr.bf16.gmra.mxu0 %v5654_v51  ;;  %v7095_v47 = vpop.f32.mrf.mxu1  ;;  %v5696_v51 = vld [vmem:[#allocation3 + $0x328] ss:$16 sps:$4 sm:$0xff]  }
 0x268   : > { %3571 = vmatprep.mubr.bf16.mxu0 %v5662_v41 }
 0x269   : > { %v7097_v14 = vpop.f32.mrf.mxu1 }
 0x26b   : > { %v7099_v33 = vpop.f32.mrf.mxu1  ;;  %3289 = vmatmul.mubr.bf16.gmra.mxu1 %v5699_v15 }
 0x26c   : > { %3298 = vmatprep.mubr.bf16.mxu1 %v5707_v63  ;;  %v5704_v63 = vld [vmem:[#allocation3 + $0x34c] ss:$16 sps:$4 sm:$0xff]  }
 0x26d   : > { %v7101_v59 = vpop.f32.mrf.mxu1 }
 0x26f   : > { %3572 = vmatmul.mubr.bf16.gmra.mxu0 %v5660_v6  ;;  %v7103_v35 = vpop.f32.mrf.mxu1 }
 0x270   : > { %3581 = vmatprep.mubr.bf16.mxu0 %v5668_v39 }
 0x271   : > { %v7105_v8 = vpop.f32.mrf.mxu1 }
 0x273   : > { %v7107_v1 = vpop.f32.mrf.mxu1  ;;  %3299 = vmatmul.mubr.bf16.gmra.mxu1 %v5705_v20 }
 0x274   : > { %3308 = vmatprep.mubr.bf16.mxu1 %v5713_v4 }
 0x275   : > { %v7109_v45 = vpop.f32.mrf.mxu1 }
 0x277   : > { %3582 = vmatmul.mubr.bf16.gmra.mxu0 %v5666_v43  ;;  %v7111_v54 = vpop.f32.mrf.mxu1 }
 0x278   : > { %3591 = vmatprep.mubr.bf16.mxu0 %v5674_v25 }
 0x279   : > { %v7113_v16 = vpop.f32.mrf.mxu1 }
 0x27b   : > { %v7115_v53 = vpop.f32.mrf.mxu1  ;;  %3309 = vmatmul.mubr.bf16.gmra.mxu1 %v5711_v22 }
 0x27c   : > { %3318 = vmatprep.mubr.bf16.mxu1 %v5719_v12 }
 0x27d   : > { %v7117_v34 = vpop.f32.mrf.mxu1 }
 0x27f   : > { %3592 = vmatmul.mubr.bf16.gmra.mxu0 %v5672_v36  ;;  %v7119_v10 = vpop.f32.mrf.mxu1 }
 0x280   : > { %3601 = vmatprep.mubr.bf16.mxu0 %v5680_v24 }
 0x281   : > { %v7121_v44 = vpop.f32.mrf.mxu1 }
 0x283   : > { %v7123_v17 = vpop.f32.mrf.mxu1  ;;  %3319 = vmatmul.mubr.bf16.gmra.mxu1 %v5717_v11 }
 0x284   : > { %3328 = vmatprep.mubr.bf16.mxu1 %v5725_v18  ;;  %v5710_v18 = vld [vmem:[#allocation3 + $0x36c] ss:$16 sps:$4 sm:$0xff]  }
 0x285   : > { %v7125_v56 = vpop.f32.mrf.mxu1 }
 0x287   : > { %3602 = vmatmul.mubr.bf16.gmra.mxu0 %v5678_v38  ;;  %v7127_v32 = vpop.f32.mrf.mxu1 }
 0x288   : > { %3611 = vmatprep.mubr.bf16.mxu0 %v5686_v37 }
 0x289   : > { %v7129_v40 = vpop.f32.mrf.mxu1 }
 0x28b   : > { %v7131_v5 = vpop.f32.mrf.mxu1  ;;  %3329 = vmatmul.mubr.bf16.gmra.mxu1 %v5723_v3 }
 0x28c   : > { %3338 = vmatprep.mubr.bf16.mxu1 %v5731_v57 }
 0x28d   : > { %v7133_v27 = vpop.f32.mrf.mxu1 }
 0x28f   : > { %3612 = vmatmul.mubr.bf16.gmra.mxu0 %v5684_v46  ;;  %v7135_v48 = vpop.f32.mrf.mxu1 }
 0x290   : > { %3621 = vmatprep.mubr.bf16.mxu0 %v5692_v61 }
 0x291   : > { %v7137_v7 = vpop.f32.mrf.mxu1 }
 0x293   : > { %v7139_v9 = vpop.f32.mrf.mxu1  ;;  %3339 = vmatmul.mubr.bf16.gmra.mxu1 %v5729_v60 }
 0x295   : > { %v7141_v19 = vpop.f32.mrf.mxu1 }
 0x297   : > { %v3383_v21 = vpop.f32.mrf.mxu0  ;;  %3622 = vmatmul.mubr.bf16.gmra.mxu0 %v5690_v42  ;;  %v7143_v28 = vpop.f32.mrf.mxu1 }
 0x298   : > { %v7146_v62 = vadd.f32 %v3383_v21, %v7083_v2  ;;  %3631 = vmatprep.mubr.bf16.mxu0 %v5698_v50  ;;  %v5708_v50 = vld [vmem:[#allocation3 + $0x368] ss:$16 sps:$4 sm:$0xff]  }
 0x299   : > { %v3385_v55 = vpop.f32.mrf.mxu0  ;;  %v7148_v13 = vpop.f32.mrf.mxu1 }
 0x29a   : > { %8113 = vst [vmem:[#allocation19_spill] sm:$0xff] %v7146_v62  ;;  %v7151_v52 = vadd.f32 %v3385_v55, %v7085_v0  ;;  %v5716_v55 = vld [vmem:[#allocation3 + $0x38c] ss:$16 sps:$4 sm:$0xff]   ;;  %v5732_v62 = vld [vmem:[#allocation3 + $0x3e8] ss:$16 sps:$4 sm:$0xff]  }
 0x29b   : > { %v3387_v31 = vpop.f32.mrf.mxu0  ;;  %v7153_v41 = vpop.f32.mrf.mxu1 }
 0x29c   : > { %8114 = vst [vmem:[#allocation21_spill] sm:$0xff] %v7151_v52  ;;  %v7156_v15 = vadd.f32 %v3387_v31, %v7087_v58 }
 0x29d   : > { %v3389_v6 = vpop.f32.mrf.mxu0  ;;  %v7158_v39 = vpop.f32.mrf.mxu1 }
 0x29e   : > { %8115 = vst [vmem:[#allocation22_spill] sm:$0xff] %v7156_v15  ;;  %v7163_v20 = vadd.f32 %v3389_v6, %v7089_v29  ;;  %v5702_v29 = vld [vmem:[#allocation3 + $0x348] ss:$16 sps:$4 sm:$0xff]  }
 0x29f   : > { %v3393_v4 = vpop.f32.mrf.mxu0  ;;  %3632 = vmatmul.mubr.bf16.gmra.mxu0 %v5696_v51  ;;  %v7165_v0 = vpop.f32.mrf.mxu1 }
 0x2a0   : > { %8116 = vst [vmem:[#allocation24_spill] sm:$0xff] %v7163_v20  ;;  %v7170_v58 = vadd.f32 %v3393_v4, %v7091_v30  ;;  %3641 = vmatprep.mubr.bf16.mxu0 %v5704_v63 }
 0x2a1   : > { %v3395_v25 = vpop.f32.mrf.mxu0  ;;  %v7172_v22 = vpop.f32.mrf.mxu1 }
 0x2a2   : > { %8117 = vst [vmem:[#allocation25_spill] sm:$0xff] %v7170_v58  ;;  %v7175_v12 = vadd.f32 %v3395_v25, %v7093_v26 }
 0x2a3   : > { %v3397_v36 = vpop.f32.mrf.mxu0  ;;  %v7177_v24 = vpop.f32.mrf.mxu1 }
 0x2a4   : > { %8118 = vst [vmem:[#allocation27_spill] sm:$0xff] %v7175_v12  ;;  %v7180_v11 = vadd.f32 %v3397_v36, %v7095_v47 }
 0x2a5   : > { %v3399_v38 = vpop.f32.mrf.mxu0  ;;  %v7182_v37 = vpop.f32.mrf.mxu1 }
 0x2a6   : > { %8119 = vst [vmem:[#allocation28_spill] sm:$0xff] %v7180_v11  ;;  %v7187_v3 = vadd.f32 %v3399_v38, %v7097_v14 }
 0x2a7   : > { %v3403_v57 = vpop.f32.mrf.mxu0  ;;  %3642 = vmatmul.mubr.bf16.gmra.mxu0 %v5702_v29  ;;  %v7189_v26 = vpop.f32.mrf.mxu1 }
 0x2a8   : > { %8120 = vst [vmem:[#allocation30_spill] sm:$0xff] %v7187_v3  ;;  %v7194_v47 = vadd.f32 %v3403_v57, %v7099_v33  ;;  %3651 = vmatprep.mubr.bf16.mxu0 %v5710_v18 }
 0x2a9   : > { %v3405_v61 = vpop.f32.mrf.mxu0  ;;  %v7196_v60 = vpop.f32.mrf.mxu1 }
 0x2aa   : > { %8121 = vst [vmem:[#allocation31_spill] sm:$0xff] %v7194_v47  ;;  %v7206_v63 = vadd.f32 %v3405_v61, %v7101_v59  ;;  %v5714_v59 = vld [vmem:[#allocation3 + $0x388] ss:$16 sps:$4 sm:$0xff]   ;;  %v5722_v61 = vld [vmem:[#allocation3 + $0x3ac] ss:$16 sps:$4 sm:$0xff]  }
 0x2ab   : > { %v3407_v42 = vpop.f32.mrf.mxu0  ;;  %v7198_v21 = vpop.f32.mrf.mxu1 }
 0x2ac   : > { %v7201_v14 = vadd.f32 %v3407_v42, %v7103_v35  ;;  %8124 = vst [vmem:[#allocation9_spill] sm:$0xff] %v7206_v63  ;;  %v4001_v35 = vpop.permute.xlu0 %4000 }
 0x2ad   : > { %v3409_v31 = vpop.f32.mrf.mxu0  ;;  %v7203_v51 = vpop.f32.mrf.mxu1 }
 0x2ae   : > { %8122 = vst [vmem:[#allocation34_spill] sm:$0xff] %v7201_v14  ;;  %8123 = vst [vmem:[#allocation35_spill] sm:$0xff] %v7203_v51  ;;  %v7211_v6 = vadd.f32 %v3409_v31, %v7105_v8 }
 0x2af   : > { %v3413_v4 = vpop.f32.mrf.mxu0  ;;  %3652 = vmatmul.mubr.bf16.gmra.mxu0 %v5708_v50  ;;  %v7213_v25 = vpop.f32.mrf.mxu1 }
 0x2b0   : > { %8125 = vst [vmem:[#allocation10_spill] sm:$0xff] %v7211_v6  ;;  %8126 = vst [vmem:[#allocation11_spill] sm:$0xff] %v7213_v25  ;;  %3661 = vmatprep.mubr.bf16.mxu0 %v5716_v55  ;;  %v7222_v57 = vadd.f32 %v3413_v4, %v7107_v1 }
 0x2b1   : > { %v3415_v36 = vpop.f32.mrf.mxu0  ;;  %v7217_v29 = vpop.f32.mrf.mxu1 }
 0x2b2   : > { %8127 = vst [vmem:[#allocation12_spill] sm:$0xff] %v7217_v29  ;;  %8129 = vst [vmem:[#allocation14_spill] sm:$0xff] %v7222_v57  ;;  %v7230_v31 = vadd.f32 %v3415_v36, %v7109_v45  ;;  %v5720_v36 = vld [vmem:[#allocation3 + $0x3a8] ss:$16 sps:$4 sm:$0xff]  }
 0x2b3   : > { %v3417_v18 = vpop.f32.mrf.mxu0  ;;  %v7219_v38 = vpop.f32.mrf.mxu1 }
 0x2b4   : > { %8128 = vst [vmem:[#allocation13_spill] sm:$0xff] %v7219_v38  ;;  %v7225_v8 = vadd.f32 %v3417_v18, %v7111_v54  ;;  %v5726_v38 = vld [vmem:[#allocation3 + $0x3c8] ss:$16 sps:$4 sm:$0xff]  }
 0x2b5   : > { %v3419_v42 = vpop.f32.mrf.mxu0  ;;  %v7227_v50 = vpop.f32.mrf.mxu1 }
 0x2b6   : > { %8130 = vst [vmem:[#allocation15_spill] sm:$0xff] %v7227_v50  ;;  %v7235_v2 = vadd.f32 %v3419_v42, %v7113_v16  ;;  %v5728_v16 = vld [vmem:[#allocation3 + $0x3cc] ss:$16 sps:$4 sm:$0xff]  }
 0x2b7   : > { %v7237_v43 = vpop.f32.mrf.mxu0  ;;  %3662 = vmatmul.mubr.bf16.gmra.mxu0 %v5714_v59  ;;  %v7239_v1 = vpop.f32.mrf.mxu1 }
 0x2b8   : > { %8131 = vst [vmem:[#allocation16_spill] sm:$0xff] %v7239_v1  ;;  %3671 = vmatprep.mubr.bf16.mxu0 %v5722_v61  ;;  %v4013_v61 = vpop.permute.xlu1 %4012  ;;  %v5734_v1 = vld [vmem:[#allocation3 + $0x3ec] ss:$16 sps:$4 sm:$0xff]  }
 0x2b9   : > { %v7243_v4 = vpop.f32.mrf.mxu0  ;;  %v7245_v18 = vpop.f32.mrf.mxu1 }
 0x2ba   : > { %8132 = vst [vmem:[#allocation18_spill] sm:$0xff] %v7245_v18  ;;  %v3977_v18 = vpop.permute.xlu0 %3976 }
 0x2bb   : > { %v7247_v45 = vpop.f32.mrf.mxu0  ;;  %v7249_v30 = vpop.f32.mrf.mxu1 }
 0x2bc   : > { %8133 = vst [vmem:[#allocation20_spill] sm:$0xff] %v7249_v30  ;;  %v3989_v30 = vpop.permute.xlu1 %3988 }
 0x2bd   : > { %v7251_v42 = vpop.f32.mrf.mxu0  ;;  %v7253_v46 = vpop.f32.mrf.mxu1 }
 0x2be   : > { %8134 = vst [vmem:[#allocation23_spill] sm:$0xff] %v7253_v46 }
 0x2bf   : > { %v7255_v59 = vpop.f32.mrf.mxu0  ;;  %3672 = vmatmul.mubr.bf16.gmra.mxu0 %v5720_v36  ;;  %v7257_v33 = vpop.f32.mrf.mxu1 }
 0x2c0   : > { %8135 = vst [vmem:[#allocation26_spill] sm:$0xff] %v7257_v33  ;;  %3681 = vmatprep.mubr.bf16.mxu0 %v5728_v16  ;;  %v3965_v52 = vpop.permute.xlu1 %3964 }
 0x2c1   : > { %v3435_v55 = vpop.f32.mrf.mxu0  ;;  %v7259_v54 = vpop.f32.mrf.mxu1 }
 0x2c2   : > { %8136 = vst [vmem:[#allocation29_spill] sm:$0xff] %v7259_v54 }
 0x2c3   : > { %v7261_v25 = vpop.f32.mrf.mxu0  ;;  %v7263_v51 = vpop.f32.mrf.mxu1 }
 0x2c4   : > { %8137 = vst [vmem:[#allocation33_spill] sm:$0xff] %v7263_v51  ;;  %v3953_v51 = vpop.permute.xlu0 %3952  ;;  %v7284_v47 = vpop.permute.xlu1 %3940 }
 0x2c5   : > { %v3439_v50 = vpop.f32.mrf.mxu0  ;;  %v7265_v29 = vpop.f32.mrf.mxu1 }
 0x2c6   : > { %8138 = vst [vmem:[#allocation40_spill] sm:$0xff] %v7265_v29 }
 0x2c7   : > { %v3443_v36 = vpop.f32.mrf.mxu0  ;;  %3682 = vmatmul.mubr.bf16.gmra.mxu0 %v5726_v38  ;;  %v7267_v33 = vpop.f32.mrf.mxu1  ;;  %v4021_v38 = vrot.slane %v4013_v61, %v6482_v49 }
 0x2c8   : > { %8139 = vst [vmem:[#allocation42_spill] sm:$0xff] %v7267_v33  ;;  %3691 = vmatprep.mubr.bf16.mxu0 %v5734_v1  ;;  %v4009_v1 = vrot.slane %v4001_v35, %v6482_v49  ;;  %v3997_v33 = vrot.slane %v3989_v30, %v6482_v49 }
 0x2c9   : > { %v3445_v16 = vpop.f32.mrf.mxu0  ;;  %v7269_v46 = vpop.f32.mrf.mxu1 }
 0x2ca   : > { %8140 = vst [vmem:[#allocation36_spill] sm:$0xff] %v7269_v46  ;;  %v3985_v46 = vrot.slane %v3977_v18, %v6482_v49  ;;  %v3446_v61 = vadd.f32 %v3445_v16, %v7133_v27  ;;  %v5402_v30 = vcombine.low %v4009_v1, %v4021_v38 }
 0x2cb   : > { %v3447_v54 = vpop.f32.mrf.mxu0  ;;  %v7271_v15 = vpop.f32.mrf.mxu1 }
 0x2cc   : > { %8141 = vst [vmem:[#allocation38_spill] sm:$0xff] %v7271_v15  ;;  %v5401_v18 = vcombine.low %v3985_v46, %v3997_v33  ;;  %v3448_v63 = vadd.f32 %v3447_v54, %v7135_v48  ;;  %v7307_v33 = vpop.permute.xlu1 %3916 }
 0x2cd   : > { %v3449_v20 = vpop.f32.mrf.mxu0  ;;  %v7273_v58 = vpop.f32.mrf.mxu1 }
 0x2ce   : > { %8142 = vst [vmem:[#allocation44_spill] sm:$0xff] %v7273_v58  ;;  %v3450_v12 = vadd.f32 %v3449_v20, %v7137_v7  ;;  %v7286_v58 = vpop.permute.xlu0 %3928 }
 0x2cf   : > { %v3453_v29 = vpop.f32.mrf.mxu0  ;;  %3692 = vmatmul.mubr.bf16.gmra.mxu0 %v5732_v62  ;;  %v7275_v11 = vpop.f32.mrf.mxu1  ;;  %v3973_v62 = vrot.slane %v3965_v52, %v6482_v49 }
 0x2d0   : > { %8143 = vst [vmem:[#allocation41_spill] sm:$0xff] %v7275_v11  ;;  %v3961_v11 = vrot.slane %v3953_v51, %v6482_v49  ;;  %v3454_v7 = vadd.f32 %v3453_v29, %v7139_v9  ;;  %v3715_v6 = vpack.c.bf16 %v3450_v12, %v3446_v61  ;;  %v3426_v9 = vadd.f32 %v7243_v4, %v7117_v34 }
 0x2d1   : > { %v3455_v15 = vpop.f32.mrf.mxu0  ;;  %v7282_v3 = vpop.f32.mrf.mxu1  ;;  %v3438_v34 = vadd.f32 %v7261_v25, %v7127_v32  ;;  %v3949_v32 = vrot.slane %v7284_v47, %v6482_v49 }
 0x2d2   : > { %8144 = vst [vmem:[#allocation39_spill] sm:$0xff] %v7282_v3  ;;  %v3440_v3 = vadd.f32 %v3439_v50, %v7129_v40  ;;  %v3456_v51 = vadd.f32 %v3455_v15, %v7141_v19  ;;  %v5400_v46 = vcombine.low %v3961_v11, %v3973_v62  ;;  %v3444_v40 = vadd.f32 %v3443_v36, %v7131_v5  ;;  %v7309_v29 = vpop.permute.xlu0 %3904 }
 0x2d3   : > { %v3457_v35 = vpop.f32.mrf.mxu0  ;;  %v7291_v14 = vpop.f32.mrf.mxu1  ;;  %v3430_v19 = vadd.f32 %v7251_v42, %v7121_v44  ;;  %v4803_v44 = vadd.bf16 %v5401_v18, %v3715_v6  ;;  %v8149_v6 = vld [vmem:[#allocation17_spill] sm:$0xff] }
 0x2d4   : > { %8145 = vst [vmem:[#allocation43_spill] sm:$0xff] %v7291_v14  ;;  %v3458_v20 = vadd.f32 %v3457_v35, %v7143_v28  ;;  %v5848_v14 = vmov 1966171168   ;;  %v3436_v28 = vadd.f32 %v3435_v55, %v7125_v56  ;;  %v3714_v5 = vpack.c.bf16 %v3448_v63, %v3444_v40 }
 0x2d5   : > { %v3459_v57 = vpop.f32.mrf.mxu0  ;;  %v7297_v52 = vpop.f32.mrf.mxu1  ;;  %v4931_v38 = vunpack.c.l.s4 %v5848_v14  ;;  %v7323_v55 = vld.sshfl [vmem:[%s7977_s5] sm:$0x33 pattern:$0x75316420]  ;;  %v3434_v63 = vadd.f32 %v7255_v59, %v7123_v17  ;;  %v3711_v1 = vpack.c.bf16 %v3430_v19, %v3426_v9  ;;  %v3925_v9 = vrot.slane %v7307_v33, %v6482_v49 }
 0x2d6   : > { %v3716_v27 = vpack.c.bf16 %v3458_v20, %v3454_v7  ;;  %v3460_v16 = vadd.f32 %v3459_v57, %v7148_v13  ;;  %v3713_v56 = vpack.c.bf16 %v3440_v3, %v3436_v28  ;;  %8147 = vst [vmem:[#allocation32_spill] sm:$0xff] %v7323_v55  ;;  %v4929_v4 = vcombine.high %v7323_v55, %v7323_v55  ;;  %v3893_v7 = vpop.permute.xlu1 %3892  ;;  %v3881_v20 = vpop.permute.xlu0 %3880 }
 0x2d7   : > { %v3463_v48 = vpop.f32.mrf.mxu0  ;;  %v7305_v12 = vpop.f32.mrf.mxu1  ;;  %v4932_v11 = vunpack.c.0.s8 %v4931_v38  ;;  %v3937_v3 = vrot.slane %v7286_v58, %v6482_v49  ;;  %v3712_v61 = vpack.c.bf16 %v3438_v34, %v3434_v63  ;;  %v4802_v58 = vadd.bf16 %v5401_v18, %v3714_v5 }
 0x2d8   : > { %v3717_v13 = vpack.c.bf16 %v3460_v16, %v3456_v51  ;;  %v7314_v15 = vadd.f32 %v3463_v48, %v7153_v41  ;;  %v4804_v14 = vadd.bf16 %v5402_v30, %v3716_v27  ;;  %v4801_v51 = vadd.bf16 %v5400_v46, %v3713_v56 }
 0x2d9   : > { %v3465_v57 = vpop.f32.mrf.mxu0  ;;  %v7318_v50 = vpop.f32.mrf.mxu1  ;;  %v7339_v36 = vsub.s32 %v4932_v11, %v8149_v6  ;;  %v5399_v18 = vcombine.low %v3937_v3, %v3949_v32  ;;  %v3424_v27 = vadd.f32 %v7237_v43, %v7115_v53  ;;  %v4800_v43 = vadd.bf16 %v5400_v46, %v3712_v61 }
 0x2da   : > { %8146 = vst [vmem:[#allocation37_spill] sm:$0xff] %v7314_v15  ;;  %v4805_v54 = vadd.bf16 %v5402_v30, %v3717_v13  ;;  %v7326_v41 = vadd.f32 %v3465_v57, %v7158_v39  ;;  %v3428_v39 = vadd.f32 %v7247_v45, %v7119_v10  ;;  %v4868_v35 = vmax.bf16 %v8065_v23, %v4804_v14  ;;  %v3869_v14 = vpop.permute.xlu1 %3868  ;;  %v3857_v57 = vpop.permute.xlu0 %3856 }
 0x2db   : > { %v3467_v25 = vpop.f32.mrf.mxu0  ;;  %v7336_v42 = vpop.f32.mrf.mxu1  ;;  %8150 = vst [vmem:[#allocation17_spill] sm:$0xff] %v7339_v36  ;;  %v7351_v30 = vrot.slane %v4929_v4, %v7339_v36  ;;  %v4867_v45 = vmax.bf16 %v8065_v23, %v4803_v44  ;;  %v4866_v48 = vmax.bf16 %v8065_v23, %v4802_v58  ;;  %v4799_v11 = vadd.bf16 %v5399_v18, %v3711_v1  ;;  %v8198_v36 = vld [vmem:[#allocation44_spill] sm:$0xff] }
 0x2dc   : > { %8148 = vst [vmem:[#allocation45_spill] sm:$0xff] %v7326_v41  ;;  %v7344_v62 = vadd.f32 %v3467_v25, %v7165_v0  ;;  %v4869_v47 = vmax.bf16 %v8065_v23, %v4805_v54  ;;  %v3710_v53 = vpack.c.bf16 %v3428_v39, %v3424_v27  ;;  %v3901_v34 = vrot.slane %v3893_v7, %v6482_v49  ;;  %v8159_v27 = vld [vmem:[#allocation10_spill] sm:$0xff] }
 0x2dd   : > { %v3469_v17 = vpop.f32.mrf.mxu0  ;;  %v7348_v59 = vpop.f32.mrf.mxu1  ;;  %8152 = vst [vmem:[#allocation47_spill] sm:$0xff] %v7351_v30  ;;  %4982 = vmatprep.mubr.bf16.mxu1 %v7351_v30  ;;  %v3889_v56 = vrot.slane %v3881_v20, %v6482_v49  ;;  %v8156_v3 = vpack.c.bf16 %v7235_v2, %v7230_v31  ;;  %v3877_v61 = vrot.slane %v3869_v14, %v6482_v49 }
 0x2de   : > { %8151 = vst [vmem:[#allocation46_spill] sm:$0xff] %v7344_v62  ;;  %v7356_v0 = vadd.f32 %v3469_v17, %v7172_v22  ;;  %4950 = vmatprep.subr.bf16.mxu1 %v4869_v47  ;;  %v3913_v22 = vrot.slane %v7309_v29, %v6482_v49  ;;  %v4865_v29 = vmax.bf16 %v8065_v23, %v4801_v51 }
 0x2df   : > { %v3473_v16 = vpop.f32.mrf.mxu0  ;;  %4951 = vmatpush1.bf16.msra.mxu1 %v4868_v35  ;;  %v7361_v38 = vpop.f32.mrf.mxu1  ;;  %v4798_v54 = vadd.bf16 %v5399_v18, %v3710_v53  ;;  %v5397_v39 = vcombine.low %v3889_v56, %v3901_v34  ;;  %v3865_v58 = vrot.slane %v3857_v57, %v6482_v49  ;;  %v8166_v57 = vld [vmem:[#allocation30_spill] sm:$0xff] }
 0x2e0   : > { %8153 = vst [vmem:[#allocation48_spill] sm:$0xff] %v7356_v0  ;;  %v7371_v40 = vadd.f32 %v3473_v16, %v7177_v24  ;;  %4952 = vmatprep.subr.bf16.mxu1 %v4867_v45  ;;  %v5398_v46 = vcombine.low %v3913_v22, %v3925_v9  ;;  %v3845_v45 = vpop.permute.xlu1 %3844  ;;  %v3833_v18 = vpop.permute.xlu0 %3832  ;;  %v8160_v16 = vld [vmem:[#allocation9_spill] sm:$0xff] }
 0x2e1   : > { %v3475_v19 = vpop.f32.mrf.mxu0  ;;  %v7374_v13 = vpop.f32.mrf.mxu1  ;;  %v4862_v7 = vmax.bf16 %v8065_v23, %v4798_v54  ;;  %v8161_v9 = vpack.c.bf16 %v8159_v27, %v8160_v16  ;;  %v8167_v54 = vld [vmem:[#allocation27_spill] sm:$0xff] }
 0x2e2   : > { %8154 = vst [vmem:[#allocation49_spill] sm:$0xff] %v7371_v40  ;;  %v7377_v33 = vadd.f32 %v3475_v19, %v7182_v37  ;;  %v4864_v37 = vmax.bf16 %v8065_v23, %v4800_v43  ;;  %v4797_v63 = vadd.bf16 %v5398_v46, %v8156_v3  ;;  %v3841_v19 = vrot.slane %v3833_v18, %v6482_v49  ;;  %v8175_v18 = vld [vmem:[#allocation21_spill] sm:$0xff] }
 0x2e3   : > { %v3477_v24 = vpop.f32.mrf.mxu0  ;;  %4953 = vmatpush1.bf16.msra.mxu1 %v4866_v48  ;;  %v7382_v5 = vpop.f32.mrf.mxu1  ;;  %v4795_v22 = vadd.bf16 %v5397_v39, %v8161_v9  ;;  %v3853_v48 = vrot.slane %v3845_v45, %v6482_v49  ;;  %v8174_v45 = vld [vmem:[#allocation24_spill] sm:$0xff] }
 0x2e4   : > { %v7385_v44 = vadd.f32 %v3477_v24, %v7189_v26  ;;  %4954 = vmatprep.subr.bf16.mxu1 %v4865_v29  ;;  %v4863_v26 = vmax.bf16 %v8065_v23, %v4799_v11  ;;  %v8162_v11 = vld [vmem:[#allocation34_spill] sm:$0xff]  ;;  %v8163_v29 = vld [vmem:[#allocation31_spill] sm:$0xff]  ;;  %v8176_v27 = vpack.c.bf16 %v8174_v45, %v8175_v18 }
 0x2e5   : > { %v3479_v4 = vpop.f32.mrf.mxu0  ;;  %v7388_v32 = vpop.f32.mrf.mxu1  ;;  %v8164_v34 = vpack.c.bf16 %v8162_v11, %v8163_v29  ;;  %v4859_v3 = vmax.bf16 %v8065_v23, %v4795_v22 }
 0x2e6   : > { %8155 = vst [vmem:[#allocation50_spill] sm:$0xff] %v7385_v44  ;;  %v7396_v6 = vadd.f32 %v3479_v4, %v7196_v60  ;;  %v8157_v60 = vld [vmem:[#allocation14_spill] sm:$0xff] }
 0x2e7   : > { %v3483_v1 = vpop.f32.mrf.mxu0  ;;  %4955 = vmatpush1.bf16.msra.mxu1 %v4864_v37  ;;  %v7399_v47 = vpop.f32.mrf.mxu1  ;;  %v8158_v35 = vpack.c.bf16 %v7225_v8, %v8157_v60  ;;  %v5396_v8 = vcombine.low %v3865_v58, %v3877_v61  ;;  %v4794_v56 = vadd.bf16 %v5397_v39, %v8164_v34  ;;  %v8168_v37 = vpack.c.bf16 %v8166_v57, %v8167_v54  ;;  %v8170_v39 = vld [vmem:[#allocation28_spill] sm:$0xff]  ;;  %v8171_v61 = vld [vmem:[#allocation25_spill] sm:$0xff] }
 0x2e8   : > { %v7406_v31 = vadd.f32 %v3483_v1, %v7198_v21  ;;  %4956 = vmatprep.subr.bf16.mxu1 %v4863_v26  ;;  %v4861_v21 = vmax.bf16 %v8065_v23, %v4797_v63  ;;  %v5395_v1 = vcombine.low %v3841_v19, %v3853_v48  ;;  %v8172_v58 = vpack.c.bf16 %v8170_v39, %v8171_v61  ;;  %v8178_v48 = vld [vmem:[#allocation22_spill] sm:$0xff] }
 0x2e9   : > { %v4796_v17 = vadd.bf16 %v5398_v46, %v8158_v35  ;;  %v7412_v20 = vpop.f32.mrf.mxu0  ;;  %v7414_v51 = vpop.f32.mrf.mxu1  ;;  %v4793_v4 = vadd.bf16 %v5396_v8, %v8168_v37  ;;  %v4858_v35 = vmax.bf16 %v8065_v23, %v4794_v56 }
 0x2ea   : > { %v4792_v60 = vadd.bf16 %v5396_v8, %v8172_v58  ;;  %v4791_v16 = vadd.bf16 %v5395_v1, %v8176_v27  ;;  %v8179_v8 = vld [vmem:[#allocation19_spill] sm:$0xff] }
 0x2eb   : > { %v7420_v53 = vpop.f32.mrf.mxu0  ;;  %4957 = vmatpush1.bf16.msra.mxu1 %v4862_v7  ;;  %v7422_v43 = vpop.f32.mrf.mxu1  ;;  %v4860_v24 = vmax.bf16 %v8065_v23, %v4796_v17  ;;  %v4857_v9 = vmax.bf16 %v8065_v23, %v4793_v4  ;;  %v8180_v19 = vpack.c.bf16 %v8178_v48, %v8179_v8 }
 0x2ec   : > { %4958 = vmatprep.subr.bf16.mxu1 %v4861_v21  ;;  %v4856_v29 = vmax.bf16 %v8065_v23, %v4792_v60  ;;  %v4205_v60 = vpop.permute.xlu1 %4204 }
 0x2ed   : > { %v7430_v46 = vpop.f32.mrf.mxu0  ;;  %v7432_v14 = vpop.f32.mrf.mxu1  ;;  %v4790_v11 = vadd.bf16 %v5395_v1, %v8180_v19 }
 0x2ee   : > { %8165 = vst [vmem:[#allocation14_spill] sm:$0xff] %v7432_v14 }
 0x2ef   : > { %v7438_v63 = vpop.f32.mrf.mxu0  ;;  %4959 = vmatpush1.bf16.msra.mxu1 %v4860_v24  ;;  %v7440_v26 = vpop.f32.mrf.mxu1  ;;  %v4855_v24 = vmax.bf16 %v8065_v23, %v4791_v16  ;;  %v4854_v37 = vmax.bf16 %v8065_v23, %v4790_v11 }
 0x2f0   : > { %8169 = vst [vmem:[#allocation10_spill] sm:$0xff] %v7440_v26  ;;  %4960 = vmatprep.subr.bf16.mxu1 %v4859_v3  ;;  %v4181_v8 = vpop.permute.xlu1 %4180 }
 0x2f1   : > { %v7446_v17 = vpop.f32.mrf.mxu0  ;;  %v7448_v7 = vpop.f32.mrf.mxu1 }
 0x2f2   : > { %8173 = vst [vmem:[#allocation9_spill] sm:$0xff] %v7448_v7 }
 0x2f3   : > { %v7454_v22 = vpop.f32.mrf.mxu0  ;;  %4961 = vmatpush1.bf16.msra.mxu1 %v4858_v35  ;;  %v7456_v21 = vpop.f32.mrf.mxu1 }
 0x2f4   : > { %8177 = vst [vmem:[#allocation34_spill] sm:$0xff] %v7456_v21  ;;  %4962 = vmatprep.subr.bf16.mxu1 %v4857_v9  ;;  %v4193_v35 = vpop.permute.xlu0 %4192  ;;  %v4157_v25 = vpop.permute.xlu1 %4156 }
 0x2f5   : > { %v7462_v34 = vpop.f32.mrf.mxu0  ;;  %v7464_v56 = vpop.f32.mrf.mxu1 }
 0x2f6   : > { %8181 = vst [vmem:[#allocation31_spill] sm:$0xff] %v7464_v56 }
 0x2f7   : > { %v7467_v57 = vpop.f32.mrf.mxu0  ;;  %4963 = vmatpush1.bf16.msra.mxu1 %v4856_v29  ;;  %v7469_v54 = vpop.f32.mrf.mxu1 }
 0x2f8   : > { %8182 = vst [vmem:[#allocation30_spill] sm:$0xff] %v7469_v54  ;;  %4964 = vmatprep.subr.bf16.mxu1 %v4855_v24  ;;  %v4169_v19 = vpop.permute.xlu0 %4168 }
 0x2f9   : > { %v7472_v4 = vpop.f32.mrf.mxu0  ;;  %v7474_v3 = vpop.f32.mrf.mxu1 }
 0x2fa   : > { %8183 = vst [vmem:[#allocation27_spill] sm:$0xff] %v7474_v3 }
 0x2fb   : > { %v7476_v1 = vpop.f32.mrf.mxu0  ;;  %4965 = vmatpush1.bf16.msra.mxu1 %v4854_v37  ;;  %v7478_v39 = vpop.f32.mrf.mxu1 }
 0x2fc   : > { %8184 = vst [vmem:[#allocation28_spill] sm:$0xff] %v7478_v39  ;;  %v4145_v2 = vpop.permute.xlu0 %4144  ;;  %v7502_v39 = vpop.permute.xlu1 %4132 }
 0x2fd   : > { %v3509_v61 = vpop.f32.mrf.mxu0  ;;  %v7480_v58 = vpop.f32.mrf.mxu1  ;;  %v4153_v55 = vrot.slane %v4145_v2, %v6482_v49 }
 0x2fe   : > { %8185 = vst [vmem:[#allocation25_spill] sm:$0xff] %v7480_v58  ;;  %v4213_v58 = vrot.slane %v4205_v60, %v6482_v49 }
 0x2ff   : > { %v7482_v45 = vpop.f32.mrf.mxu0  ;;  %v7484_v18 = vpop.f32.mrf.mxu1 }
 0x300   : > { %8186 = vst [vmem:[#allocation24_spill] sm:$0xff] %v7484_v18  ;;  %v7504_v18 = vpop.permute.xlu0 %4120 }
 0x301   : > { %v3515_v27 = vpop.f32.mrf.mxu0  ;;  %v7486_v16 = vpop.f32.mrf.mxu1 }
 0x302   : > { %8187 = vst [vmem:[#allocation21_spill] sm:$0xff] %v7486_v16 }
 0x303   : > { %v3517_v9 = vpop.f32.mrf.mxu0  ;;  %v7488_v48 = vpop.f32.mrf.mxu1 }
 0x304   : > { %8188 = vst [vmem:[#allocation22_spill] sm:$0xff] %v7488_v48 }
 0x305   : > { %v3519_v11 = vpop.f32.mrf.mxu0  ;;  %v7490_v29 = vpop.f32.mrf.mxu1 }
 0x306   : > { %8189 = vst [vmem:[#allocation19_spill] sm:$0xff] %v7490_v29  ;;  %v4201_v29 = vrot.slane %v4193_v35, %v6482_v49  ;;  %v8201_v35 = vld [vmem:[#allocation41_spill] sm:$0xff] }
 0x307   : > { %v3523_v24 = vpop.f32.mrf.mxu0  ;;  %v7492_v37 = vpop.f32.mrf.mxu1 }
 0x308   : > { %8190 = vst [vmem:[#allocation51_spill] sm:$0xff] %v7492_v37  ;;  %v8196_v37 = vld [vmem:[#allocation39_spill] sm:$0xff] }
 0x309   : > { %v3525_v10 = vpop.f32.mrf.mxu0  ;;  %v7494_v28 = vpop.f32.mrf.mxu1 }
 0x30a   : > { %8191 = vst [vmem:[#allocation52_spill] sm:$0xff] %v7494_v28  ;;  %v4177_v28 = vrot.slane %v4169_v19, %v6482_v49  ;;  %v3526_v15 = vadd.f32 %v3525_v10, %v8198_v36  ;;  %v7524_v19 = vpop.permute.xlu1 %4108  ;;  %v5410_v10 = vcombine.low %v4201_v29, %v4213_v58 }
 0x30b   : > { %v3527_v26 = vpop.f32.mrf.mxu0  ;;  %v7496_v21 = vpop.f32.mrf.mxu1 }
 0x30c   : > { %8192 = vst [vmem:[#allocation53_spill] sm:$0xff] %v7496_v21  ;;  %v4189_v21 = vrot.slane %v4181_v8, %v6482_v49  ;;  %v3528_v41 = vadd.f32 %v3527_v26, %v8201_v35 }
 0x30d   : > { %v3529_v14 = vpop.f32.mrf.mxu0  ;;  %v7498_v54 = vpop.f32.mrf.mxu1 }
 0x30e   : > { %8193 = vst [vmem:[#allocation54_spill] sm:$0xff] %v7498_v54  ;;  %v3530_v16 = vadd.f32 %v3529_v14, %v8196_v37  ;;  %v4165_v54 = vrot.slane %v4157_v25, %v6482_v49  ;;  %v8200_v14 = vld [vmem:[#allocation36_spill] sm:$0xff]  ;;  %v7526_v25 = vpop.permute.xlu0 %4096 }
 0x30f   : > { %v3533_v56 = vpop.f32.mrf.mxu0  ;;  %v7500_v7 = vpop.f32.mrf.mxu1  ;;  %v3520_v37 = vadd.f32 %v3519_v11, %v8200_v14  ;;  %v8204_v14 = vld [vmem:[#allocation40_spill] sm:$0xff] }
 0x310   : > { %8194 = vst [vmem:[#allocation55_spill] sm:$0xff] %v7500_v7  ;;  %v5408_v26 = vcombine.low %v4153_v55, %v4165_v54  ;;  %v3516_v35 = vadd.f32 %v3515_v27, %v8204_v14  ;;  %v4141_v54 = vrot.slane %v7502_v39, %v6482_v49 }
 0x311   : > { %v3535_v3 = vpop.f32.mrf.mxu0  ;;  %v7506_v48 = vpop.f32.mrf.mxu1 }
 0x312   : > { %8195 = vst [vmem:[#allocation56_spill] sm:$0xff] %v7506_v48  ;;  %v8199_v48 = vld [vmem:[#allocation43_spill] sm:$0xff]  ;;  %v3536_v2 = vadd.f32 %v3535_v3, %v7297_v52  ;;  %v8207_v52 = vld [vmem:[#allocation42_spill] sm:$0xff] }
 0x313   : > { %v3537_v7 = vpop.f32.mrf.mxu0  ;;  %v7514_v30 = vpop.f32.mrf.mxu1  ;;  %v3534_v62 = vadd.f32 %v3533_v56, %v8199_v48  ;;  %v5409_v56 = vcombine.low %v4177_v28, %v4189_v21  ;;  %v3729_v21 = vpack.c.bf16 %v3520_v37, %v3516_v35  ;;  %v8211_v37 = vld [vmem:[#allocation18_spill] sm:$0xff]  ;;  %v4117_v35 = vrot.slane %v7524_v19, %v6482_v49  ;;  %v8219_v19 = vld [vmem:[#allocation16_spill] sm:$0xff] }
 0x314   : > { %8197 = vst [vmem:[#allocation39_spill] sm:$0xff] %v7514_v30  ;;  %v3538_v60 = vadd.f32 %v3537_v7, %v7305_v12  ;;  %v3731_v30 = vpack.c.bf16 %v3530_v16, %v3526_v15  ;;  %v8203_v12 = vld [vmem:[#allocation38_spill] sm:$0xff]  ;;  %v8206_v15 = vld [vmem:[#allocation29_spill] sm:$0xff] }
 0x315   : > { %v3539_v8 = vpop.f32.mrf.mxu0  ;;  %v7522_v0 = vpop.f32.mrf.mxu1  ;;  %v3524_v7 = vadd.f32 %v3523_v24, %v8203_v12  ;;  %v3510_v16 = vadd.f32 %v3509_v61, %v8206_v15  ;;  %v8209_v61 = vld [vmem:[#allocation23_spill] sm:$0xff]  ;;  %v8215_v15 = vld [vmem:[#allocation20_spill] sm:$0xff] }
 0x316   : > { %8202 = vst [vmem:[#allocation44_spill] sm:$0xff] %v7522_v0  ;;  %v3732_v40 = vpack.c.bf16 %v3538_v60, %v3534_v62  ;;  %v3540_v36 = vadd.f32 %v3539_v8, %v7318_v50  ;;  %v3518_v62 = vadd.f32 %v3517_v9, %v8207_v52  ;;  %v4819_v29 = vadd.bf16 %v5409_v56, %v3731_v30  ;;  %v4085_v30 = vpop.permute.xlu1 %4084  ;;  %v8212_v8 = vld [vmem:[#allocation26_spill] sm:$0xff] }
 0x317   : > { %v3543_v48 = vpop.f32.mrf.mxu0  ;;  %v7531_v11 = vpop.f32.mrf.mxu1  ;;  %v3730_v3 = vpack.c.bf16 %v3528_v41, %v3524_v7  ;;  %v3506_v27 = vadd.f32 %v7472_v4, %v8209_v61  ;;  %v8210_v41 = vld [vmem:[#allocation33_spill] sm:$0xff]  ;;  %v3508_v39 = vadd.f32 %v7476_v1, %v8212_v8 }
 0x318   : > { %v3733_v0 = vpack.c.bf16 %v3540_v36, %v3536_v2  ;;  %v7535_v44 = vadd.f32 %v3543_v48, %v7336_v42  ;;  %v4820_v50 = vadd.bf16 %v5410_v10, %v3732_v40  ;;  %v4129_v42 = vrot.slane %v7504_v18, %v6482_v49 }
 0x319   : > { %v3545_v58 = vpop.f32.mrf.mxu0  ;;  %v7539_v28 = vpop.f32.mrf.mxu1  ;;  %v3514_v40 = vadd.f32 %v7482_v45, %v8210_v41  ;;  %v3727_v4 = vpack.c.bf16 %v3510_v16, %v3506_v27  ;;  %v4817_v48 = vadd.bf16 %v5408_v26, %v3729_v21  ;;  %v3504_v16 = vadd.f32 %v7467_v57, %v8215_v15 }
 0x31a   : > { %8205 = vst [vmem:[#allocation43_spill] sm:$0xff] %v7535_v44  ;;  %v4821_v24 = vadd.bf16 %v5410_v10, %v3733_v0  ;;  %v7542_v55 = vadd.f32 %v3545_v58, %v7348_v59  ;;  %v4073_v0 = vpop.permute.xlu0 %4072  ;;  %v3500_v59 = vadd.f32 %v7462_v34, %v8211_v37  ;;  %v4818_v10 = vadd.bf16 %v5409_v56, %v3730_v3  ;;  %v8222_v37 = vld [vmem:[#allocation13_spill] sm:$0xff]  ;;  %v8245_v34 = vld [vmem:[#allocation56_spill] sm:$0xff] }
 0x31b   : > { %v3547_v9 = vpop.f32.mrf.mxu0  ;;  %v7552_v60 = vpop.f32.mrf.mxu1  ;;  %v3728_v36 = vpack.c.bf16 %v3518_v62, %v3514_v40  ;;  %v4884_v45 = vmax.bf16 %v8065_v23, %v4820_v50  ;;  %v5407_v1 = vcombine.low %v4129_v42, %v4141_v54  ;;  %v4105_v56 = vrot.slane %v7526_v25, %v6482_v49  ;;  %v8216_v62 = vld [vmem:[#allocation12_spill] sm:$0xff] }
 0x31c   : > { %8208 = vst [vmem:[#allocation36_spill] sm:$0xff] %v7542_v55  ;;  %v7559_v2 = vadd.f32 %v3547_v9, %v7361_v38  ;;  %v4885_v18 = vmax.bf16 %v8065_v23, %v4821_v24  ;;  %v4883_v38 = vmax.bf16 %v8065_v23, %v4819_v29  ;;  %v3490_v3 = vadd.f32 %v7430_v46, %v8216_v62  ;;  %v4061_v46 = vpop.permute.xlu1 %4060  ;;  %v8221_v9 = vld [vmem:[#allocation35_spill] sm:$0xff] }
 0x31d   : > { %v3549_v12 = vpop.f32.mrf.mxu0  ;;  %v7563_v7 = vpop.f32.mrf.mxu1  ;;  %v3498_v25 = vadd.f32 %v7454_v22, %v8219_v19  ;;  %v3726_v29 = vpack.c.bf16 %v3508_v39, %v3504_v16  ;;  %v4816_v57 = vadd.bf16 %v5408_v26, %v3728_v36  ;;  %v4882_v24 = vmax.bf16 %v8065_v23, %v4818_v10 }
 0x31e   : > { %8213 = vst [vmem:[#allocation41_spill] sm:$0xff] %v7559_v2  ;;  %v7568_v14 = vadd.f32 %v3549_v12, %v7374_v13  ;;  %4966 = vmatprep.subr.bf16.mxu1 %v4885_v18  ;;  %v8217_v13 = vld [vmem:[#allocation15_spill] sm:$0xff]  ;;  %v4049_v61 = vpop.permute.xlu0 %4048  ;;  %v4815_v27 = vadd.bf16 %v5407_v1, %v3727_v4  ;;  %v4093_v40 = vrot.slane %v4085_v30, %v6482_v49 }
 0x31f   : > { %v3553_v52 = vpop.f32.mrf.mxu0  ;;  %4967 = vmatpush2.bf16.msra.mxu1 %v4884_v45  ;;  %v3496_v50 = vadd.f32 %v7446_v17, %v8217_v13  ;;  %v7589_v42 = vpop.f32.mrf.mxu1  ;;  %v4081_v22 = vrot.slane %v4073_v0, %v6482_v49  ;;  %v3486_v26 = vadd.f32 %v7412_v20, %v8221_v9  ;;  %v3494_v8 = vadd.f32 %v7438_v63, %v8222_v37  ;;  %v8226_v9 = vld [vmem:[#allocation50_spill] sm:$0xff] }
 0x320   : > { %8214 = vst [vmem:[#allocation38_spill] sm:$0xff] %v7568_v14  ;;  %v7584_v21 = vadd.f32 %v3553_v52, %v7382_v5  ;;  %4968 = vmatprep.subr.bf16.mxu1 %v4883_v38  ;;  %v4881_v5 = vmax.bf16 %v8065_v23, %v4817_v48  ;;  %v5406_v18 = vcombine.low %v4105_v56, %v4117_v35  ;;  %v4037_v56 = vpop.permute.xlu1 %4036  ;;  %v8251_v14 = vld [vmem:[#allocation44_spill] sm:$0xff] }
 0x321   : > { %v3555_v54 = vpop.f32.mrf.mxu0  ;;  %v3725_v17 = vpack.c.bf16 %v3500_v59, %v3496_v50  ;;  %v8223_v59 = vld [vmem:[#allocation11_spill] sm:$0xff]  ;;  %v3723_v36 = vpack.c.bf16 %v3490_v3, %v3486_v26  ;;  %v3724_v30 = vpack.c.bf16 %v3498_v25, %v3494_v8  ;;  %v4814_v10 = vadd.bf16 %v5407_v1, %v3726_v29  ;;  %v7607_v20 = vpop.f32.mrf.mxu1  ;;  %v8227_v26 = vld [vmem:[#allocation49_spill] sm:$0xff] }
 0x322   : > { %8218 = vst [vmem:[#allocation40_spill] sm:$0xff] %v7584_v21  ;;  %v7592_v41 = vadd.f32 %v3555_v54, %v7388_v32  ;;  %v3488_v4 = vadd.f32 %v7420_v53, %v8223_v59  ;;  %v4880_v0 = vmax.bf16 %v8065_v23, %v4816_v57  ;;  %v4879_v53 = vmax.bf16 %v8065_v23, %v4815_v27  ;;  %v4025_v15 = vpop.permute.xlu0 %4024 }
 0x323   : > { %v3557_v39 = vpop.f32.mrf.mxu0  ;;  %4969 = vmatpush2.bf16.msra.mxu1 %v4882_v24  ;;  %v4813_v12 = vadd.bf16 %v5406_v18, %v3725_v17  ;;  %v4069_v35 = vrot.slane %v4061_v46, %v6482_v49  ;;  %v4057_v1 = vrot.slane %v4049_v61, %v6482_v49  ;;  %v4812_v62 = vadd.bf16 %v5406_v18, %v3724_v30  ;;  %v7626_v50 = vpop.f32.mrf.mxu1 }
 0x324   : > { %8220 = vst [vmem:[#allocation29_spill] sm:$0xff] %v7592_v41  ;;  %v7604_v32 = vadd.f32 %v3557_v39, %v7399_v47  ;;  %4970 = vmatprep.subr.bf16.mxu1 %v4881_v5  ;;  %v5405_v47 = vcombine.low %v4081_v22, %v4093_v40  ;;  %v4878_v3 = vmax.bf16 %v8065_v23, %v4814_v10 }
 0x325   : > { %v3559_v45 = vpop.f32.mrf.mxu0  ;;  %v4877_v25 = vmax.bf16 %v8065_v23, %v4813_v12  ;;  %v5404_v57 = vcombine.low %v4057_v1, %v4069_v35  ;;  %v4033_v24 = vrot.slane %v4025_v15, %v6482_v49  ;;  %v4876_v54 = vmax.bf16 %v8065_v23, %v4812_v62  ;;  %v7636_v61 = vpop.f32.mrf.mxu1 }
 0x326   : > { %8224 = vst [vmem:[#allocation42_spill] sm:$0xff] %v7604_v32  ;;  %v7612_v48 = vadd.f32 %v3559_v45, %v7414_v51  ;;  %v3722_v51 = vpack.c.bf16 %v3488_v4, %v7406_v31  ;;  %v4811_v19 = vadd.bf16 %v5405_v47, %v3723_v36  ;;  %v8225_v17 = vpack.c.bf16 %v7396_v6, %v7377_v33  ;;  %v8229_v4 = vld [vmem:[#allocation48_spill] sm:$0xff]  ;;  %v8230_v33 = vld [vmem:[#allocation45_spill] sm:$0xff] }
 0x327   : > { %v3563_v38 = vpop.f32.mrf.mxu0  ;;  %4971 = vmatpush2.bf16.msra.mxu1 %v4880_v0  ;;  %v8228_v37 = vpack.c.bf16 %v8226_v9, %v8227_v26  ;;  %v7650_v59 = vpop.f32.mrf.mxu1  ;;  %v8231_v6 = vpack.c.bf16 %v8229_v4, %v8230_v33  ;;  %v8232_v0 = vld [vmem:[#allocation46_spill] sm:$0xff]  ;;  %v8233_v45 = vld [vmem:[#allocation37_spill] sm:$0xff] }
 0x328   : > { %v7620_v52 = vadd.f32 %v3563_v38, %v7422_v43  ;;  %4972 = vmatprep.subr.bf16.mxu1 %v4879_v53  ;;  %v4045_v43 = vrot.slane %v4037_v56, %v6482_v49  ;;  %v4810_v31 = vadd.bf16 %v5405_v47, %v3722_v51  ;;  %v4809_v27 = vadd.bf16 %v5404_v57, %v8225_v17  ;;  %v4397_v17 = vpop.permute.xlu1 %4396  ;;  %v8255_v32 = vld [vmem:[#allocation21_spill] sm:$0xff] }
 0x329   : > { %v7624_v13 = vpop.f32.mrf.mxu0  ;;  %v4875_v5 = vmax.bf16 %v8065_v23, %v4811_v19  ;;  %v4808_v8 = vadd.bf16 %v5404_v57, %v8228_v37  ;;  %v8234_v12 = vpack.c.bf16 %v8232_v0, %v8233_v45  ;;  %v7664_v35 = vpop.f32.mrf.mxu1  ;;  %v8236_v19 = vld [vmem:[#allocation32_spill] sm:$0xff] }
 0x32a   : > { %v5403_v22 = vcombine.low %v4033_v24, %v4045_v43  ;;  %v4874_v39 = vmax.bf16 %v8065_v23, %v4810_v31  ;;  %v4873_v30 = vmax.bf16 %v8065_v23, %v4809_v27  ;;  %v8238_v43 = vld [vmem:[#allocation47_spill] sm:$0xff]  ;;  %v4385_v27 = vpop.permute.xlu0 %4384 }
 0x32b   : > { %v7629_v29 = vpop.f32.mrf.mxu0  ;;  %4973 = vmatpush2.bf16.msra.mxu1 %v4878_v3  ;;  %v4872_v47 = vmax.bf16 %v8065_v23, %v4808_v8  ;;  %v7672_v62 = vpop.f32.mrf.mxu1  ;;  %v8235_v3 = vld [vmem:[#allocation17_spill] sm:$0xff]  ;;  %v4945_v24 = vcombine.high %v8238_v43, %v8238_v43  ;;  %v4393_v63 = vrot.slane %v4385_v27, %v6482_v49 }
 0x32c   : > { %4974 = vmatprep.subr.bf16.mxu1 %v4877_v25  ;;  %v4807_v36 = vadd.bf16 %v5403_v22, %v8231_v6  ;;  %v4806_v53 = vadd.bf16 %v5403_v22, %v8234_v12  ;;  %v7676_v25 = vrot.slane %v8236_v19, %v8235_v3  ;;  %v4373_v37 = vpop.permute.xlu1 %4372 }
 0x32d   : > { %v7634_v46 = vpop.f32.mrf.mxu0  ;;  %v4381_v16 = vrot.slane %v4373_v37, %v6482_v49 }
 0x32e   : > { %v4871_v1 = vmax.bf16 %v8065_v23, %v4807_v36  ;;  %v4870_v15 = vmax.bf16 %v8065_v23, %v4806_v53  ;;  %8237 = vst [vmem:[#allocation23_spill] sm:$0xff] %v7676_v25  ;;  %v4361_v8 = vpop.permute.xlu0 %4360 }
 0x32f   : > { %v7642_v40 = vpop.f32.mrf.mxu0  ;;  %4975 = vmatpush2.bf16.msra.mxu1 %v4876_v54  ;;  %v7682_v54 = vpop.f32.mrf.mxu1  ;;  %v4369_v3 = vrot.slane %v4361_v8, %v6482_v49 }
 0x330   : > { %4976 = vmatprep.subr.bf16.mxu1 %v4875_v5  ;;  %8239 = vst [vmem:[#allocation33_spill] sm:$0xff] %v7682_v54 }
 0x331   : > { %v7648_v18 = vpop.f32.mrf.mxu0  ;;  %v7687_v9 = vpop.f32.mrf.mxu1 }
 0x332   : > { %8240 = vst [vmem:[#allocation18_spill] sm:$0xff] %v7687_v9  ;;  %v4337_v0 = vpop.permute.xlu0 %4336 }
 0x333   : > { %v7656_v10 = vpop.f32.mrf.mxu0  ;;  %4977 = vmatpush2.bf16.msra.mxu1 %v4874_v39  ;;  %v7689_v4 = vpop.f32.mrf.mxu1  ;;  %v4345_v54 = vrot.slane %v4337_v0, %v6482_v49 }
 0x334   : > { %4978 = vmatprep.subr.bf16.mxu1 %v4873_v30  ;;  %8241 = vst [vmem:[#allocation26_spill] sm:$0xff] %v7689_v4  ;;  %v4349_v30 = vpop.permute.xlu1 %4348 }
 0x335   : > { %v7662_v38 = vpop.f32.mrf.mxu0  ;;  %v7691_v36 = vpop.f32.mrf.mxu1 }
 0x336   : > { %8242 = vst [vmem:[#allocation20_spill] sm:$0xff] %v7691_v36  ;;  %v8246_v36 = vld [vmem:[#allocation54_spill] sm:$0xff] }
 0x337   : > { %v7667_v56 = vpop.f32.mrf.mxu0  ;;  %4979 = vmatpush2.bf16.msra.mxu1 %v4872_v47  ;;  %v7693_v53 = vpop.f32.mrf.mxu1 }
 0x338   : > { %4980 = vmatprep.subr.bf16.mxu1 %v4871_v1  ;;  %8243 = vst [vmem:[#allocation12_spill] sm:$0xff] %v7693_v53  ;;  %v7695_v1 = vpop.permute.xlu1 %4324  ;;  %v8247_v53 = vld [vmem:[#allocation39_spill] sm:$0xff] }
 0x339   : > { %v7670_v51 = vpop.f32.mrf.mxu0  ;;  %v7699_v43 = vpop.f32.mrf.mxu1 }
 0x33a   : > { %8244 = vst [vmem:[#allocation15_spill] sm:$0xff] %v7699_v43 }
 0x33b   : > { %v7678_v57 = vpop.f32.mrf.mxu0  ;;  %4981 = vmatpush2.bf16.msra.mxu1 %v4870_v15  ;;  %v7697_v15 = vpop.permute.xlu0 %4312 }
 0x33c   : > { %v7713_v55 = vpop.f32.mrf.mxu1  ;;  %v7715_v37 = vpop.permute.xlu1 %4300 }
 0x33d   : > { %v3589_v31 = vpop.f32.mrf.mxu0  ;;  %8250 = vst [vmem:[#allocation16_spill] sm:$0xff] %v7713_v55 }
 0x33e   : > { %4983 = vmatmul.mubr.bf16.vlgmr.msra.gmra.mxu1 %v7676_v25  ;;  %v4357_v25 = vrot.slane %v4349_v30, %v6482_v49  ;;  %v3590_v41 = vadd.f32 %v3589_v31, %v8255_v32  ;;  %v8258_v32 = vld [vmem:[#allocation25_spill] sm:$0xff] }
 0x33f   : > { %v7685_v5 = vpop.f32.mrf.mxu0  ;;  %5023 = vmatprep.mubr.bf16.mxu1 %v4945_v24  ;;  %v4405_v24 = vrot.slane %v4397_v17, %v6482_v49  ;;  %v8248_v17 = vld [vmem:[#allocation52_spill] sm:$0xff]  ;;  %v7717_v8 = vpop.permute.xlu0 %4288  ;;  %v3586_v31 = vadd.f32 %v7670_v51, %v8258_v32 }
 0x341   : > { %v3595_v22 = vpop.f32.mrf.mxu0 }
 0x343   : > { %v3597_v26 = vpop.f32.mrf.mxu0 }
 0x345   : > { %v3599_v39 = vpop.f32.mrf.mxu0 }
 0x346   : > { %v3600_v2 = vadd.f32 %v3599_v39, %v8248_v17 }
 0x347   : > { %v3603_v33 = vpop.f32.mrf.mxu0 }
 0x349   : > { %v3605_v6 = vpop.f32.mrf.mxu0 }
 0x34a   : > { %v3606_v4 = vadd.f32 %v3605_v6, %v8246_v36  ;;  %v5418_v36 = vcombine.low %v4393_v63, %v4405_v24 }
 0x34b   : > { %v3607_v45 = vpop.f32.mrf.mxu0 }
 0x34d   : > { %v3609_v12 = vpop.f32.mrf.mxu0 }
 0x34e   : > { %v3610_v58 = vadd.f32 %v3609_v12, %v8245_v34  ;;  %v8249_v34 = vld [vmem:[#allocation55_spill] sm:$0xff] }
 0x34f   : > { %v3613_v47 = vpop.f32.mrf.mxu0  ;;  %v3608_v12 = vadd.f32 %v3607_v45, %v8249_v34  ;;  %v8253_v45 = vld [vmem:[#allocation19_spill] sm:$0xff] }
 0x350   : > { %v3614_v44 = vadd.f32 %v3613_v47, %v8247_v53  ;;  %v3747_v30 = vpack.c.bf16 %v3610_v58, %v3606_v4  ;;  %v5417_v53 = vcombine.low %v4369_v3, %v4381_v16  ;;  %v5416_v47 = vcombine.low %v4345_v54, %v4357_v25  ;;  %v8256_v58 = vld [vmem:[#allocation51_spill] sm:$0xff] }
 0x351   : > { %v3615_v19 = vpop.f32.mrf.mxu0  ;;  %v3596_v17 = vadd.f32 %v3595_v22, %v8253_v45  ;;  %v3598_v4 = vadd.f32 %v3597_v26, %v8256_v58  ;;  %v4333_v54 = vrot.slane %v7695_v1, %v6482_v49  ;;  %v8259_v22 = vld [vmem:[#allocation22_spill] sm:$0xff] }
 0x352   : > { %v3616_v0 = vadd.f32 %v3615_v19, %v8251_v14  ;;  %v4835_v16 = vadd.bf16 %v5417_v53, %v3747_v30 }
 0x353   : > { %v3617_v9 = vpop.f32.mrf.mxu0  ;;  %v3745_v63 = vpack.c.bf16 %v3600_v2, %v3596_v17  ;;  %v4265_v2 = vpop.permute.xlu0 %4264  ;;  %v8265_v17 = vld [vmem:[#allocation9_spill] sm:$0xff] }
 0x354   : > { %v3618_v43 = vadd.f32 %v3617_v9, %v7531_v11  ;;  %v8252_v11 = vld [vmem:[#allocation53_spill] sm:$0xff] }
 0x355   : > { %v3619_v27 = vpop.f32.mrf.mxu0  ;;  %v3604_v9 = vadd.f32 %v3603_v33, %v8252_v11  ;;  %v4277_v33 = vpop.permute.xlu1 %4276 }
 0x356   : > { %v3748_v21 = vpack.c.bf16 %v3618_v43, %v3614_v44  ;;  %v3620_v6 = vadd.f32 %v3619_v27, %v7539_v28  ;;  %v7728_v28 = vpop.f32.mrf.mxu1  ;;  %v8260_v43 = vld [vmem:[#allocation27_spill] sm:$0xff]  ;;  %v3743_v27 = vpack.c.bf16 %v3590_v41, %v3586_v31  ;;  %v4309_v41 = vrot.slane %v7715_v37, %v6482_v49  ;;  %v8268_v37 = vld [vmem:[#allocation30_spill] sm:$0xff] }
 0x357   : > { %v3623_v39 = vpop.f32.mrf.mxu0  ;;  %v3746_v14 = vpack.c.bf16 %v3608_v12, %v3604_v9  ;;  %v3580_v24 = vadd.f32 %v7662_v38, %v8260_v43  ;;  %v8264_v9 = vld [vmem:[#allocation28_spill] sm:$0xff]  ;;  %v4285_v32 = vrot.slane %v4277_v33, %v6482_v49  ;;  %v8270_v31 = vld [vmem:[#allocation14_spill] sm:$0xff] }
 0x358   : > { %v3749_v34 = vpack.c.bf16 %v3620_v6, %v3616_v0  ;;  %v7724_v55 = vadd.f32 %v3623_v39, %v7552_v60  ;;  %v4836_v44 = vadd.bf16 %v5418_v36, %v3748_v21  ;;  %v4321_v60 = vrot.slane %v7697_v15, %v6482_v49  ;;  %v7750_v6 = vpop.f32.mrf.mxu1 }
 0x359   : > { %v3625_v19 = vpop.f32.mrf.mxu0  ;;  %v3594_v21 = vadd.f32 %v7685_v5, %v8259_v22  ;;  %v4834_v51 = vadd.bf16 %v5417_v53, %v3746_v14  ;;  %v4297_v53 = vrot.slane %v7717_v8, %v6482_v49  ;;  %v3584_v39 = vadd.f32 %v7667_v56, %v8264_v9  ;;  %v8271_v22 = vld [vmem:[#allocation34_spill] sm:$0xff] }
 0x35a   : > { %8254 = vst [vmem:[#allocation35_spill] sm:$0xff] %v7724_v55  ;;  %v4837_v3 = vadd.bf16 %v5418_v36, %v3749_v34  ;;  %v7731_v25 = vadd.f32 %v3625_v19, %v7563_v7  ;;  %v8261_v7 = vld [vmem:[#allocation24_spill] sm:$0xff]  ;;  %v4900_v0 = vmax.bf16 %v8065_v23, %v4836_v44  ;;  %v4833_v36 = vadd.bf16 %v5416_v47, %v3745_v63 }
 0x35b   : > { %v3627_v26 = vpop.f32.mrf.mxu0  ;;  %v3588_v12 = vadd.f32 %v7678_v57, %v8261_v7  ;;  %v3744_v30 = vpack.c.bf16 %v3598_v4, %v3594_v21  ;;  %v5415_v57 = vcombine.low %v4321_v60, %v4333_v54  ;;  %v3570_v34 = vadd.f32 %v7634_v46, %v8265_v17  ;;  %v4253_v46 = vpop.permute.xlu1 %4252 }
 0x35c   : > { %8257 = vst [vmem:[#allocation13_spill] sm:$0xff] %v7731_v25  ;;  %v7746_v1 = vadd.f32 %v3627_v26, %v7589_v42  ;;  %v4901_v15 = vmax.bf16 %v8065_v23, %v4837_v3  ;;  %v4899_v42 = vmax.bf16 %v8065_v23, %v4835_v16  ;;  %v3578_v8 = vadd.f32 %v7656_v10, %v8268_v37  ;;  %v7776_v16 = vpop.f32.mrf.mxu1  ;;  %v4241_v3 = vpop.permute.xlu0 %4240 }
 0x35d   : > { %v3629_v5 = vpop.f32.mrf.mxu0  ;;  %v3742_v44 = vpack.c.bf16 %v3588_v12, %v3584_v39  ;;  %v4832_v56 = vadd.bf16 %v5416_v47, %v3744_v30  ;;  %v4898_v19 = vmax.bf16 %v8065_v23, %v4834_v51  ;;  %v4831_v54 = vadd.bf16 %v5415_v57, %v3743_v27 }
 0x35e   : > { %8262 = vst [vmem:[#allocation11_spill] sm:$0xff] %v7746_v1  ;;  %v7755_v11 = vadd.f32 %v3629_v5, %v7607_v20  ;;  %4991 = vmatprep.subr.bf16.mxu1 %v4901_v15  ;;  %v8266_v20 = vld [vmem:[#allocation31_spill] sm:$0xff]  ;;  %v4273_v10 = vrot.slane %v4265_v2, %v6482_v49  ;;  %v3566_v47 = vadd.f32 %v7624_v13, %v8270_v31  ;;  %v7794_v13 = vpop.f32.mrf.mxu1 }
 0x35f   : > { %v3633_v45 = vpop.f32.mrf.mxu0  ;;  %4992 = vmatpush1.bf16.msra.mxu1 %v4900_v0  ;;  %v3576_v58 = vadd.f32 %v7648_v18, %v8266_v20  ;;  %v3574_v21 = vadd.f32 %v7642_v40, %v8271_v22  ;;  %v5414_v43 = vcombine.low %v4297_v53, %v4309_v41  ;;  %v4830_v15 = vadd.bf16 %v5415_v57, %v3742_v44 }
 0x360   : > { %8263 = vst [vmem:[#allocation50_spill] sm:$0xff] %v7755_v11  ;;  %v7771_v14 = vadd.f32 %v3633_v45, %v7626_v50  ;;  %4993 = vmatprep.subr.bf16.mxu1 %v4899_v42  ;;  %v4897_v50 = vmax.bf16 %v8065_v23, %v4833_v36  ;;  %v3739_v12 = vpack.c.bf16 %v3570_v34, %v3566_v47  ;;  %v4229_v42 = vpop.permute.xlu1 %4228  ;;  %v4217_v57 = vpop.permute.xlu0 %4216 }
 0x361   : > { %v3635_v63 = vpop.f32.mrf.mxu0  ;;  %v3741_v18 = vpack.c.bf16 %v3580_v24, %v3576_v58  ;;  %v8272_v24 = vld [vmem:[#allocation10_spill] sm:$0xff]  ;;  %v3740_v33 = vpack.c.bf16 %v3578_v8, %v3574_v21  ;;  %v4896_v2 = vmax.bf16 %v8065_v23, %v4832_v56  ;;  %v4261_v5 = vrot.slane %v4253_v46, %v6482_v49  ;;  %v7813_v17 = vpop.f32.mrf.mxu1 }
 0x362   : > { %8267 = vst [vmem:[#allocation49_spill] sm:$0xff] %v7771_v14  ;;  %v7779_v60 = vadd.f32 %v3635_v63, %v7636_v61  ;;  %v3568_v7 = vadd.f32 %v7629_v29, %v8272_v24  ;;  %v4895_v29 = vmax.bf16 %v8065_v23, %v4831_v54  ;;  %v4249_v36 = vrot.slane %v4241_v3, %v6482_v49  ;;  %v8276_v63 = vld [vmem:[#allocation29_spill] sm:$0xff] }
 0x363   : > { %v3637_v26 = vpop.f32.mrf.mxu0  ;;  %4994 = vmatpush1.bf16.msra.mxu1 %v4898_v19  ;;  %v4829_v30 = vadd.bf16 %v5414_v43, %v3741_v18  ;;  %v4828_v9 = vadd.bf16 %v5414_v43, %v3740_v33  ;;  %v4894_v39 = vmax.bf16 %v8065_v23, %v4830_v15  ;;  %v4225_v8 = vrot.slane %v4217_v57, %v6482_v49  ;;  %v7823_v19 = vpop.f32.mrf.mxu1  ;;  %v8281_v43 = vld [vmem:[#allocation38_spill] sm:$0xff]  ;;  %v8284_v15 = vld [vmem:[#allocation41_spill] sm:$0xff] }
 0x364   : > { %8269 = vst [vmem:[#allocation48_spill] sm:$0xff] %v7779_v60  ;;  %v7791_v61 = vadd.f32 %v3637_v26, %v7650_v59  ;;  %4995 = vmatprep.subr.bf16.mxu1 %v4897_v50  ;;  %v5413_v59 = vcombine.low %v4273_v10, %v4285_v32  ;;  %v5412_v37 = vcombine.low %v4249_v36, %v4261_v5  ;;  %v8278_v32 = vld [vmem:[#allocation42_spill] sm:$0xff]  ;;  %v8279_v10 = vld [vmem:[#allocation40_spill] sm:$0xff] }
 0x365   : > { %v3639_v27 = vpop.f32.mrf.mxu0  ;;  %v4893_v20 = vmax.bf16 %v8065_v23, %v4829_v30  ;;  %v4892_v44 = vmax.bf16 %v8065_v23, %v4828_v9  ;;  %v8277_v46 = vpack.c.bf16 %v7612_v48, %v8276_v63  ;;  %v8280_v31 = vpack.c.bf16 %v8278_v32, %v8279_v10  ;;  %v7837_v26 = vpop.f32.mrf.mxu1  ;;  %v8282_v48 = vld [vmem:[#allocation36_spill] sm:$0xff] }
 0x366   : > { %8273 = vst [vmem:[#allocation45_spill] sm:$0xff] %v7791_v61  ;;  %v7799_v51 = vadd.f32 %v3639_v27, %v7664_v35  ;;  %v3738_v35 = vpack.c.bf16 %v3568_v7, %v7620_v52  ;;  %v4827_v34 = vadd.bf16 %v5413_v59, %v3739_v12  ;;  %v8283_v24 = vpack.c.bf16 %v8281_v43, %v8282_v48 }
 0x367   : > { %v3643_v0 = vpop.f32.mrf.mxu0  ;;  %4996 = vmatpush1.bf16.msra.mxu1 %v4896_v2  ;;  %v4825_v3 = vadd.bf16 %v5412_v37, %v8277_v46  ;;  %v4824_v47 = vadd.bf16 %v5412_v37, %v8280_v31  ;;  %v8285_v2 = vld [vmem:[#allocation43_spill] sm:$0xff]  ;;  %v4577_v37 = vpop.permute.xlu0 %4576 }
 0x368   : > { %8274 = vst [vmem:[#allocation46_spill] sm:$0xff] %v7799_v51  ;;  %v7807_v53 = vadd.f32 %v3643_v0, %v7672_v62  ;;  %4997 = vmatprep.subr.bf16.mxu1 %v4895_v29  ;;  %v4237_v62 = vrot.slane %v4229_v42, %v6482_v49  ;;  %v4826_v52 = vadd.bf16 %v5413_v59, %v3738_v35  ;;  %v3326_v0 = vpop.f32.mrf.mxu1 }
 0x369   : > { %v7811_v45 = vpop.f32.mrf.mxu0  ;;  %v4891_v18 = vmax.bf16 %v8065_v23, %v4827_v34  ;;  %v4889_v12 = vmax.bf16 %v8065_v23, %v4825_v3  ;;  %v8286_v27 = vpack.c.bf16 %v8284_v15, %v8285_v2  ;;  %v4888_v29 = vmax.bf16 %v8065_v23, %v4824_v47 }
 0x36a   : > { %8275 = vst [vmem:[#allocation37_spill] sm:$0xff] %v7807_v53  ;;  %v5411_v50 = vcombine.low %v4225_v8, %v4237_v62  ;;  %v4890_v22 = vmax.bf16 %v8065_v23, %v4826_v52  ;;  %v3330_v35 = vpop.f32.mrf.mxu1 }
 0x36b   : > { %v7816_v58 = vpop.f32.mrf.mxu0  ;;  %4998 = vmatpush1.bf16.msra.mxu1 %v4894_v39  ;;  %v4553_v46 = vpop.permute.xlu0 %4552 }
 0x36c   : > { %4999 = vmatprep.subr.bf16.mxu1 %v4893_v20  ;;  %v4823_v7 = vadd.bf16 %v5411_v50, %v8283_v24  ;;  %v4822_v30 = vadd.bf16 %v5411_v50, %v8286_v27  ;;  %v3332_v34 = vpop.f32.mrf.mxu1  ;;  %v4589_v20 = vpop.permute.xlu1 %4588  ;;  %v4561_v38 = vrot.slane %v4553_v46, %v6482_v49 }
 0x36d   : > { %v7821_v56 = vpop.f32.mrf.mxu0 }
 0x36e   : > { %v4887_v5 = vmax.bf16 %v8065_v23, %v4823_v7  ;;  %v4886_v42 = vmax.bf16 %v8065_v23, %v4822_v30  ;;  %v3334_v52 = vpop.f32.mrf.mxu1  ;;  %v4597_v30 = vrot.slane %v4589_v20, %v6482_v49 }
 0x36f   : > { %v7829_v54 = vpop.f32.mrf.mxu0  ;;  %5000 = vmatpush1.bf16.msra.mxu1 %v4892_v44  ;;  %v4529_v47 = vpop.permute.xlu0 %4528 }
 0x370   : > { %5001 = vmatprep.subr.bf16.mxu1 %v4891_v18  ;;  %v4565_v63 = vpop.permute.xlu1 %4564  ;;  %v3336_v18 = vpop.f32.mrf.mxu1 }
 0x371   : > { %v7835_v21 = vpop.f32.mrf.mxu0 }
 0x372   : > { %v3340_v10 = vpop.f32.mrf.mxu1 }
 0x373   : > { %v7843_v33 = vpop.f32.mrf.mxu0  ;;  %5002 = vmatpush1.bf16.msra.mxu1 %v4890_v22 }
 0x374   : > { %5003 = vmatprep.subr.bf16.mxu1 %v4889_v12  ;;  %v4541_v31 = vpop.permute.xlu1 %4540  ;;  %v3342_v48 = vpop.f32.mrf.mxu1 }
 0x375   : > { %v7849_v59 = vpop.f32.mrf.mxu0  ;;  %v4505_v12 = vpop.permute.xlu0 %4504  ;;  %v4549_v20 = vrot.slane %v4541_v31, %v6482_v49 }
 0x376   : > { %v3344_v2 = vpop.f32.mrf.mxu1 }
 0x377   : > { %v7852_v36 = vpop.f32.mrf.mxu0  ;;  %5004 = vmatpush1.bf16.msra.mxu1 %v4888_v29  ;;  %v4585_v29 = vrot.slane %v4577_v37, %v6482_v49  ;;  %v4537_v37 = vrot.slane %v4529_v47, %v6482_v49 }
 0x378   : > { %5005 = vmatprep.subr.bf16.mxu1 %v4887_v5  ;;  %v4517_v7 = vpop.permute.xlu1 %4516  ;;  %v4573_v5 = vrot.slane %v4565_v63, %v6482_v49  ;;  %v3346_v25 = vpop.f32.mrf.mxu1 }
 0x379   : > { %v7855_v57 = vpop.f32.mrf.mxu0  ;;  %v4481_v51 = vpop.permute.xlu0 %4480  ;;  %v4525_v31 = vrot.slane %v4517_v7, %v6482_v49 }
 0x37a   : > { %v5425_v46 = vcombine.low %v4561_v38, %v4573_v5  ;;  %v3666_v38 = vadd.f32 %v7855_v57, %v7750_v6  ;;  %v3664_v6 = vadd.f32 %v7852_v36, %v7728_v28 }
 0x37b   : > { %v7857_v9 = vpop.f32.mrf.mxu0  ;;  %5006 = vmatpush1.bf16.msra.mxu1 %v4886_v42 }
 0x37c   : > { %v4493_v63 = vpop.permute.xlu1 %4492 }
 0x37d   : > { %v3669_v39 = vpop.f32.mrf.mxu0 }
 0x37f   : > { %v3673_v62 = vpop.f32.mrf.mxu0 }
 0x381   : > { %v3675_v8 = vpop.f32.mrf.mxu0 }
 0x383   : > { %v3677_v44 = vpop.f32.mrf.mxu0 }
 0x385   : > { %v3679_v3 = vpop.f32.mrf.mxu0 }
 0x386   : > { %v3680_v55 = vadd.f32 %v3679_v3, %v3326_v0  ;;  %v3678_v0 = vadd.f32 %v3677_v44, %v7837_v26 }
 0x387   : > { %v3683_v50 = vpop.f32.mrf.mxu0 }
 0x388   : > { %v3684_v53 = vadd.f32 %v3683_v50, %v3330_v35  ;;  %v4513_v35 = vrot.slane %v4505_v12, %v6482_v49  ;;  %v8289_v50 = vld [vmem:[#allocation15_spill] sm:$0xff] }
 0x389   : > { %v3685_v32 = vpop.f32.mrf.mxu0 }
 0x38a   : > { %v3686_v4 = vadd.f32 %v3685_v32, %v3332_v34  ;;  %v3676_v34 = vadd.f32 %v3675_v8, %v7823_v19  ;;  %v4469_v19 = vpop.permute.xlu1 %4468  ;;  %v5423_v57 = vcombine.low %v4513_v35, %v4525_v31  ;;  %v4501_v8 = vrot.slane %v4493_v63, %v6482_v49 }
 0x38b   : > { %v3687_v22 = vpop.f32.mrf.mxu0 }
 0x38c   : > { %v3688_v1 = vadd.f32 %v3687_v22, %v3334_v52 }
 0x38d   : > { %v3689_v43 = vpop.f32.mrf.mxu0 }
 0x38e   : > { %v3690_v27 = vadd.f32 %v3689_v43, %v3336_v18  ;;  %v5426_v43 = vcombine.low %v4585_v29, %v4597_v30  ;;  %v3762_v52 = vpack.c.bf16 %v3688_v1, %v3684_v53  ;;  %v4457_v1 = vpop.permute.xlu0 %4456  ;;  %v8287_v53 = vld [vmem:[#allocation16_spill] sm:$0xff]  ;;  %v8292_v29 = vld [vmem:[#allocation33_spill] sm:$0xff] }
 0x38f   : > { %v3693_v24 = vpop.f32.mrf.mxu0  ;;  %v4465_v30 = vrot.slane %v4457_v1, %v6482_v49  ;;  %v3646_v5 = vadd.f32 %v7811_v45, %v8292_v29 }
 0x390   : > { %v3694_v40 = vadd.f32 %v3693_v24, %v3340_v10  ;;  %v3763_v14 = vpack.c.bf16 %v3690_v27, %v3686_v4  ;;  %v3670_v4 = vadd.f32 %v3669_v39, %v7794_v13  ;;  %v3674_v10 = vadd.f32 %v3673_v62, %v7813_v17  ;;  %v8290_v24 = vld [vmem:[#allocation26_spill] sm:$0xff] }
 0x391   : > { %v3695_v15 = vpop.f32.mrf.mxu0  ;;  %v3660_v17 = vadd.f32 %v7849_v59, %v8287_v53  ;;  %v3658_v59 = vadd.f32 %v7843_v33, %v8289_v50  ;;  %v3650_v28 = vadd.f32 %v7821_v56, %v8290_v24  ;;  %v4477_v33 = vrot.slane %v4469_v19, %v6482_v49  ;;  %v8293_v56 = vld [vmem:[#allocation18_spill] sm:$0xff] }
 0x392   : > { %v3696_v61 = vadd.f32 %v3695_v15, %v3342_v48  ;;  %v3759_v26 = vpack.c.bf16 %v3670_v4, %v3666_v38  ;;  %v4445_v15 = vpop.permute.xlu1 %4444  ;;  %v8295_v38 = vld [vmem:[#allocation46_spill] sm:$0xff] }
 0x393   : > { %v3697_v42 = vpop.f32.mrf.mxu0 }
 0x394   : > { %v3698_v41 = vadd.f32 %v3697_v42, %v3344_v2  ;;  %v4847_v7 = vadd.bf16 %v5423_v57, %v3759_v26  ;;  %v8291_v2 = vld [vmem:[#allocation20_spill] sm:$0xff]  ;;  %v3648_v42 = vadd.f32 %v7816_v58, %v8293_v56 }
 0x395   : > { %v3699_v11 = vpop.f32.mrf.mxu0 }
 0x396   : > { %v3764_v60 = vpack.c.bf16 %v3698_v41, %v3694_v40  ;;  %v3700_v18 = vadd.f32 %v3699_v11, %v3346_v25  ;;  %v3761_v40 = vpack.c.bf16 %v3680_v55, %v3676_v34  ;;  %v4851_v25 = vadd.bf16 %v5425_v46, %v3763_v14  ;;  %v4421_v45 = vpop.permute.xlu1 %4420 }
 0x397   : > { %v5424_v41 = vcombine.low %v4537_v37, %v4549_v20  ;;  %v3760_v55 = vpack.c.bf16 %v3678_v0, %v3674_v10  ;;  %v4850_v14 = vadd.bf16 %v5425_v46, %v3762_v52  ;;  %v3755_v37 = vpack.c.bf16 %v3650_v28, %v3646_v5  ;;  %v8294_v52 = vld [vmem:[#allocation37_spill] sm:$0xff] }
 0x398   : > { %v3765_v32 = vpack.c.bf16 %v3700_v18, %v3696_v61  ;;  %v4852_v3 = vadd.bf16 %v5426_v43, %v3764_v60  ;;  %v3668_v60 = vadd.f32 %v7857_v9, %v7776_v16  ;;  %v4915_v62 = vmax.bf16 %v8065_v23, %v4851_v25  ;;  %v8288_v9 = vld [vmem:[#allocation12_spill] sm:$0xff]  ;;  %v8308_v5 = vld [vmem:[#allocation17_spill] sm:$0xff] }
 0x399   : > { %v4849_v39 = vadd.bf16 %v5424_v41, %v3761_v40  ;;  %v4489_v16 = vrot.slane %v4481_v51, %v6482_v49  ;;  %v3656_v44 = vadd.f32 %v7835_v21, %v8288_v9  ;;  %v4848_v22 = vadd.bf16 %v5424_v41, %v3760_v55  ;;  %v4433_v51 = vpop.permute.xlu0 %4432 }
 0x39a   : > { %v4853_v11 = vadd.bf16 %v5426_v43, %v3765_v32  ;;  %v4916_v13 = vmax.bf16 %v8065_v23, %v4852_v3  ;;  %v3758_v47 = vpack.c.bf16 %v3668_v60, %v3664_v6  ;;  %v4914_v48 = vmax.bf16 %v8065_v23, %v4850_v14  ;;  %v8298_v14 = vld [vmem:[#allocation45_spill] sm:$0xff] }
 0x39b   : > { %v3757_v36 = vpack.c.bf16 %v3660_v17, %v3656_v44  ;;  %v4913_v12 = vmax.bf16 %v8065_v23, %v4849_v39  ;;  %v3654_v21 = vadd.f32 %v7829_v54, %v8291_v2  ;;  %v5422_v27 = vcombine.low %v4489_v16, %v4501_v8  ;;  %v8302_v39 = vld [vmem:[#allocation13_spill] sm:$0xff]  ;;  %v8304_v8 = vld [vmem:[#allocation11_spill] sm:$0xff] }
 0x39c   : > { %v4917_v61 = vmax.bf16 %v8065_v23, %v4853_v11  ;;  %v4846_v43 = vadd.bf16 %v5423_v57, %v3758_v47  ;;  %v4912_v20 = vmax.bf16 %v8065_v23, %v4848_v22  ;;  %v4911_v54 = vmax.bf16 %v8065_v23, %v4847_v7  ;;  %v8305_v16 = vld [vmem:[#allocation35_spill] sm:$0xff] }
 0x39d   : > { %v3756_v18 = vpack.c.bf16 %v3658_v59, %v3654_v21  ;;  %v4845_v63 = vadd.bf16 %v5422_v27, %v3757_v36  ;;  %v5421_v46 = vcombine.low %v4465_v30, %v4477_v33  ;;  %v4453_v34 = vrot.slane %v4445_v15, %v6482_v49  ;;  %v4409_v0 = vpop.permute.xlu0 %4408  ;;  %v8307_v22 = vld [vmem:[#allocation23_spill] sm:$0xff] }
 0x39e   : > { %5007 = vmatprep.subr.bf16.mxu1 %v4917_v61  ;;  %v4441_v32 = vrot.slane %v4433_v51, %v6482_v49  ;;  %v3754_v3 = vpack.c.bf16 %v3648_v42, %v8294_v52  ;;  %v4910_v4 = vmax.bf16 %v8065_v23, %v4846_v43  ;;  %v4429_v41 = vrot.slane %v4421_v45, %v6482_v49  ;;  %v8296_v61 = vld [vmem:[#allocation48_spill] sm:$0xff] }
 0x39f   : > { %5008 = vmatpush2.bf16.msra.mxu1 %v4916_v13  ;;  %v4844_v58 = vadd.bf16 %v5422_v27, %v3756_v18  ;;  %v4843_v40 = vadd.bf16 %v5421_v46, %v3755_v37  ;;  %v4909_v25 = vmax.bf16 %v8065_v23, %v4845_v63  ;;  %v4417_v10 = vrot.slane %v4409_v0, %v6482_v49  ;;  %v8299_v13 = vld [vmem:[#allocation49_spill] sm:$0xff]  ;;  %v8301_v49 = vld [vmem:[#allocation50_spill] sm:$0xff] }
 0x3a0   : > { %5009 = vmatprep.subr.bf16.mxu1 %v4915_v62  ;;  %v5420_v11 = vcombine.low %v4441_v32, %v4453_v34  ;;  %v4842_v31 = vadd.bf16 %v5421_v46, %v3754_v3  ;;  %v8297_v19 = vpack.c.bf16 %v8295_v38, %v8296_v61  ;;  %v8300_v53 = vpack.c.bf16 %v8298_v14, %v8299_v13 }
 0x3a1   : > { %v4908_v35 = vmax.bf16 %v8065_v23, %v4844_v58  ;;  %v4907_v60 = vmax.bf16 %v8065_v23, %v4843_v40  ;;  %v5419_v55 = vcombine.low %v4417_v10, %v4429_v41  ;;  %v8303_v62 = vpack.c.bf16 %v8301_v49, %v8302_v39 }
 0x3a2   : > { %v4841_v1 = vadd.bf16 %v5420_v11, %v8297_v19  ;;  %v4840_v17 = vadd.bf16 %v5420_v11, %v8300_v53  ;;  %v4906_v26 = vmax.bf16 %v8065_v23, %v4842_v31  ;;  %v8306_v9 = vpack.c.bf16 %v8304_v8, %v8305_v16 }
 0x3a3   : > { %5010 = vmatpush2.bf16.msra.mxu1 %v4914_v48  ;;  %v4839_v6 = vadd.bf16 %v5419_v55, %v8303_v62  ;;  %v4944_v48 = vcombine.high %v8307_v22, %v8307_v22  ;;  %v8309_v42 = vlaneseq }
 0x3a4   : > { %5011 = vmatprep.subr.bf16.mxu1 %v4913_v12  ;;  %v4905_v57 = vmax.bf16 %v8065_v23, %v4841_v1  ;;  %v4838_v44 = vadd.bf16 %v5419_v55, %v8306_v9  ;;  %v4904_v50 = vmax.bf16 %v8065_v23, %v4840_v17  ;;  %v4920_v12 = vstv %s4919_s16 }
 0x3a5   : > { %v4903_v59 = vmax.bf16 %v8065_v23, %v4839_v6  ;;  %vm5052_vm2 = vcmp.lt.s32.totalorder %v8309_v42, 256 }
 0x3a6   : > { %v4902_v47 = vmax.bf16 %v8065_v23, %v4838_v44 }
 0x3a7   : > { %5012 = vmatpush2.bf16.msra.mxu1 %v4912_v20 }
 0x3a8   : > { %5013 = vmatprep.subr.bf16.mxu1 %v4911_v54 }
 0x3ab   : > { %5014 = vmatpush2.bf16.msra.mxu1 %v4910_v4 }
 0x3ac   : > { %5015 = vmatprep.subr.bf16.mxu1 %v4909_v25 }
 0x3af   : > { %5016 = vmatpush2.bf16.msra.mxu1 %v4908_v35 }
 0x3b0   : > { %5017 = vmatprep.subr.bf16.mxu1 %v4907_v60 }
 0x3b3   : > { %5018 = vmatpush2.bf16.msra.mxu1 %v4906_v26 }
 0x3b4   : > { %5019 = vmatprep.subr.bf16.mxu1 %v4905_v57 }
 0x3b7   : > { %5020 = vmatpush2.bf16.msra.mxu1 %v4904_v50 }
 0x3b8   : > { %5021 = vmatprep.subr.bf16.mxu1 %v4903_v59 }
 0x3bb   : > { %5022 = vmatpush2.bf16.msra.mxu1 %v4902_v47 }
 0x3be   : > { %5024 = vmatmul.mubr.bf16.vlgmr.msra.gmra.mxu1 %v4944_v48 }
 0x3fe   : > { %v4984_v24 = vpop.f32.mrf.mxu1 }
 0x3ff   : > { %v4985_v51 = vadd.f32 %v4984_v24, %v4920_v12 }
 0x400   : > { %v4986_v28 = vpop.f32.mrf.mxu1 }
 0x401   : > { %v4987_v2 = vadd.f32 %v4986_v28, %v4920_v12 }
 0x402   : > { %v4988_v36 = vpop.f32.mrf.mxu1 }
 0x404   : > { %v4989_v7 = vpop.f32.mrf.mxu1 }
 0x47e   : > { %v5025_v15 = vpop.f32.mrf.mxu1 }
 0x47f   : > { %v5026_v27 = vadd.f32 %v5025_v15, %v4985_v51 }
 0x480   : > { %v5027_v21 = vpop.f32.mrf.mxu1 }
 0x481   : > { %v5028_v23 = vadd.f32 %v5027_v21, %v4987_v2 }
 0x482   : > { %v5029_v33 = vpop.f32.mrf.mxu1 }
 0x483   : > { %v5034_v30 = vcombine.low %v5026_v27, %v5028_v23 }
 0x484   : > { %v5030_v29 = vpop.f32.mrf.mxu1 }
 0x485   : > { %v5041_v56 = vrot.slane %v5034_v30, %v8308_v5 }
 0x487   : > { %v5048_v18 = vrot.slane %v5041_v56, %v8308_v5 }
 0x489   : > { %5054 = vst.msk [vmem:[%s312_s20] sm:$0x3] %vm5052_vm2, %v5048_v18 }
 0x48a   : > { %5774 = shalt.err (!%p5771_p3)
}
 0x48b   : > { %s5775_s13 = scalar_lea.hbm %s5070_s24, 32  ;;  %s5779_s18 = scalar_lea.hbm %s7979_s7, 64 }
 0x48c   : > { %p5776_p5 = scmp.ne.s32.totalorder %s5070_s24, %s5775_s13  ;;  %p5780_p9 = scmp.lt.s32.totalorder %s5070_s24, %s7979_s7 }
 0x48d   : > { %p5781_p12 = scmp.lt.s32.totalorder %s5779_s18, %s5775_s13 }
 0x48e   : > { %p5777_p6 = pnand %p5776_p5, %p5933_p4 }
 0x48f   : > { %p5782_p10 = por %p5781_p12, %p5780_p9 }
 0x490   : > { %p5778_p7 = pneg %p5777_p6 }
 0x492   : > { %p5783_p11 = pnand %p5782_p10, %p5778_p7 }
 0x494   : > { %5786 = shalt.err (!%p5783_p11)
}
 0x495   : > { %5441 = dma.vmem_to_hbm [thread:$0]  (%p5933_p4), %s5073_s21, 32, %s5070_s24, %s5056_s25  }
 0x496 PF: > { %p5453_p13 = scmp.ge.s32.totalorder %s5841_s8, 2  ;;  %s5084_s22 = sand.u32 1, %s5821_s26  }
 0x497   : > { %s5085_s23 = scalar_lea.sflag [#allocation5], %s5084_s22 }
 0x498   : > { %p5448_p0 = pnand %p5453_p13, %p5940_p8 }
 0x49a   : > { %p5449_p1 = pneg %p5448_p0 }
 0x49c   : > { %5816 = dma.done.wait (%p5449_p1), %s5085_s23, 32  }
 0x49d   : > { %5818 = vsyncadd (%p5449_p1), %s5085_s23, 4294967264  ;;  %s22_s8 = sadd.s32 1, %s5841_s8   ;;  %s8310_s26 = smov %s5825_s27 }
 0x49e   : > { %p19_p2 = scmp.ge.s32.totalorder %s22_s8, 4   ;;  %s8311_s27 = smov %s5829_s28 }
 0x49f   : > { %s8312_s28 = smov %s5946_s15  ;;  %s8313_s29 = smov %s5837_s30 }
 0x4a0   : > { %s8314_s30 = smov %s8316_s10  ;;  %21 = sbr.rel (!%p19_p2) target bundleno = 7 (0x7), region = 88 }
 0x4a5   :  { %5090 = vsyncpa [#allocation4], 1 }
 0x4a6   :  { %5092 = vsyncpa [#allocation4 + $0x1], 1 }
 0x4a7   :  { %5093 = vsyncpa [#allocation5], 1 }
 0x4a8   :  { %5095 = vsyncpa [#allocation5 + $0x1], 1 }

</bundles_post_ra>
